<compile_context>
chip_gen: v7x
topology: tpu7x:2x2x1
jax: 0.10.0
libtpu: 0.0.40
codegen_flags: <defaults>
</compile_context>

<pallas_src>
import functools

import jax
import jax.numpy as jnp
from jax.experimental import pallas as pl
from jax.experimental.pallas import tpu as pltpu

BN_EPS = 1e-5
LANE = 128


def _round_up(n, m):
    return ((n + m - 1) // m) * m


def _pick_tile_b(B, HW, coutp):
    """Choose a batch tile: 8-aligned sublanes, VMEM-safe, >=2 grid steps."""
    # Per-step f32 conv output `y` is tile_b*HW*coutp*4 bytes; keep it well
    # under the 32 MiB scoped-VMEM default (v7x has only 64 MiB physical).
    vmem_cap = max(1, (8 << 20) // (HW * coutp * 4))
    cap = min(B, vmem_cap, 64)
    best = None
    for d in range(1, cap + 1):
        # out-block sublane dim must be a multiple of 8 or the full batch dim
        if B % d == 0 and (d % 8 == 0 or d == B):
            best = d
    if best is None:
        best = B  # tiny batches: single tile, block == full batch dim
    # Prefer >= 2 grid steps so v7x's second TensorCore is used.
    if best == B and B % 16 == 0:
        best = B // 2
    return best


def adadsa_kernel(xp_ref, wc_ref, bc_ref, wf_ref, bf_ref, logits_ref, feats_ref):
    # xp_ref     : (tile_b, H+2, W+2, Cin)  padded NHWC input (f32 or bf16)
    # wc_ref     : (9*Cin, Cout_pad)        BN-folded conv weights (lane-padded)
    # bc_ref     : (1, Cout_pad)            BN-folded conv bias (f32)
    # wf_ref     : (Cout_pad, NC_pad)       classifier weights (lane-padded)
    # bf_ref     : (1, NC_pad)              classifier bias (f32)
    # logits_ref : (tile_b, NC_pad)
    # feats_ref  : (tile_b, Cout_pad)
    tile_b, hp2, wp2, cin = xp_ref.shape
    H, W = hp2 - 2, wp2 - 2
    hw = H * W
    m = tile_b * hw

    # In-kernel im2col: nine static taps sliced from the padded VMEM tile.
    # (Widen to f32 first so the sublane-shifted slices operate on unpacked
    # rows; bf16->f32->bf16 is exact, so this changes no numerics.)
    xp = xp_ref[...].astype(jnp.float32)
    taps = [xp[:, kh:kh + H, kw:kw + W, :]
            for kh in range(3) for kw in range(3)]
    patches = jnp.concatenate(taps, axis=-1).reshape(m, 9 * cin)

    # Fused conv (single im2col matmul) + folded-BN affine + ReLU (f32 epilogue).
    y = jnp.dot(patches.astype(wc_ref.dtype), wc_ref[...],
                preferred_element_type=jnp.float32)
    y = jnp.maximum(y + bc_ref[...], 0.0)                      # (m, Cout_pad) f32

    # Global average pool: layout-preserving reshape + f32 sublane reduction.
    feats = y.reshape(tile_b, hw, y.shape[-1]).sum(axis=1) * (1.0 / hw)
    feats_ref[...] = feats                                     # (tile_b, Cout_pad)

    # Classifier head (lane-dense padded output).
    logits_ref[...] = (
        jnp.dot(feats.astype(wf_ref.dtype), wf_ref[...],
                preferred_element_type=jnp.float32)
        + bf_ref[...])


def adadsa_forward(x_nchw, params, *, tile_b=None, matmul_dtype=jnp.bfloat16):
    """AdaDSA.forward(x) == target_model(x) -> (logits, feats)."""
    B, Cin, H, W = x_nchw.shape
    Cout = params["conv_w"].shape[-1]
    NC = params["fc_w"].shape[-1]
    HW = H * W
    K9 = 9 * Cin
    Coutp = _round_up(Cout, LANE)
    NCp = _round_up(NC, LANE)
    if tile_b is None:
        tile_b = _pick_tile_b(B, HW, Coutp)
    assert B % tile_b == 0, "tile_b must divide the batch"
    assert tile_b % 8 == 0 or tile_b == B, \
        "output sublane dim must be 8-aligned or equal to the full batch"
    n_tiles = B // tile_b

    # ---- plain-JAX glue: NCHW->NHWC, 1-pixel zero pad, BN folding, lane pad.
    # The padded input is the ONLY per-sample HBM stream (no 9x im2col array).
    x = jnp.transpose(x_nchw, (0, 2, 3, 1)).astype(jnp.float32)         # NHWC
    xp = jnp.pad(x, ((0, 0), (1, 1), (1, 1), (0, 0))).astype(matmul_dtype)

    # Fold eval-mode BatchNorm (AdaDSA-blended running stats) into the conv.
    scale = params["gamma"][0] * jax.lax.rsqrt(params["var"][0] + BN_EPS)  # (Cout,)
    wc = (params["conv_w"] * scale).reshape(K9, Cout)
    bc = (params["conv_b"][0] - params["mu"][0]) * scale + params["beta"][0]

    # Lane-pad channel / class dims to 128 (padded lanes stay exactly zero).
    wc_p = jnp.zeros((K9, Coutp), jnp.float32).at[:, :Cout].set(wc)
    wc_p = wc_p.astype(matmul_dtype)
    bc_p = jnp.zeros((1, Coutp), jnp.float32).at[:, :Cout].set(bc)
    wf_p = jnp.zeros((Coutp, NCp), jnp.float32).at[:Cout, :NC].set(params["fc_w"])
    wf_p = wf_p.astype(matmul_dtype)
    bf_p = jnp.zeros((1, NCp), jnp.float32).at[:, :NC].set(params["fc_b"][0])

    logits_p, feats_p = pl.pallas_call(
        adadsa_kernel,
        out_shape=(jax.ShapeDtypeStruct((B, NCp), jnp.float32),
                   jax.ShapeDtypeStruct((B, Coutp), jnp.float32)),
        grid=(n_tiles,),
        in_specs=[
            pl.BlockSpec((tile_b, H + 2, W + 2, Cin), lambda i: (i, 0, 0, 0)),
            pl.BlockSpec((K9, Coutp), lambda i: (0, 0)),
            pl.BlockSpec((1, Coutp), lambda i: (0, 0)),
            pl.BlockSpec((Coutp, NCp), lambda i: (0, 0)),
            pl.BlockSpec((1, NCp), lambda i: (0, 0)),
        ],
        out_specs=(pl.BlockSpec((tile_b, NCp), lambda i: (i, 0)),
                   pl.BlockSpec((tile_b, Coutp), lambda i: (i, 0))),
        compiler_params=pltpu.CompilerParams(
            dimension_semantics=("parallel",)),
    )(xp, wc_p, bc_p, wf_p, bf_p)

    return logits_p[:, :NC], feats_p[:, :Cout]


def make_params(key, cin=4, cout=8, num_classes=10, alpha=0.5):
    ks = jax.random.split(key, 8)
    conv_w = 0.1 * jax.random.normal(ks[0], (3, 3, cin, cout), jnp.float32)
    conv_b = 0.1 * jax.random.normal(ks[1], (1, cout), jnp.float32)
    gamma = jnp.ones((1, cout), jnp.float32)
    beta = jnp.zeros((1, cout), jnp.float32)
    # Deterministic "running stats" of source / target BatchNorm2d layers.
    mu_t = 0.2 * jax.random.normal(ks[2], (1, cout), jnp.float32)
    var_t = 0.5 + jax.random.uniform(ks[3], (1, cout), jnp.float32)
    mu_s = 0.2 * jax.random.normal(ks[4], (1, cout), jnp.float32)
    var_s = 0.5 + jax.random.uniform(ks[5], (1, cout), jnp.float32)
    # AdaDSA._update_bn_stats blend (plain-JAX glue installing blended stats).
    mu_ts = alpha * mu_t + (1.0 - alpha) * mu_s
    var_ts = (alpha * (var_t + (mu_t - mu_ts) ** 2)
              + (1.0 - alpha) * (var_s + (mu_s - mu_ts) ** 2))
    fc_w = 0.1 * jax.random.normal(ks[6], (cout, num_classes), jnp.float32)
    fc_b = 0.1 * jax.random.normal(ks[7], (1, num_classes), jnp.float32)
    return dict(conv_w=conv_w, conv_b=conv_b, gamma=gamma, beta=beta,
                mu=mu_ts, var=var_ts, fc_w=fc_w, fc_b=fc_b)


def reference_forward(x_nchw, params):
    """Pure-JAX reference matching the PyTorch target model."""
    x = jnp.transpose(x_nchw, (0, 2, 3, 1)).astype(jnp.float32)
    y = jax.lax.conv_general_dilated(
        x, params["conv_w"], window_strides=(1, 1), padding="SAME",
        dimension_numbers=("NHWC", "HWIO", "NHWC"))
    y = y + params["conv_b"][0]
    y = (y - params["mu"][0]) * jax.lax.rsqrt(params["var"][0] + BN_EPS)
    y = y * params["gamma"][0] + params["beta"][0]
    y = jnp.maximum(y, 0.0)
    feats = jnp.mean(y, axis=(1, 2))
    logits = feats @ params["fc_w"] + params["fc_b"][0]
    return logits, feats


if __name__ == "__main__":
    # TODO(synk): AdaDSA.adapt() (Adam optimizer, source/target prob blending,
    # cross-entropy training loop) is host-side training, not part of forward().
    key = jax.random.PRNGKey(0)
    kx, kp = jax.random.split(key)
    B, Cin, H, W = 2, 4, 16, 16
    x = jax.random.normal(kx, (B, Cin, H, W), jnp.float32)   # NCHW like PyTorch
    params = make_params(kp, cin=Cin, cout=8, num_classes=10, alpha=0.5)

    ref_logits, ref_feats = reference_forward(x, params)

    # f32 MXU path: tight numerical check.
    fwd_f32 = jax.jit(functools.partial(adadsa_forward, matmul_dtype=jnp.float32))
    logits, feats = fwd_f32(x, params)
    jax.block_until_ready((logits, feats))
    assert jnp.allclose(logits, ref_logits, rtol=1e-4, atol=1e-4)
    assert jnp.allclose(feats, ref_feats, rtol=1e-4, atol=1e-4)

    # Default path: bf16 MXU inputs/weights (f32 accumulate + f32 epilogue).
    # Note: this quantizes the conv inputs to bf16 (inference-grade precision).
    fwd_bf16 = jax.jit(adadsa_forward)
    logits16, feats16 = fwd_bf16(x, params)
    jax.block_until_ready((logits16, feats16))
    assert jnp.allclose(logits16, ref_logits, rtol=5e-2, atol=5e-2)
    assert jnp.allclose(feats16, ref_feats, rtol=5e-2, atol=5e-2)

    # Larger batch: exercises tile_b >= 8 (unmasked output stores), M = 4096
    # rows per step, and a 2-step "parallel" grid (both v7x TensorCores).
    B2 = 32
    x2 = jax.random.normal(jax.random.PRNGKey(1), (B2, Cin, H, W), jnp.float32)
    ref_logits2, ref_feats2 = reference_forward(x2, params)
    logits2, feats2 = jax.jit(adadsa_forward)(x2, params)
    jax.block_until_ready((logits2, feats2))
    assert jnp.allclose(logits2, ref_logits2, rtol=5e-2, atol=5e-2)
    assert jnp.allclose(feats2, ref_feats2, rtol=5e-2, atol=5e-2)

    print("KERNEL_OK")
</pallas_src>

<mosaic_0001>
module attributes {stable_mosaic.version = 11 : i64} {
  func.func @adadsa_kernel(%arg0: i32, %arg1: memref<2x18x18x4xf32, #tpu.memory_space<vmem>>, %arg2: memref<36x128xf32, #tpu.memory_space<vmem>>, %arg3: memref<1x128xf32, #tpu.memory_space<vmem>>, %arg4: memref<128x128xf32, #tpu.memory_space<vmem>>, %arg5: memref<1x128xf32, #tpu.memory_space<vmem>>, %arg6: memref<2x128xf32, #tpu.memory_space<vmem>>, %arg7: memref<2x128xf32, #tpu.memory_space<vmem>>) attributes {dimension_semantics = [#tpu.dimension_semantics<parallel>], iteration_bounds = array<i64: 1>, scalar_prefetch = 0 : i64, scratch_operands = 0 : i64, tpu.core_type = #tpu.core_type<tc>, window_params = [{transform_indices = @transform_0, window_bounds = array<i64: 2, 18, 18, 4>}, {pipeline_mode = #tpu.pipeline_mode<synchronous>, transform_indices = @transform_1, window_bounds = array<i64: 36, 128>}, {pipeline_mode = #tpu.pipeline_mode<synchronous>, transform_indices = @transform_2, window_bounds = array<i64: 1, 128>}, {pipeline_mode = #tpu.pipeline_mode<synchronous>, transform_indices = @transform_3, window_bounds = array<i64: 128, 128>}, {pipeline_mode = #tpu.pipeline_mode<synchronous>, transform_indices = @transform_4, window_bounds = array<i64: 1, 128>}, {transform_indices = @transform_5, window_bounds = array<i64: 2, 128>}, {transform_indices = @transform_6, window_bounds = array<i64: 2, 128>}]} {
    %c0 = arith.constant 0 : index
    %c0_0 = arith.constant 0 : index
    %c0_1 = arith.constant 0 : index
    %c0_2 = arith.constant 0 : index
    %0 = vector.load %arg1[%c0, %c0_0, %c0_1, %c0_2] : memref<2x18x18x4xf32, #tpu.memory_space<vmem>>, vector<2x18x18x4xf32>
    %1 = vector.extract_strided_slice %0 {offsets = [0, 0, 0, 0], sizes = [2, 16, 16, 4], strides = [1, 1, 1, 1]} : vector<2x18x18x4xf32> to vector<2x16x16x4xf32>
    %2 = vector.extract_strided_slice %0 {offsets = [0, 0, 1, 0], sizes = [2, 16, 16, 4], strides = [1, 1, 1, 1]} : vector<2x18x18x4xf32> to vector<2x16x16x4xf32>
    %3 = vector.extract_strided_slice %0 {offsets = [0, 0, 2, 0], sizes = [2, 16, 16, 4], strides = [1, 1, 1, 1]} : vector<2x18x18x4xf32> to vector<2x16x16x4xf32>
    %4 = vector.extract_strided_slice %0 {offsets = [0, 1, 0, 0], sizes = [2, 16, 16, 4], strides = [1, 1, 1, 1]} : vector<2x18x18x4xf32> to vector<2x16x16x4xf32>
    %5 = vector.extract_strided_slice %0 {offsets = [0, 1, 1, 0], sizes = [2, 16, 16, 4], strides = [1, 1, 1, 1]} : vector<2x18x18x4xf32> to vector<2x16x16x4xf32>
    %6 = vector.extract_strided_slice %0 {offsets = [0, 1, 2, 0], sizes = [2, 16, 16, 4], strides = [1, 1, 1, 1]} : vector<2x18x18x4xf32> to vector<2x16x16x4xf32>
    %7 = vector.extract_strided_slice %0 {offsets = [0, 2, 0, 0], sizes = [2, 16, 16, 4], strides = [1, 1, 1, 1]} : vector<2x18x18x4xf32> to vector<2x16x16x4xf32>
    %8 = vector.extract_strided_slice %0 {offsets = [0, 2, 1, 0], sizes = [2, 16, 16, 4], strides = [1, 1, 1, 1]} : vector<2x18x18x4xf32> to vector<2x16x16x4xf32>
    %9 = vector.extract_strided_slice %0 {offsets = [0, 2, 2, 0], sizes = [2, 16, 16, 4], strides = [1, 1, 1, 1]} : vector<2x18x18x4xf32> to vector<2x16x16x4xf32>
    %10 = tpu.concatenate %1, %2, %3, %4, %5, %6, %7, %8, %9 in 3 : vector<2x16x16x4xf32>, vector<2x16x16x4xf32>, vector<2x16x16x4xf32>, vector<2x16x16x4xf32>, vector<2x16x16x4xf32>, vector<2x16x16x4xf32>, vector<2x16x16x4xf32>, vector<2x16x16x4xf32>, vector<2x16x16x4xf32> -> vector<2x16x16x36xf32>
    %11 = vector.shape_cast %10 : vector<2x16x16x36xf32> to vector<512x36xf32>
    %c0_3 = arith.constant 0 : index
    %c0_4 = arith.constant 0 : index
    %12 = vector.load %arg2[%c0_3, %c0_4] : memref<36x128xf32, #tpu.memory_space<vmem>>, vector<36x128xf32>
    %cst = arith.constant dense<0.000000e+00> : vector<512x128xf32>
    %13 = tpu.matmul %11, %12, %cst {dimension_numbers = #tpu.dot_dimension_numbers<[1], [0], [0], [1], [0, 0, 1, 1], [], []>} : vector<512x36xf32>, vector<36x128xf32>, vector<512x128xf32> -> vector<512x128xf32>
    %c0_5 = arith.constant 0 : index
    %c0_6 = arith.constant 0 : index
    %14 = vector.load %arg3[%c0_5, %c0_6] : memref<1x128xf32, #tpu.memory_space<vmem>>, vector<1x128xf32>
    %15 = vector.broadcast %14 : vector<1x128xf32> to vector<512x128xf32>
    %16 = arith.addf %13, %15 : vector<512x128xf32>
    %cst_7 = arith.constant 0.000000e+00 : f32
    %17 = vector.broadcast %cst_7 : f32 to vector<512x128xf32>
    %18 = arith.maximumf %16, %17 : vector<512x128xf32>
    %19 = vector.shape_cast %18 : vector<512x128xf32> to vector<2x256x128xf32>
    %cst_8 = arith.constant dense<0.000000e+00> : vector<2x128xf32>
    %20 = vector.multi_reduction <add>, %19, %cst_8 [1] : vector<2x256x128xf32> to vector<2x128xf32>
    %cst_9 = arith.constant 3.906250e-03 : f32
    %21 = vector.broadcast %cst_9 : f32 to vector<2x128xf32>
    %22 = arith.mulf %20, %21 : vector<2x128xf32>
    %c0_10 = arith.constant 0 : index
    %c0_11 = arith.constant 0 : index
    %23 = vector.load %arg7[%c0_10, %c0_11] : memref<2x128xf32, #tpu.memory_space<vmem>>, vector<2x128xf32>
    tpu.vector_store %arg7[%c0_10, %c0_11], %22 {strides = array<i32>} : memref<2x128xf32, #tpu.memory_space<vmem>>, vector<2x128xf32>,
    %c0_12 = arith.constant 0 : index
    %c0_13 = arith.constant 0 : index
    %24 = vector.load %arg4[%c0_12, %c0_13] : memref<128x128xf32, #tpu.memory_space<vmem>>, vector<128x128xf32>
    %cst_14 = arith.constant dense<0.000000e+00> : vector<2x128xf32>
    %25 = tpu.matmul %22, %24, %cst_14 {dimension_numbers = #tpu.dot_dimension_numbers<[1], [0], [0], [1], [0, 0, 1, 1], [], []>} : vector<2x128xf32>, vector<128x128xf32>, vector<2x128xf32> -> vector<2x128xf32>
    %c0_15 = arith.constant 0 : index
    %c0_16 = arith.constant 0 : index
    %26 = vector.load %arg5[%c0_15, %c0_16] : memref<1x128xf32, #tpu.memory_space<vmem>>, vector<1x128xf32>
    %27 = vector.broadcast %26 : vector<1x128xf32> to vector<2x128xf32>
    %28 = arith.addf %25, %27 : vector<2x128xf32>
    %c0_17 = arith.constant 0 : index
    %c0_18 = arith.constant 0 : index
    %29 = vector.load %arg6[%c0_17, %c0_18] : memref<2x128xf32, #tpu.memory_space<vmem>>, vector<2x128xf32>
    tpu.vector_store %arg6[%c0_17, %c0_18], %28 {strides = array<i32>} : memref<2x128xf32, #tpu.memory_space<vmem>>, vector<2x128xf32>,
    return
  }
  func.func @transform_0(%arg0: i32) -> (i32, i32, i32, i32) {
    %c0_i32 = arith.constant 0 : i32
    %c0_i32_0 = arith.constant 0 : i32
    %c0_i32_1 = arith.constant 0 : i32
    %c0_i32_2 = arith.constant 0 : i32
    return %arg0, %c0_i32, %c0_i32_0, %c0_i32_1 : i32, i32, i32, i32
  }
  func.func @transform_1(%arg0: i32) -> (i32, i32) {
    %c0_i32 = arith.constant 0 : i32
    %c0_i32_0 = arith.constant 0 : i32
    %c0_i32_1 = arith.constant 0 : i32
    return %c0_i32, %c0_i32_0 : i32, i32
  }
  func.func @transform_2(%arg0: i32) -> (i32, i32) {
    %c0_i32 = arith.constant 0 : i32
    %c0_i32_0 = arith.constant 0 : i32
    %c0_i32_1 = arith.constant 0 : i32
    return %c0_i32, %c0_i32_0 : i32, i32
  }
  func.func @transform_3(%arg0: i32) -> (i32, i32) {
    %c0_i32 = arith.constant 0 : i32
    %c0_i32_0 = arith.constant 0 : i32
    %c0_i32_1 = arith.constant 0 : i32
    return %c0_i32, %c0_i32_0 : i32, i32
  }
  func.func @transform_4(%arg0: i32) -> (i32, i32) {
    %c0_i32 = arith.constant 0 : i32
    %c0_i32_0 = arith.constant 0 : i32
    %c0_i32_1 = arith.constant 0 : i32
    return %c0_i32, %c0_i32_0 : i32, i32
  }
  func.func @transform_5(%arg0: i32) -> (i32, i32) {
    %c0_i32 = arith.constant 0 : i32
    %c0_i32_0 = arith.constant 0 : i32
    return %arg0, %c0_i32 : i32, i32
  }
  func.func @transform_6(%arg0: i32) -> (i32, i32) {
    %c0_i32 = arith.constant 0 : i32
    %c0_i32_0 = arith.constant 0 : i32
    return %arg0, %c0_i32 : i32, i32
  }
}

</mosaic_0001>

<bundles_post_ra>
// kernel: adadsa_forward.1
= control target key start
LH: loop header
LB: loop body
LE: loop exit
PB: predicated region body
PF: predicated region fallthrough
CT: control target
= control target key end

     0   :  { %12 = vsyncpa [#allocation3], 0  ;;  %vm228_vm0 = vcmask 1046528   ;;  %s4006_s15 = smov 4   ;;  %s7900_s0 = inlined_call_operand.vmem [shape: f32[2,18,18,4], index: 0, kind: input, shape index: {}]   ;;  %s7901_s1 = inlined_call_operand.vmem [shape: f32[36,128], index: 1, kind: input, shape index: {}]   ;;  %s7902_s2 = inlined_call_operand.vmem [shape: f32[1,128], index: 2, kind: input, shape index: {}]   ;;  %s7903_s3 = inlined_call_operand.vmem [shape: f32[128,128], index: 3, kind: input, shape index: {}]   ;;  %s7904_s4 = inlined_call_operand.vmem [shape: f32[1,128], index: 4, kind: input, shape index: {}]   ;;  %s7905_s5 = inlined_call_operand.hbm [shape: f32[2,128], index: 5, kind: output, shape index: {0}]   ;;  %s7906_s6 = inlined_call_operand.hbm [shape: f32[2,128], index: 6, kind: output, shape index: {1}]  }
   0x1   :  { %v4057_v0 = vld [vmem:[%s7900_s0 + $0x18] sm:$0xff]  ;;  %v4062_v1 = vld [vmem:[%s7900_s0 + $0x20] sm:$0xff]  ;;  %v4074_v5 = vld [vmem:[%s7900_s0 + $0x8] sm:$0xff] }
   0x2   :  { %v4067_v2 = vld [vmem:[%s7900_s0] sm:$0xff]  ;;  %v234_v3 = vrot.slane %v4057_v0, 1  ;;  %v235_v4 = vrot.slane %v4062_v1, 1  ;;  %v4080_v7 = vld [vmem:[%s7900_s0 + $0x28] sm:$0x3]  ;;  %v230_v8 = vrot.slane %v4074_v5, 1 }
   0x3   :  { %v229_v6 = vrot.slane %v4067_v2, 1  ;;  %v237_v9 = vrot.slane %v4080_v7, 1  ;;  %v4087_v10 = vld [vmem:[%s7900_s0 + $0x10] sm:$0x3]  ;;  %v4092_v11 = vld [vmem:[%s7900_s0 + $0x38] sm:$0xff]  ;;  %v4132_v24 = vld [vmem:[%s7900_s0 + $0x48] sm:$0xff] }
   0x4   :  { %v4095_v12 = vsel %vm228_vm0, %v234_v3, %v235_v4  ;;  %v232_v13 = vrot.slane %v4087_v10, 1  ;;  %v4101_v14 = vld [vmem:[%s7900_s0 + $0x40] sm:$0x3]  ;;  %v4106_v15 = vld [vmem:[%s7900_s0 + $0x30] sm:$0xff]  ;;  %v240_v18 = vrot.slane %v4092_v11, 1  ;;  %v244_v29 = vrot.slane %v4132_v24, 1 }
   0x5   :  { %8195 = vst [vmem:[#allocation8_spill] sm:$0xff] %v4095_v12  ;;  %393 = vrot.lane.b32.xlu1 %v4095_v12, %s4006_s15  ;;  %v231_v16 = vsel %vm228_vm0, %v229_v6, %v230_v8  ;;  %v4113_v17 = vsel %vm228_vm0, %v235_v4, %v237_v9  ;;  %v242_v19 = vrot.slane %v4101_v14, 1  ;;  %v239_v21 = vrot.slane %v4106_v15, 1  ;;  %v4122_v22 = vld [vmem:[%s7900_s0 + $0x50] sm:$0xff]  ;;  %v4127_v23 = vld [vmem:[%s7900_s0 + $0x58] sm:$0x3] }
   0x6   :  { %389 = vrot.lane.b32.xlu0 %v231_v16, %s4006_s15  ;;  %8196 = vst [vmem:[#allocation9_spill] sm:$0xff] %v4113_v17  ;;  %v233_v20 = vsel %vm228_vm0, %v230_v8, %v232_v13  ;;  %v245_v26 = vrot.slane %v4122_v22, 1  ;;  %v247_v27 = vrot.slane %v4127_v23, 1  ;;  %v4149_v30 = vld [vmem:[%s7900_s0 + $0x68] sm:$0xff]  ;;  %v4154_v31 = vld [vmem:[%s7900_s0 + $0x70] sm:$0x3] }
   0x7   :  { %v4138_v25 = vsel %vm228_vm0, %v240_v18, %v242_v19  ;;  %v4143_v28 = vsel %vm228_vm0, %v239_v21, %v240_v18  ;;  %v4159_v32 = vld [vmem:[%s7900_s0 + $0x60] sm:$0xff]  ;;  %v250_v34 = vrot.slane %v4149_v30, 1  ;;  %v252_v35 = vrot.slane %v4154_v31, 1  ;;  %v4182_v39 = vld [vmem:[%s7900_s0 + $0x88] sm:$0x3]  ;;  %v4187_v40 = vld [vmem:[%s7900_s0 + $0x78] sm:$0xff] }
   0x8   :  { %8197 = vst [vmem:[#allocation10_spill] sm:$0xff] %v4138_v25  ;;  %8198 = vst [vmem:[#allocation11_spill] sm:$0xff] %v4143_v28  ;;  %v4166_v33 = vsel %vm228_vm0, %v245_v26, %v247_v27  ;;  %v4171_v36 = vsel %vm228_vm0, %v244_v29, %v245_v26  ;;  %v249_v37 = vrot.slane %v4159_v32, 1  ;;  %v4177_v38 = vld [vmem:[%s7900_s0 + $0x80] sm:$0xff]  ;;  %v257_v43 = vrot.slane %v4182_v39, 1  ;;  %v4205_v46 = vld [vmem:[%s7900_s0 + $0x98] sm:$0xff] }
   0x9   :  { %395 = vrot.lane.b32.xlu1 %v4113_v17, %s4006_s15  ;;  %8199 = vst [vmem:[#allocation12_spill] sm:$0xff] %v4166_v33  ;;  %8200 = vst [vmem:[#allocation13_spill] sm:$0xff] %v4171_v36  ;;  %v4194_v41 = vsel %vm228_vm0, %v250_v34, %v252_v35  ;;  %v255_v42 = vrot.slane %v4177_v38, 1  ;;  %v254_v45 = vrot.slane %v4187_v40, 1  ;;  %v4210_v47 = vld [vmem:[%s7900_s0 + $0xa0] sm:$0x3] }
   0xa   :  { %391 = vrot.lane.b32.xlu0 %v233_v20, %s4006_s15  ;;  %8201 = vst [vmem:[#allocation14_spill] sm:$0xff] %v4194_v41  ;;  %v4199_v44 = vsel %vm228_vm0, %v249_v37, %v250_v34  ;;  %v4215_v48 = vld [vmem:[%s7900_s0 + $0x90] sm:$0xff]  ;;  %v260_v50 = vrot.slane %v4205_v46, 1  ;;  %v262_v51 = vrot.slane %v4210_v47, 1  ;;  %v4238_v55 = vld [vmem:[%s7900_s0 + $0xb8] sm:$0x3] }
   0xb   :  { %8202 = vst [vmem:[#allocation15_spill] sm:$0xff] %v4199_v44  ;;  %v4222_v49 = vsel %vm228_vm0, %v255_v42, %v257_v43  ;;  %v4227_v52 = vsel %vm228_vm0, %v254_v45, %v255_v42  ;;  %v259_v53 = vrot.slane %v4215_v48, 1  ;;  %v4233_v54 = vld [vmem:[%s7900_s0 + $0xb0] sm:$0xff]  ;;  %v4243_v56 = vld [vmem:[%s7900_s0 + $0xa8] sm:$0xff]  ;;  %v267_v59 = vrot.slane %v4238_v55, 1  ;;  %v4271_v3 = vld [vmem:[%s7900_s0 + $0xc0] sm:$0xff] }
   0xc   :  { %8203 = vst [vmem:[#allocation16_spill] sm:$0xff] %v4222_v49  ;;  %8204 = vst [vmem:[#allocation17_spill] sm:$0xff] %v4227_v52  ;;  %v4250_v57 = vsel %vm228_vm0, %v260_v50, %v262_v51  ;;  %v265_v58 = vrot.slane %v4233_v54, 1  ;;  %v264_v61 = vrot.slane %v4243_v56, 1  ;;  %v4261_v62 = vld [vmem:[%s7900_s0 + $0xc8] sm:$0xff]  ;;  %v269_v13 = vrot.slane %v4271_v3, 1 }
   0xd   :  { %399 = vrot.lane.b32.xlu1 %v4138_v25, %s4006_s15  ;;  %8205 = vst [vmem:[#allocation18_spill] sm:$0xff] %v4250_v57  ;;  %v4255_v60 = vsel %vm228_vm0, %v259_v53, %v260_v50  ;;  %v4266_v63 = vld [vmem:[%s7900_s0 + $0xd0] sm:$0x3]  ;;  %v270_v6 = vrot.slane %v4261_v62, 1  ;;  %v4289_v16 = vld [vmem:[%s7900_s0 + $0xe0] sm:$0xff]  ;;  %v4299_v19 = vld [vmem:[%s7900_s0 + $0xd8] sm:$0xff] }
   0xe   :  { %397 = vrot.lane.b32.xlu0 %v4143_v28, %s4006_s15  ;;  %8206 = vst [vmem:[#allocation19_spill] sm:$0xff] %v4255_v60  ;;  %v4278_v4 = vsel %vm228_vm0, %v265_v58, %v267_v59  ;;  %v272_v8 = vrot.slane %v4266_v63, 1  ;;  %v4283_v9 = vsel %vm228_vm0, %v264_v61, %v265_v58  ;;  %v4294_v18 = vld [vmem:[%s7900_s0 + $0xe8] sm:$0x3]  ;;  %v275_v21 = vrot.slane %v4289_v16, 1  ;;  %v4317_v34 = vld [vmem:[%s7900_s0 + $0xf8] sm:$0xff] }
   0xf   :  { %8207 = vst [vmem:[#allocation20_spill] sm:$0xff] %v4278_v4  ;;  %8208 = vst [vmem:[#allocation21_spill] sm:$0xff] %v4283_v9  ;;  %v277_v26 = vrot.slane %v4294_v18, 1  ;;  %v4311_v27 = vsel %vm228_vm0, %v269_v13, %v270_v6  ;;  %v274_v29 = vrot.slane %v4299_v19, 1  ;;  %v4322_v35 = vld [vmem:[%s7900_s0 + $0x100] sm:$0x3] }
  0x10   :  { %v4306_v20 = vsel %vm228_vm0, %v270_v6, %v272_v8  ;;  %8210 = vst [vmem:[#allocation23_spill] sm:$0xff] %v4311_v27  ;;  %v4327_v37 = vld [vmem:[%s7900_s0 + $0xf0] sm:$0xff] }
  0x11   :  { %403 = vrot.lane.b32.xlu1 %v4166_v33, %s4006_s15  ;;  %8209 = vst [vmem:[#allocation22_spill] sm:$0xff] %v4306_v20 }
  0x12   :  { %401 = vrot.lane.b32.xlu0 %v4171_v36, %s4006_s15 }
  0x15   :  { %407 = vrot.lane.b32.xlu1 %v4194_v41, %s4006_s15 }
  0x16   :  { %405 = vrot.lane.b32.xlu0 %v4199_v44, %s4006_s15 }
  0x19   :  { %411 = vrot.lane.b32.xlu1 %v4222_v49, %s4006_s15 }
  0x1a   :  { %409 = vrot.lane.b32.xlu0 %v4227_v52, %s4006_s15 }
  0x1d   :  { %415 = vrot.lane.b32.xlu1 %v4250_v57, %s4006_s15 }
  0x1e   :  { %413 = vrot.lane.b32.xlu0 %v4255_v60, %s4006_s15 }
  0x21   :  { %419 = vrot.lane.b32.xlu1 %v4278_v4, %s4006_s15 }
  0x22   :  { %417 = vrot.lane.b32.xlu0 %v4283_v9, %s4006_s15 }
  0x25   :  { %423 = vrot.lane.b32.xlu1 %v4306_v20, %s4006_s15 }
  0x26   :  { %13 = vsyncpa [#allocation5], 0  ;;  %421 = vrot.lane.b32.xlu0 %v4311_v27, %s4006_s15  ;;  %v4334_v42 = vsel %vm228_vm0, %v275_v21, %v277_v26  ;;  %v280_v43 = vrot.slane %v4317_v34, 1  ;;  %v282_v45 = vrot.slane %v4322_v35, 1  ;;  %v4339_v50 = vsel %vm228_vm0, %v274_v29, %v275_v21  ;;  %v4345_v53 = vld [vmem:[%s7900_s0 + $0x110] sm:$0xff]  ;;  %v4355_v59 = vld [vmem:[%s7900_s0 + $0x108] sm:$0xff] }
  0x27   :  { %8211 = vst [vmem:[#allocation24_spill] sm:$0xff] %v4334_v42  ;;  %8212 = vst [vmem:[#allocation25_spill] sm:$0xff] %v4339_v50  ;;  %v279_v51 = vrot.slane %v4327_v37, 1  ;;  %v4350_v58 = vld [vmem:[%s7900_s0 + $0x118] sm:$0x3]  ;;  %v285_v6 = vrot.slane %v4345_v53, 1 }
  0x28   :  { %v4362_v61 = vsel %vm228_vm0, %v280_v43, %v282_v45  ;;  %v287_v8 = vrot.slane %v4350_v58, 1  ;;  %v284_v21 = vrot.slane %v4355_v59, 1  ;;  %v4373_v26 = vld [vmem:[%s7900_s0 + $0x128] sm:$0xff]  ;;  %v4378_v29 = vld [vmem:[%s7900_s0 + $0x130] sm:$0x3]  ;;  %v4383_v45 = vld [vmem:[%s7900_s0 + $0x120] sm:$0xff] }
  0x29   :  { %427 = vrot.lane.b32.xlu1 %v4334_v42, %s4006_s15  ;;  %8213 = vst [vmem:[#allocation26_spill] sm:$0xff] %v4362_v61  ;;  %v4367_v13 = vsel %vm228_vm0, %v279_v51, %v280_v43  ;;  %v290_v51 = vrot.slane %v4373_v26, 1  ;;  %v292_v42 = vrot.slane %v4378_v29, 1  ;;  %v289_v20 = vrot.slane %v4383_v45, 1  ;;  %v4401_v27 = vld [vmem:[%s7900_s0 + $0x140] sm:$0xff]  ;;  %v4429_v57 = vld [vmem:[%s7900_s0 + $0x158] sm:$0xff] }
  0x2a   :  { %425 = vrot.lane.b32.xlu0 %v4339_v50, %s4006_s15  ;;  %8214 = vst [vmem:[#allocation27_spill] sm:$0xff] %v4367_v13  ;;  %v4390_v43 = vsel %vm228_vm0, %v285_v6, %v287_v8  ;;  %v4395_v50 = vsel %vm228_vm0, %v284_v21, %v285_v6  ;;  %v4411_v8 = vld [vmem:[%s7900_s0 + $0x138] sm:$0xff]  ;;  %v295_v21 = vrot.slane %v4401_v27, 1  ;;  %v4457_v52 = vld [vmem:[%s7900_s0 + $0x170] sm:$0xff]  ;;  %vm581_vm1 = vcmask 1045504   ;;  %s4007_s29 = smov 8  }
  0x2b   :  { %8215 = vst [vmem:[#allocation28_spill] sm:$0xff] %v4390_v43  ;;  %8216 = vst [vmem:[#allocation29_spill] sm:$0xff] %v4395_v50  ;;  %v4418_v6 = vsel %vm228_vm0, %v290_v51, %v292_v42  ;;  %v4423_v4 = vsel %vm228_vm0, %v289_v20, %v290_v51  ;;  %v294_v9 = vrot.slane %v4411_v8, 1  ;;  %v4439_v42 = vld [vmem:[%s7900_s0 + $0x150] sm:$0xff]  ;;  %v300_v51 = vrot.slane %v4429_v57, 1  ;;  %v4485_v33 = vld [vmem:[%s7900_s0 + $0x1b8] sm:$0xff] }
  0x2c   :  { %8217 = vst [vmem:[#allocation30_spill] sm:$0xff] %v4418_v6  ;;  %8218 = vst [vmem:[#allocation31_spill] sm:$0xff] %v4423_v4  ;;  %v299_v49 = vrot.slane %v4439_v42, 1  ;;  %v4513_v28 = vld [vmem:[%s7900_s0 + $0x1d0] sm:$0xff]  ;;  %s4008_s7 = smov 12   ;;  %s4009_s13 = smov 16  }
  0x2d   :  { %431 = vrot.lane.b32.xlu1 %v4362_v61, %s4006_s15  ;;  %v4406_v61 = vld [vmem:[%s7900_s0 + $0x148] sm:$0x3]  ;;  %v4451_v60 = vsel %vm228_vm0, %v294_v9, %v295_v21  ;;  %8227 = vst [vmem:[#allocation40_spill] sm:$0xff] %v4513_v28  ;;  %s4011_s23 = smov 24   ;;  %vm2863_vm2 = vcmask 1043456   ;;  %s4012_s26 = smov 28  }
  0x2e   :  { %429 = vrot.lane.b32.xlu0 %v4367_v13, %s4006_s15  ;;  %v297_v13 = vrot.slane %v4406_v61, 1  ;;  %8220 = vst [vmem:[#allocation33_spill] sm:$0xff] %v4451_v60  ;;  %v4479_v41 = vsel %vm228_vm0, %v299_v49, %v300_v51  ;;  %vm2138_vm3 = vcmask 31744   ;;  %vm2203_vm4 = vcmask 64512  }
  0x2f   :  { %8222 = vst [vmem:[#allocation35_spill] sm:$0xff] %v4479_v41  ;;  %vm2268_vm5 = vcmask 97280   ;;  %vm2333_vm6 = vcmask 130048   ;;  %vm2398_vm7 = vcmask 162816   ;;  %vm2463_vm8 = vcmask 195584  }
  0x30   :  { %v4446_v20 = vsel %vm228_vm0, %v295_v21, %v297_v13  ;;  %v4467_v13 = vld [vmem:[%s7900_s0 + $0x168] sm:$0xff]  ;;  %v305_v21 = vrot.slane %v4457_v52, 1  ;;  %vm2528_vm9 = vcmask 228352   ;;  %vm2593_vm10 = vcmask 261120  }
  0x31   :  { %435 = vrot.lane.b32.xlu1 %v4390_v43, %s4006_s15  ;;  %v4434_v43 = vld [vmem:[%s7900_s0 + $0x160] sm:$0x3]  ;;  %8219 = vst [vmem:[#allocation32_spill] sm:$0xff] %v4446_v20  ;;  %v304_v44 = vrot.slane %v4467_v13, 1  ;;  %vm2670_vm11 = vcmask 293888   ;;  %vm4015_vm12 = vmmov 0  }
  0x32   :  { %433 = vrot.lane.b32.xlu0 %v4395_v50, %s4006_s15  ;;  %v302_v50 = vrot.slane %v4434_v43, 1  ;;  %vm3394_vm13 = vcmask 1041409  }
  0x33   :  { %v4507_v36 = vsel %vm228_vm0, %v304_v44, %v305_v21 }
  0x34   :  { %v4474_v9 = vsel %vm228_vm0, %v300_v51, %v302_v50  ;;  %v4495_v50 = vld [vmem:[%s7900_s0 + $0x1b0] sm:$0xff]  ;;  %v310_v51 = vrot.slane %v4485_v33, 1  ;;  %8226 = vst [vmem:[#allocation39_spill] sm:$0xff] %v4507_v36 }
  0x35   :  { %439 = vrot.lane.b32.xlu1 %v4418_v6, %s4006_s15  ;;  %v4462_v6 = vld [vmem:[%s7900_s0 + $0x178] sm:$0x3]  ;;  %8221 = vst [vmem:[#allocation34_spill] sm:$0xff] %v4474_v9  ;;  %8224 = vst [vmem:[#allocation37_spill] sm:$0xff] %v4495_v50  ;;  %v309_v25 = vrot.slane %v4495_v50, 1  ;;  %v4537_v50 = vld [vmem:[%s7900_s0 + $0x1e8] sm:$0xff] }
  0x36   :  { %437 = vrot.lane.b32.xlu0 %v4423_v4, %s4006_s15  ;;  %v307_v4 = vrot.slane %v4462_v6, 1  ;;  %8230 = vst [vmem:[#allocation43_spill] sm:$0xff] %v4537_v50 }
  0x37   :  { %v311_v12 = vsel %vm228_vm0, %v309_v25, %v310_v51 }
  0x38   :  { %v4502_v49 = vsel %vm228_vm0, %v305_v21, %v307_v4  ;;  %v4523_v4 = vld [vmem:[%s7900_s0 + $0x1c8] sm:$0xff]  ;;  %v315_v21 = vrot.slane %v4513_v28, 1  ;;  %v4563_v28 = vld [vmem:[%s7900_s0 + $0x200] sm:$0xff] }
  0x39   :  { %443 = vrot.lane.b32.xlu1 %v4446_v20, %s4006_s15  ;;  %v4490_v20 = vld [vmem:[%s7900_s0 + $0x1c0] sm:$0x3]  ;;  %8225 = vst [vmem:[#allocation38_spill] sm:$0xff] %v4502_v49  ;;  %8229 = vst [vmem:[#allocation42_spill] sm:$0xff] %v4523_v4  ;;  %v314_v17 = vrot.slane %v4523_v4, 1 }
  0x3a   :  { %441 = vrot.lane.b32.xlu0 %v4451_v60, %s4006_s15  ;;  %8223 = vst [vmem:[#allocation36_spill] sm:$0xff] %v4490_v20  ;;  %v312_v60 = vrot.slane %v4490_v20, 1  ;;  %8235 = vst [vmem:[#allocation48_spill] sm:$0xff] %v4563_v28 }
  0x3b   :  { %v4557_v4 = vsel %vm228_vm0, %v314_v17, %v315_v21 }
  0x3c   :  { %v313_v44 = vsel %vm228_vm0, %v310_v51, %v312_v60  ;;  %v4547_v60 = vld [vmem:[%s7900_s0 + $0x1e0] sm:$0xff]  ;;  %v320_v51 = vrot.slane %v4537_v50, 1  ;;  %8234 = vst [vmem:[#allocation47_spill] sm:$0xff] %v4557_v4  ;;  %v4591_v50 = vld [vmem:[%s7900_s0 + $0x218] sm:$0xff] }
  0x3d   :  { %447 = vrot.lane.b32.xlu1 %v4474_v9, %s4006_s15  ;;  %v4518_v9 = vld [vmem:[%s7900_s0 + $0x1d8] sm:$0x3]  ;;  %8232 = vst [vmem:[#allocation45_spill] sm:$0xff] %v4547_v60  ;;  %8240 = vst [vmem:[#allocation53_spill] sm:$0xff] %v4591_v50 }
  0x3e   :  { %445 = vrot.lane.b32.xlu0 %v4479_v41, %s4006_s15  ;;  %8228 = vst [vmem:[#allocation41_spill] sm:$0xff] %v4518_v9  ;;  %v317_v41 = vrot.slane %v4518_v9, 1  ;;  %v319_v9 = vrot.slane %v4547_v60, 1 }
  0x40   :  { %v4552_v25 = vsel %vm228_vm0, %v315_v21, %v317_v41  ;;  %v4573_v41 = vld [vmem:[%s7900_s0 + $0x1f8] sm:$0xff]  ;;  %v4585_v60 = vsel %vm228_vm0, %v319_v9, %v320_v51 }
  0x41   :  { %451 = vrot.lane.b32.xlu1 %v4502_v49, %s4006_s15  ;;  %v4542_v49 = vld [vmem:[%s7900_s0 + $0x1f0] sm:$0x3]  ;;  %8233 = vst [vmem:[#allocation46_spill] sm:$0xff] %v4552_v25  ;;  %8237 = vst [vmem:[#allocation50_spill] sm:$0xff] %v4573_v41 }
  0x42   :  { %449 = vrot.lane.b32.xlu0 %v4507_v36, %s4006_s15  ;;  %8231 = vst [vmem:[#allocation44_spill] sm:$0xff] %v4542_v49  ;;  %v322_v36 = vrot.slane %v4542_v49, 1  ;;  %8239 = vst [vmem:[#allocation52_spill] sm:$0xff] %v4585_v60  ;;  %v324_v49 = vrot.slane %v4573_v41, 1 }
  0x44   :  { %v4580_v17 = vsel %vm228_vm0, %v320_v51, %v322_v36  ;;  %v4601_v36 = vld [vmem:[%s7900_s0 + $0x210] sm:$0xff]  ;;  %v330_v51 = vrot.slane %v4591_v50, 1  ;;  %v4647_v50 = vld [vmem:[%s7900_s0 + $0x248] sm:$0xff] }
  0x45   :  { %455 = vrot.lane.b32.xlu1 %v313_v44, %s4006_s15  ;;  %8238 = vst [vmem:[#allocation51_spill] sm:$0xff] %v4580_v17  ;;  %v325_v44 = vrot.slane %v4563_v28, 1  ;;  %8242 = vst [vmem:[#allocation55_spill] sm:$0xff] %v4601_v36  ;;  %v4619_v28 = vld [vmem:[%s7900_s0 + $0x230] sm:$0xff] }
  0x46   :  { %453 = vrot.lane.b32.xlu0 %v311_v12, %s4006_s15  ;;  %v4568_v12 = vld [vmem:[%s7900_s0 + $0x208] sm:$0x3]  ;;  %8245 = vst [vmem:[#allocation58_spill] sm:$0xff] %v4619_v28  ;;  %8250 = vst [vmem:[#allocation63_spill] sm:$0xff] %v4647_v50 }
  0x47   :  { %8236 = vst [vmem:[#allocation49_spill] sm:$0xff] %v4568_v12  ;;  %v327_v21 = vrot.slane %v4568_v12, 1  ;;  %v4613_v41 = vsel %vm228_vm0, %v324_v49, %v325_v44  ;;  %v329_v12 = vrot.slane %v4601_v36, 1 }
  0x48   :  { %8244 = vst [vmem:[#allocation57_spill] sm:$0xff] %v4613_v41 }
  0x49   :  { %459 = vrot.lane.b32.xlu1 %v4552_v25, %s4006_s15  ;;  %v4596_v25 = vld [vmem:[%s7900_s0 + $0x220] sm:$0x3]  ;;  %v4608_v9 = vsel %vm228_vm0, %v325_v44, %v327_v21  ;;  %v4629_v21 = vld [vmem:[%s7900_s0 + $0x228] sm:$0xff]  ;;  %v335_v44 = vrot.slane %v4619_v28, 1  ;;  %v4641_v36 = vsel %vm228_vm0, %v329_v12, %v330_v51 }
  0x4a   :  { %457 = vrot.lane.b32.xlu0 %v4557_v4, %s4006_s15  ;;  %8241 = vst [vmem:[#allocation54_spill] sm:$0xff] %v4596_v25  ;;  %8243 = vst [vmem:[#allocation56_spill] sm:$0xff] %v4608_v9  ;;  %v332_v4 = vrot.slane %v4596_v25, 1  ;;  %v334_v25 = vrot.slane %v4629_v21, 1  ;;  %v4675_v28 = vld [vmem:[%s7900_s0 + $0x260] sm:$0xff] }
  0x4b   :  { %8247 = vst [vmem:[#allocation60_spill] sm:$0xff] %v4629_v21  ;;  %8249 = vst [vmem:[#allocation62_spill] sm:$0xff] %v4641_v36 }
  0x4c   :  { %v4636_v49 = vsel %vm228_vm0, %v330_v51, %v332_v4  ;;  %v4657_v4 = vld [vmem:[%s7900_s0 + $0x240] sm:$0xff]  ;;  %v340_v51 = vrot.slane %v4647_v50, 1  ;;  %v4669_v21 = vsel %vm228_vm0, %v334_v25, %v335_v44  ;;  %8255 = vst [vmem:[#allocation68_spill] sm:$0xff] %v4675_v28  ;;  %v4703_v50 = vld [vmem:[%s7900_s0 + $0x278] sm:$0xff] }
  0x4d   :  { %463 = vrot.lane.b32.xlu1 %v4580_v17, %s4006_s15  ;;  %v4624_v17 = vld [vmem:[%s7900_s0 + $0x238] sm:$0x3]  ;;  %8248 = vst [vmem:[#allocation61_spill] sm:$0xff] %v4636_v49  ;;  %8252 = vst [vmem:[#allocation65_spill] sm:$0xff] %v4657_v4 }
  0x4e   :  { %461 = vrot.lane.b32.xlu0 %v4585_v60, %s4006_s15  ;;  %8246 = vst [vmem:[#allocation59_spill] sm:$0xff] %v4624_v17  ;;  %v337_v60 = vrot.slane %v4624_v17, 1  ;;  %8254 = vst [vmem:[#allocation67_spill] sm:$0xff] %v4669_v21  ;;  %v339_v17 = vrot.slane %v4657_v4, 1 }
  0x4f   :  { %8260 = vst [vmem:[#allocation73_spill] sm:$0xff] %v4703_v50 }
  0x50   :  { %v4664_v12 = vsel %vm228_vm0, %v335_v44, %v337_v60  ;;  %v4685_v60 = vld [vmem:[%s7900_s0 + $0x258] sm:$0xff]  ;;  %v345_v44 = vrot.slane %v4675_v28, 1  ;;  %v4697_v4 = vsel %vm228_vm0, %v339_v17, %v340_v51  ;;  %v4731_v28 = vld [vmem:[%s7900_s0 + $0x290] sm:$0xff] }
  0x51   :  { %467 = vrot.lane.b32.xlu1 %v4608_v9, %s4006_s15  ;;  %v4652_v9 = vld [vmem:[%s7900_s0 + $0x250] sm:$0x3]  ;;  %8253 = vst [vmem:[#allocation66_spill] sm:$0xff] %v4664_v12  ;;  %8257 = vst [vmem:[#allocation70_spill] sm:$0xff] %v4685_v60 }
  0x52   :  { %465 = vrot.lane.b32.xlu0 %v4613_v41, %s4006_s15  ;;  %8251 = vst [vmem:[#allocation64_spill] sm:$0xff] %v4652_v9  ;;  %v342_v41 = vrot.slane %v4652_v9, 1  ;;  %8259 = vst [vmem:[#allocation72_spill] sm:$0xff] %v4697_v4  ;;  %v344_v9 = vrot.slane %v4685_v60, 1 }
  0x53   :  { %8265 = vst [vmem:[#allocation78_spill] sm:$0xff] %v4731_v28 }
  0x54   :  { %v4692_v25 = vsel %vm228_vm0, %v340_v51, %v342_v41  ;;  %v4713_v41 = vld [vmem:[%s7900_s0 + $0x270] sm:$0xff]  ;;  %v350_v51 = vrot.slane %v4703_v50, 1  ;;  %v4725_v60 = vsel %vm228_vm0, %v344_v9, %v345_v44  ;;  %v4759_v50 = vld [vmem:[%s7900_s0 + $0x2a8] sm:$0xff] }
  0x55   :  { %471 = vrot.lane.b32.xlu1 %v4636_v49, %s4006_s15  ;;  %v4680_v49 = vld [vmem:[%s7900_s0 + $0x268] sm:$0x3]  ;;  %8258 = vst [vmem:[#allocation71_spill] sm:$0xff] %v4692_v25  ;;  %8262 = vst [vmem:[#allocation75_spill] sm:$0xff] %v4713_v41 }
  0x56   :  { %469 = vrot.lane.b32.xlu0 %v4641_v36, %s4006_s15  ;;  %8256 = vst [vmem:[#allocation69_spill] sm:$0xff] %v4680_v49  ;;  %v347_v36 = vrot.slane %v4680_v49, 1  ;;  %8264 = vst [vmem:[#allocation77_spill] sm:$0xff] %v4725_v60  ;;  %v349_v49 = vrot.slane %v4713_v41, 1 }
  0x57   :  { %8270 = vst [vmem:[#allocation83_spill] sm:$0xff] %v4759_v50 }
  0x58   :  { %v4720_v17 = vsel %vm228_vm0, %v345_v44, %v347_v36  ;;  %v4741_v36 = vld [vmem:[%s7900_s0 + $0x288] sm:$0xff]  ;;  %v355_v44 = vrot.slane %v4731_v28, 1  ;;  %v4753_v41 = vsel %vm228_vm0, %v349_v49, %v350_v51  ;;  %v4787_v28 = vld [vmem:[%s7900_s0 + $0x2c0] sm:$0xff] }
  0x59   :  { %475 = vrot.lane.b32.xlu1 %v4664_v12, %s4006_s15  ;;  %v4708_v12 = vld [vmem:[%s7900_s0 + $0x280] sm:$0x3]  ;;  %8263 = vst [vmem:[#allocation76_spill] sm:$0xff] %v4720_v17  ;;  %8267 = vst [vmem:[#allocation80_spill] sm:$0xff] %v4741_v36 }
  0x5a   :  { %473 = vrot.lane.b32.xlu0 %v4669_v21, %s4006_s15  ;;  %8261 = vst [vmem:[#allocation74_spill] sm:$0xff] %v4708_v12  ;;  %v352_v21 = vrot.slane %v4708_v12, 1  ;;  %8269 = vst [vmem:[#allocation82_spill] sm:$0xff] %v4753_v41  ;;  %v354_v12 = vrot.slane %v4741_v36, 1 }
  0x5b   :  { %8275 = vst [vmem:[#allocation88_spill] sm:$0xff] %v4787_v28 }
  0x5c   :  { %v4748_v9 = vsel %vm228_vm0, %v350_v51, %v352_v21  ;;  %v4769_v21 = vld [vmem:[%s7900_s0 + $0x2a0] sm:$0xff]  ;;  %v360_v51 = vrot.slane %v4759_v50, 1  ;;  %v4781_v36 = vsel %vm228_vm0, %v354_v12, %v355_v44  ;;  %v4815_v50 = vld [vmem:[%s7900_s0 + $0x2d8] sm:$0xff] }
  0x5d   :  { %479 = vrot.lane.b32.xlu1 %v4692_v25, %s4006_s15  ;;  %v4736_v25 = vld [vmem:[%s7900_s0 + $0x298] sm:$0x3]  ;;  %8268 = vst [vmem:[#allocation81_spill] sm:$0xff] %v4748_v9  ;;  %8272 = vst [vmem:[#allocation85_spill] sm:$0xff] %v4769_v21 }
  0x5e   :  { %477 = vrot.lane.b32.xlu0 %v4697_v4, %s4006_s15  ;;  %8266 = vst [vmem:[#allocation79_spill] sm:$0xff] %v4736_v25  ;;  %v357_v4 = vrot.slane %v4736_v25, 1  ;;  %8274 = vst [vmem:[#allocation87_spill] sm:$0xff] %v4781_v36  ;;  %v359_v25 = vrot.slane %v4769_v21, 1 }
  0x5f   :  { %8280 = vst [vmem:[#allocation93_spill] sm:$0xff] %v4815_v50 }
  0x60   :  { %v4776_v49 = vsel %vm228_vm0, %v355_v44, %v357_v4  ;;  %v4797_v4 = vld [vmem:[%s7900_s0 + $0x2b8] sm:$0xff]  ;;  %v365_v44 = vrot.slane %v4787_v28, 1  ;;  %v4809_v21 = vsel %vm228_vm0, %v359_v25, %v360_v51  ;;  %v4843_v28 = vld [vmem:[%s7900_s0 + $0x2f0] sm:$0xff] }
  0x61   :  { %483 = vrot.lane.b32.xlu1 %v4720_v17, %s4006_s15  ;;  %v4764_v17 = vld [vmem:[%s7900_s0 + $0x2b0] sm:$0x3]  ;;  %8273 = vst [vmem:[#allocation86_spill] sm:$0xff] %v4776_v49  ;;  %8277 = vst [vmem:[#allocation90_spill] sm:$0xff] %v4797_v4 }
  0x62   :  { %481 = vrot.lane.b32.xlu0 %v4725_v60, %s4006_s15  ;;  %8271 = vst [vmem:[#allocation84_spill] sm:$0xff] %v4764_v17  ;;  %v362_v60 = vrot.slane %v4764_v17, 1  ;;  %8279 = vst [vmem:[#allocation92_spill] sm:$0xff] %v4809_v21  ;;  %v364_v17 = vrot.slane %v4797_v4, 1 }
  0x63   :  { %8285 = vst [vmem:[#allocation98_spill] sm:$0xff] %v4843_v28 }
  0x64   :  { %v4804_v12 = vsel %vm228_vm0, %v360_v51, %v362_v60  ;;  %v4825_v60 = vld [vmem:[%s7900_s0 + $0x2d0] sm:$0xff]  ;;  %v370_v51 = vrot.slane %v4815_v50, 1  ;;  %v4837_v4 = vsel %vm228_vm0, %v364_v17, %v365_v44  ;;  %v4871_v50 = vld [vmem:[%s7900_s0 + $0x308] sm:$0xff] }
  0x65   :  { %487 = vrot.lane.b32.xlu1 %v4748_v9, %s4006_s15  ;;  %v4792_v9 = vld [vmem:[%s7900_s0 + $0x2c8] sm:$0x3]  ;;  %8278 = vst [vmem:[#allocation91_spill] sm:$0xff] %v4804_v12  ;;  %8282 = vst [vmem:[#allocation95_spill] sm:$0xff] %v4825_v60 }
  0x66   :  { %485 = vrot.lane.b32.xlu0 %v4753_v41, %s4006_s15  ;;  %8276 = vst [vmem:[#allocation89_spill] sm:$0xff] %v4792_v9  ;;  %v367_v41 = vrot.slane %v4792_v9, 1  ;;  %8284 = vst [vmem:[#allocation97_spill] sm:$0xff] %v4837_v4  ;;  %v369_v9 = vrot.slane %v4825_v60, 1 }
  0x67   :  { %8290 = vst [vmem:[#allocation103_spill] sm:$0xff] %v4871_v50 }
  0x68   :  { %v4832_v25 = vsel %vm228_vm0, %v365_v44, %v367_v41  ;;  %v4853_v41 = vld [vmem:[%s7900_s0 + $0x2e8] sm:$0xff]  ;;  %v375_v44 = vrot.slane %v4843_v28, 1  ;;  %v4865_v60 = vsel %vm228_vm0, %v369_v9, %v370_v51 }
  0x69   :  { %491 = vrot.lane.b32.xlu1 %v4776_v49, %s4006_s15  ;;  %v4820_v49 = vld [vmem:[%s7900_s0 + $0x2e0] sm:$0x3]  ;;  %8283 = vst [vmem:[#allocation96_spill] sm:$0xff] %v4832_v25  ;;  %8287 = vst [vmem:[#allocation100_spill] sm:$0xff] %v4853_v41 }
  0x6a   :  { %489 = vrot.lane.b32.xlu0 %v4781_v36, %s4006_s15  ;;  %8281 = vst [vmem:[#allocation94_spill] sm:$0xff] %v4820_v49  ;;  %v372_v36 = vrot.slane %v4820_v49, 1  ;;  %8289 = vst [vmem:[#allocation102_spill] sm:$0xff] %v4865_v60  ;;  %v374_v49 = vrot.slane %v4853_v41, 1 }
  0x6c   :  { %v4860_v17 = vsel %vm228_vm0, %v370_v51, %v372_v36  ;;  %v4881_v36 = vld [vmem:[%s7900_s0 + $0x300] sm:$0xff]  ;;  %v380_v51 = vrot.slane %v4871_v50, 1 }
  0x6d   :  { %495 = vrot.lane.b32.xlu1 %v4804_v12, %s4006_s15  ;;  %v4848_v12 = vld [vmem:[%s7900_s0 + $0x2f8] sm:$0x3]  ;;  %8288 = vst [vmem:[#allocation101_spill] sm:$0xff] %v4860_v17  ;;  %8292 = vst [vmem:[#allocation105_spill] sm:$0xff] %v4881_v36  ;;  %v379_v28 = vrot.slane %v4881_v36, 1 }
  0x6e   :  { %493 = vrot.lane.b32.xlu0 %v4809_v21, %s4006_s15  ;;  %8286 = vst [vmem:[#allocation99_spill] sm:$0xff] %v4848_v12  ;;  %v377_v21 = vrot.slane %v4848_v12, 1  ;;  %v4895_v12 = vsel %vm228_vm0, %v374_v49, %v375_v44 }
  0x6f   :  { %8295 = vst [vmem:[#allocation108_spill] sm:$0xff] %v4895_v12 }
  0x70   :  { %v4888_v9 = vsel %vm228_vm0, %v375_v44, %v377_v21  ;;  %v4906_v21 = vld [vmem:[%s7900_s0 + $0x328] sm:$0x3] }
  0x71   :  { %499 = vrot.lane.b32.xlu1 %v4832_v25, %s4006_s15  ;;  %v4876_v25 = vld [vmem:[%s7900_s0 + $0x310] sm:$0x3]  ;;  %8293 = vst [vmem:[#allocation106_spill] sm:$0xff] %v4888_v9  ;;  %v387_v36 = vrot.slane %v4906_v21, 1 }
  0x72   :  { %497 = vrot.lane.b32.xlu0 %v4837_v4, %s4006_s15  ;;  %8291 = vst [vmem:[#allocation104_spill] sm:$0xff] %v4876_v25  ;;  %v382_v4 = vrot.slane %v4876_v25, 1 }
  0x74   :  { %v4920_v49 = vsel %vm228_vm0, %v380_v51, %v382_v4 }
  0x75   :  { %503 = vrot.lane.b32.xlu1 %v4860_v17, %s4006_s15  ;;  %v4901_v17 = vld [vmem:[%s7900_s0 + $0x320] sm:$0xff]  ;;  %8297 = vst [vmem:[#allocation110_spill] sm:$0xff] %v4920_v49 }
  0x76   :  { %501 = vrot.lane.b32.xlu0 %v4865_v60, %s4006_s15  ;;  %v385_v44 = vrot.slane %v4901_v17, 1 }
  0x77   :  { %v4892_v41 = vpop.permute.xlu1 %393 }
  0x78   :  { %8294 = vst [vmem:[#allocation107_spill] sm:$0xff] %v4892_v41  ;;  %v4908_v60 = vpop.permute.xlu0 %389  ;;  %v4913_v41 = vld [vmem:[%s7900_s0 + $0x318] sm:$0xff]  ;;  %v4937_v4 = vsel %vm228_vm0, %v385_v44, %v387_v36  ;;  %v590_v36 = vrot.slane %v4080_v7, 2  ;;  %v595_v7 = vrot.slane %v4101_v14, 2  ;;  %v600_v14 = vrot.slane %v4127_v23, 2 }
  0x79   :  { %8296 = vst [vmem:[#allocation109_spill] sm:$0xff] %v4908_v60  ;;  %507 = vrot.lane.b32.xlu1 %v4888_v9, %s4006_s15  ;;  %v4927_v60 = vsel %vm228_vm0, %v379_v28, %v380_v51  ;;  %v384_v50 = vrot.slane %v4913_v41, 1  ;;  %8301 = vst [vmem:[#allocation114_spill] sm:$0xff] %v4937_v4  ;;  %v583_v9 = vrot.slane %v4074_v5, 2  ;;  %v582_v51 = vrot.slane %v4067_v2, 2 }
  0x7a   :  { %505 = vrot.lane.b32.xlu0 %v4895_v12, %s4006_s15  ;;  %8299 = vst [vmem:[#allocation112_spill] sm:$0xff] %v4927_v60  ;;  %v585_v12 = vrot.slane %v4087_v10, 2  ;;  %v588_v10 = vrot.slane %v4062_v1, 2  ;;  %v587_v2 = vrot.slane %v4057_v0, 2  ;;  %v593_v1 = vrot.slane %v4092_v11, 2 }
  0x7b   :  { %v4924_v25 = vpop.permute.xlu1 %395  ;;  %v4944_v28 = vsel %vm228_vm0, %v384_v50, %v385_v44  ;;  %v584_v50 = vsel %vm581_vm1, %v582_v51, %v583_v9  ;;  %v592_v0 = vrot.slane %v4106_v15, 2  ;;  %v598_v11 = vrot.slane %v4122_v22, 2 }
  0x7c   :  { %8298 = vst [vmem:[#allocation111_spill] sm:$0xff] %v4924_v25  ;;  %v4930_v20 = vpop.permute.xlu0 %391  ;;  %8303 = vst [vmem:[#allocation116_spill] sm:$0xff] %v4944_v28  ;;  %v586_v5 = vsel %vm581_vm1, %v583_v9, %v585_v12  ;;  %v4972_v9 = vsel %vm581_vm1, %v587_v2, %v588_v10  ;;  %v597_v15 = vrot.slane %v4132_v24, 2  ;;  %v603_v22 = vrot.slane %v4149_v30, 2 }
  0x7d   :  { %8300 = vst [vmem:[#allocation113_spill] sm:$0xff] %v4930_v20  ;;  %511 = vrot.lane.b32.xlu1 %v4920_v49, %s4006_s15  ;;  %v4999_v2 = vsel %vm581_vm1, %v598_v11, %v600_v14  ;;  %v605_v23 = vrot.slane %v4154_v31, 2  ;;  %v602_v24 = vrot.slane %v4159_v32, 2  ;;  %v608_v30 = vrot.slane %v4177_v38, 2 }
  0x7e   :  { %509 = vrot.lane.b32.xlu0 %v4927_v60, %s4006_s15  ;;  %v610_v31 = vrot.slane %v4182_v39, 2  ;;  %v607_v32 = vrot.slane %v4187_v40, 2  ;;  %v613_v38 = vrot.slane %v4205_v46, 2  ;;  %v615_v39 = vrot.slane %v4210_v47, 2 }
  0x7f   :  { %v4941_v25 = vpop.permute.xlu1 %399  ;;  %v5016_v14 = vsel %vm581_vm1, %v603_v22, %v605_v23  ;;  %v612_v40 = vrot.slane %v4215_v48, 2  ;;  %v618_v46 = vrot.slane %v4233_v54, 2  ;;  %v620_v47 = vrot.slane %v4238_v55, 2 }
  0x80   :  { %8302 = vst [vmem:[#allocation115_spill] sm:$0xff] %v4941_v25  ;;  %v4947_v20 = vpop.permute.xlu0 %397  ;;  %v5033_v23 = vsel %vm581_vm1, %v608_v30, %v610_v31  ;;  %v5050_v31 = vsel %vm581_vm1, %v613_v38, %v615_v39  ;;  %v617_v48 = vrot.slane %v4243_v56, 2  ;;  %v623_v54 = vrot.slane %v4261_v62, 2  ;;  %v5586_v25 = vld [vmem:[%s7900_s0 + $0x90] sm:$0xff] }
  0x81   :  { %8304 = vst [vmem:[#allocation117_spill] sm:$0xff] %v4947_v20  ;;  %515 = vrot.lane.b32.xlu1 %v4937_v4, %s4006_s15  ;;  %v4965_v4 = vsel %vm581_vm1, %v588_v10, %v590_v36  ;;  %v4989_v10 = vsel %vm581_vm1, %v592_v0, %v593_v1  ;;  %v5067_v39 = vsel %vm581_vm1, %v618_v46, %v620_v47  ;;  %v625_v55 = vrot.slane %v4266_v63, 2 }
  0x82   :  { %513 = vrot.lane.b32.xlu0 %v4944_v28, %s4006_s15  ;;  %v622_v56 = vrot.slane %v4271_v3, 2  ;;  %v628_v62 = vrot.slane %v4289_v16, 2  ;;  %v630_v63 = vrot.slane %v4294_v18, 2  ;;  %v627_v3 = vrot.slane %v4299_v19, 2 }
  0x83   :  { %v4956_v49 = vpop.permute.xlu1 %403  ;;  %v5084_v47 = vsel %vm581_vm1, %v623_v54, %v625_v55  ;;  %v633_v16 = vrot.slane %v4317_v34, 2  ;;  %v635_v18 = vrot.slane %v4322_v35, 2  ;;  %v632_v19 = vrot.slane %v4327_v37, 2 }
  0x84   :  { %8305 = vst [vmem:[#allocation118_spill] sm:$0xff] %v4956_v49  ;;  %v4960_v44 = vpop.permute.xlu0 %401  ;;  %8321 = vst [vmem:[#allocation134_spill] sm:$0xff] %v5084_v47  ;;  %v5101_v55 = vsel %vm581_vm1, %v628_v62, %v630_v63  ;;  %v638_v34 = vrot.slane %v4345_v53, 2  ;;  %v640_v35 = vrot.slane %v4350_v58, 2  ;;  %v637_v37 = vrot.slane %v4355_v59, 2 }
  0x85   :  { %8306 = vst [vmem:[#allocation119_spill] sm:$0xff] %v4960_v44  ;;  %744 = vrot.lane.b32.xlu1 %v586_v5, %s4007_s29  ;;  %v4982_v5 = vsel %vm581_vm1, %v593_v1, %v595_v7  ;;  %v5006_v1 = vsel %vm581_vm1, %v597_v15, %v598_v11  ;;  %v5023_v11 = vsel %vm581_vm1, %v602_v24, %v603_v22  ;;  %8324 = vst [vmem:[#allocation137_spill] sm:$0xff] %v5101_v55 }
  0x86   :  { %742 = vrot.lane.b32.xlu0 %v584_v50, %s4007_s29  ;;  %v5040_v22 = vsel %vm581_vm1, %v607_v32, %v608_v30  ;;  %v5057_v30 = vsel %vm581_vm1, %v612_v40, %v613_v38  ;;  %v5074_v38 = vsel %vm581_vm1, %v617_v48, %v618_v46  ;;  %v5091_v46 = vsel %vm581_vm1, %v622_v56, %v623_v54 }
  0x87   :  { %v4969_v12 = vpop.permute.xlu1 %407  ;;  %v5108_v54 = vsel %vm581_vm1, %v627_v3, %v628_v62  ;;  %v5118_v63 = vsel %vm581_vm1, %v633_v16, %v635_v18  ;;  %v5125_v62 = vsel %vm581_vm1, %v632_v19, %v633_v16  ;;  %v5135_v18 = vsel %vm581_vm1, %v638_v34, %v640_v35 }
  0x88   :  { %8307 = vst [vmem:[#allocation120_spill] sm:$0xff] %v4969_v12  ;;  %v4975_v51 = vpop.permute.xlu0 %405  ;;  %8326 = vst [vmem:[#allocation139_spill] sm:$0xff] %v5108_v54  ;;  %v643_v53 = vrot.slane %v4373_v26, 2  ;;  %v645_v58 = vrot.slane %v4378_v29, 2  ;;  %v5142_v16 = vsel %vm581_vm1, %v637_v37, %v638_v34  ;;  %v642_v59 = vrot.slane %v4383_v45, 2 }
  0x89   :  { %8308 = vst [vmem:[#allocation121_spill] sm:$0xff] %v4975_v51  ;;  %748 = vrot.lane.b32.xlu1 %v4965_v4, %s4007_s29  ;;  %8328 = vst [vmem:[#allocation141_spill] sm:$0xff] %v5118_v63  ;;  %v648_v26 = vrot.slane %v4401_v27, 2  ;;  %v650_v29 = vrot.slane %v4406_v61, 2  ;;  %v647_v45 = vrot.slane %v4411_v8, 2  ;;  %v653_v27 = vrot.slane %v4429_v57, 2 }
  0x8a   :  { %746 = vrot.lane.b32.xlu0 %v4972_v9, %s4007_s29  ;;  %8330 = vst [vmem:[#allocation143_spill] sm:$0xff] %v5125_v62  ;;  %8332 = vst [vmem:[#allocation145_spill] sm:$0xff] %v5135_v18  ;;  %v5152_v35 = vsel %vm581_vm1, %v643_v53, %v645_v58  ;;  %v5159_v34 = vsel %vm581_vm1, %v642_v59, %v643_v53  ;;  %v655_v61 = vrot.slane %v4434_v43, 2  ;;  %v652_v8 = vrot.slane %v4439_v42, 2 }
  0x8b   :  { %v4986_v36 = vpop.permute.xlu1 %411  ;;  %8334 = vst [vmem:[#allocation147_spill] sm:$0xff] %v5142_v16  ;;  %8336 = vst [vmem:[#allocation149_spill] sm:$0xff] %v5152_v35  ;;  %v5169_v58 = vsel %vm581_vm1, %v648_v26, %v650_v29  ;;  %v5176_v53 = vsel %vm581_vm1, %v647_v45, %v648_v26  ;;  %v658_v57 = vrot.slane %v4457_v52, 2  ;;  %v660_v43 = vrot.slane %v4462_v6, 2  ;;  %v8349_v6 = vld [vmem:[#allocation36_spill] sm:$0xff] }
  0x8c   :  { %8309 = vst [vmem:[#allocation122_spill] sm:$0xff] %v4986_v36  ;;  %v4992_v50 = vpop.permute.xlu0 %409  ;;  %8338 = vst [vmem:[#allocation151_spill] sm:$0xff] %v5159_v34  ;;  %v5186_v29 = vsel %vm581_vm1, %v653_v27, %v655_v61  ;;  %v5193_v26 = vsel %vm581_vm1, %v652_v8, %v653_v27  ;;  %v657_v42 = vrot.slane %v4467_v13, 2  ;;  %v663_v52 = vrot.slane %v4485_v33, 2  ;;  %v8352_v13 = vld [vmem:[#allocation37_spill] sm:$0xff]  ;;  %v8354_v33 = vld [vmem:[#allocation40_spill] sm:$0xff] }
  0x8d   :  { %8310 = vst [vmem:[#allocation123_spill] sm:$0xff] %v4992_v50  ;;  %752 = vrot.lane.b32.xlu1 %v4982_v5, %s4007_s29  ;;  %8340 = vst [vmem:[#allocation153_spill] sm:$0xff] %v5169_v58  ;;  %v5203_v61 = vsel %vm581_vm1, %v658_v57, %v660_v43  ;;  %v662_v8 = vrot.slane %v8352_v13, 2 }
  0x8e   :  { %750 = vrot.lane.b32.xlu0 %v4989_v10, %s4007_s29  ;;  %8342 = vst [vmem:[#allocation155_spill] sm:$0xff] %v5176_v53  ;;  %8344 = vst [vmem:[#allocation157_spill] sm:$0xff] %v5186_v29  ;;  %v5210_v27 = vsel %vm581_vm1, %v657_v42, %v658_v57  ;;  %v8357_v42 = vld [vmem:[#allocation42_spill] sm:$0xff] }
  0x8f   :  { %v5003_v7 = vpop.permute.xlu1 %415  ;;  %8346 = vst [vmem:[#allocation159_spill] sm:$0xff] %v5193_v26  ;;  %8348 = vst [vmem:[#allocation161_spill] sm:$0xff] %v5203_v61  ;;  %v664_v57 = vsel %vm581_vm1, %v662_v8, %v663_v52  ;;  %v667_v13 = vrot.slane %v8357_v42, 2 }
  0x90   :  { %8311 = vst [vmem:[#allocation124_spill] sm:$0xff] %v5003_v7  ;;  %v5009_v0 = vpop.permute.xlu0 %413  ;;  %8351 = vst [vmem:[#allocation162_spill] sm:$0xff] %v5210_v27 }
  0x91   :  { %8312 = vst [vmem:[#allocation125_spill] sm:$0xff] %v5009_v0  ;;  %756 = vrot.lane.b32.xlu1 %v4999_v2, %s4007_s29 }
  0x92   :  { %754 = vrot.lane.b32.xlu0 %v5006_v1, %s4007_s29 }
  0x93   :  { %v5020_v28 = vpop.permute.xlu1 %419 }
  0x94   :  { %8313 = vst [vmem:[#allocation126_spill] sm:$0xff] %v5020_v28  ;;  %v5026_v15 = vpop.permute.xlu0 %417 }
  0x95   :  { %8314 = vst [vmem:[#allocation127_spill] sm:$0xff] %v5026_v15  ;;  %760 = vrot.lane.b32.xlu1 %v5016_v14, %s4007_s29 }
  0x96   :  { %758 = vrot.lane.b32.xlu0 %v5023_v11, %s4007_s29 }
  0x97   :  { %v5037_v60 = vpop.permute.xlu1 %423 }
  0x98   :  { %8315 = vst [vmem:[#allocation128_spill] sm:$0xff] %v5037_v60  ;;  %v5043_v24 = vpop.permute.xlu0 %421 }
  0x99   :  { %8316 = vst [vmem:[#allocation129_spill] sm:$0xff] %v5043_v24  ;;  %764 = vrot.lane.b32.xlu1 %v5033_v23, %s4007_s29 }
  0x9a   :  { %762 = vrot.lane.b32.xlu0 %v5040_v22, %s4007_s29 }
  0x9b   :  { %v5054_v60 = vpop.permute.xlu1 %427 }
  0x9c   :  { %8317 = vst [vmem:[#allocation130_spill] sm:$0xff] %v5054_v60  ;;  %v5060_v32 = vpop.permute.xlu0 %425 }
  0x9d   :  { %8318 = vst [vmem:[#allocation131_spill] sm:$0xff] %v5060_v32  ;;  %768 = vrot.lane.b32.xlu1 %v5050_v31, %s4007_s29 }
  0x9e   :  { %766 = vrot.lane.b32.xlu0 %v5057_v30, %s4007_s29 }
  0x9f   :  { %v5071_v60 = vpop.permute.xlu1 %431 }
  0xa0   :  { %8319 = vst [vmem:[#allocation132_spill] sm:$0xff] %v5071_v60  ;;  %v5077_v40 = vpop.permute.xlu0 %429 }
  0xa1   :  { %8320 = vst [vmem:[#allocation133_spill] sm:$0xff] %v5077_v40  ;;  %772 = vrot.lane.b32.xlu1 %v5067_v39, %s4007_s29 }
  0xa2   :  { %770 = vrot.lane.b32.xlu0 %v5074_v38, %s4007_s29 }
  0xa3   :  { %v5088_v60 = vpop.permute.xlu1 %435 }
  0xa4   :  { %8322 = vst [vmem:[#allocation135_spill] sm:$0xff] %v5088_v60  ;;  %v5094_v48 = vpop.permute.xlu0 %433 }
  0xa5   :  { %8323 = vst [vmem:[#allocation136_spill] sm:$0xff] %v5094_v48  ;;  %776 = vrot.lane.b32.xlu1 %v5084_v47, %s4007_s29 }
  0xa6   :  { %774 = vrot.lane.b32.xlu0 %v5091_v46, %s4007_s29 }
  0xa7   :  { %v5105_v60 = vpop.permute.xlu1 %439 }
  0xa8   :  { %8325 = vst [vmem:[#allocation138_spill] sm:$0xff] %v5105_v60  ;;  %v5111_v56 = vpop.permute.xlu0 %437 }
  0xa9   :  { %8327 = vst [vmem:[#allocation140_spill] sm:$0xff] %v5111_v56  ;;  %780 = vrot.lane.b32.xlu1 %v5101_v55, %s4007_s29  ;;  %v5604_v55 = vld [vmem:[%s7900_s0 + $0xa8] sm:$0xff] }
  0xaa   :  { %778 = vrot.lane.b32.xlu0 %v5108_v54, %s4007_s29  ;;  %v5622_v54 = vld [vmem:[%s7900_s0 + $0xc0] sm:$0xff] }
  0xab   :  { %v5122_v60 = vpop.permute.xlu1 %443 }
  0xac   :  { %8329 = vst [vmem:[#allocation142_spill] sm:$0xff] %v5122_v60  ;;  %v5128_v3 = vpop.permute.xlu0 %441 }
  0xad   :  { %8331 = vst [vmem:[#allocation144_spill] sm:$0xff] %v5128_v3  ;;  %784 = vrot.lane.b32.xlu1 %v5118_v63, %s4007_s29  ;;  %v5550_v63 = vld [vmem:[%s7900_s0 + $0x60] sm:$0xff] }
  0xae   :  { %782 = vrot.lane.b32.xlu0 %v5125_v62, %s4007_s29  ;;  %v5568_v62 = vld [vmem:[%s7900_s0 + $0x78] sm:$0xff] }
  0xaf   :  { %v5139_v60 = vpop.permute.xlu1 %447 }
  0xb0   :  { %8333 = vst [vmem:[#allocation146_spill] sm:$0xff] %v5139_v60  ;;  %v5145_v19 = vpop.permute.xlu0 %445 }
  0xb1   :  { %8335 = vst [vmem:[#allocation148_spill] sm:$0xff] %v5145_v19  ;;  %788 = vrot.lane.b32.xlu1 %v5135_v18, %s4007_s29 }
  0xb2   :  { %786 = vrot.lane.b32.xlu0 %v5142_v16, %s4007_s29 }
  0xb3   :  { %v5156_v60 = vpop.permute.xlu1 %451 }
  0xb4   :  { %8337 = vst [vmem:[#allocation150_spill] sm:$0xff] %v5156_v60  ;;  %v5162_v37 = vpop.permute.xlu0 %449 }
  0xb5   :  { %8339 = vst [vmem:[#allocation152_spill] sm:$0xff] %v5162_v37  ;;  %792 = vrot.lane.b32.xlu1 %v5152_v35, %s4007_s29  ;;  %v668_v37 = vrot.slane %v8354_v33, 2  ;;  %v8361_v33 = vld [vmem:[#allocation44_spill] sm:$0xff] }
  0xb6   :  { %790 = vrot.lane.b32.xlu0 %v5159_v34, %s4007_s29  ;;  %v675_v48 = vrot.slane %v8361_v33, 2 }
  0xb7   :  { %v5173_v60 = vpop.permute.xlu1 %455 }
  0xb8   :  { %8341 = vst [vmem:[#allocation154_spill] sm:$0xff] %v5173_v60  ;;  %v5179_v59 = vpop.permute.xlu0 %453 }
  0xb9   :  { %8343 = vst [vmem:[#allocation156_spill] sm:$0xff] %v5179_v59  ;;  %796 = vrot.lane.b32.xlu1 %v5169_v58, %s4007_s29 }
  0xba   :  { %794 = vrot.lane.b32.xlu0 %v5176_v53, %s4007_s29 }
  0xbb   :  { %v5190_v60 = vpop.permute.xlu1 %459 }
  0xbc   :  { %8345 = vst [vmem:[#allocation158_spill] sm:$0xff] %v5190_v60  ;;  %v5196_v45 = vpop.permute.xlu0 %457  ;;  %v665_v60 = vrot.slane %v8349_v6, 2  ;;  %v8355_v6 = vld [vmem:[#allocation41_spill] sm:$0xff] }
  0xbd   :  { %8347 = vst [vmem:[#allocation160_spill] sm:$0xff] %v5196_v45  ;;  %800 = vrot.lane.b32.xlu1 %v5186_v29, %s4007_s29  ;;  %v670_v19 = vrot.slane %v8355_v6, 2 }
  0xbe   :  { %798 = vrot.lane.b32.xlu0 %v5193_v26, %s4007_s29  ;;  %v666_v43 = vsel %vm581_vm1, %v663_v52, %v665_v60  ;;  %v8360_v60 = vld [vmem:[#allocation43_spill] sm:$0xff]  ;;  %v8364_v52 = vld [vmem:[#allocation45_spill] sm:$0xff] }
  0xbf   :  { %v5207_v59 = vpop.permute.xlu1 %463  ;;  %v673_v56 = vrot.slane %v8360_v60, 2  ;;  %v672_v8 = vrot.slane %v8364_v52, 2  ;;  %v8368_v60 = vld [vmem:[#allocation49_spill] sm:$0xff] }
  0xc0   :  { %8350 = vst [vmem:[#allocation36_spill] sm:$0xff] %v5207_v59  ;;  %v5213_v45 = vpop.permute.xlu0 %461  ;;  %v680_v33 = vrot.slane %v8368_v60, 2 }
  0xc1   :  { %8353 = vst [vmem:[#allocation37_spill] sm:$0xff] %v5213_v45  ;;  %804 = vrot.lane.b32.xlu1 %v5203_v61, %s4007_s29  ;;  %v5231_v45 = vsel %vm581_vm1, %v668_v37, %v670_v19  ;;  %v5248_v19 = vsel %vm581_vm1, %v673_v56, %v675_v48 }
  0xc2   :  { %802 = vrot.lane.b32.xlu0 %v5210_v27, %s4007_s29  ;;  %8359 = vst [vmem:[#allocation42_spill] sm:$0xff] %v5231_v45  ;;  %8366 = vst [vmem:[#allocation163_spill] sm:$0xff] %v5248_v19 }
  0xc3   :  { %v5222_v59 = vpop.permute.xlu1 %467 }
  0xc4   :  { %8356 = vst [vmem:[#allocation40_spill] sm:$0xff] %v5222_v59  ;;  %v5226_v3 = vpop.permute.xlu0 %465  ;;  %v5238_v59 = vsel %vm581_vm1, %v667_v13, %v668_v37  ;;  %v5255_v37 = vsel %vm581_vm1, %v672_v8, %v673_v56  ;;  %v8371_v13 = vld [vmem:[#allocation50_spill] sm:$0xff]  ;;  %v8378_v8 = vld [vmem:[#allocation55_spill] sm:$0xff] }
  0xc5   :  { %8358 = vst [vmem:[#allocation41_spill] sm:$0xff] %v5226_v3  ;;  %808 = vrot.lane.b32.xlu1 %v666_v43, %s4007_s29  ;;  %8363 = vst [vmem:[#allocation44_spill] sm:$0xff] %v5238_v59  ;;  %v8367_v43 = vld [vmem:[#allocation48_spill] sm:$0xff]  ;;  %v677_v52 = vrot.slane %v8371_v13, 2  ;;  %v8374_v3 = vld [vmem:[#allocation53_spill] sm:$0xff] }
  0xc6   :  { %806 = vrot.lane.b32.xlu0 %v664_v57, %s4007_s29  ;;  %v678_v57 = vrot.slane %v8367_v43, 2  ;;  %8370 = vst [vmem:[#allocation49_spill] sm:$0xff] %v5255_v37  ;;  %v683_v60 = vrot.slane %v8374_v3, 2 }
  0xc7   :  { %v5235_v6 = vpop.permute.xlu1 %471 }
  0xc8   :  { %8362 = vst [vmem:[#allocation43_spill] sm:$0xff] %v5235_v6  ;;  %v5241_v42 = vpop.permute.xlu0 %469  ;;  %v5265_v48 = vsel %vm581_vm1, %v678_v57, %v680_v33  ;;  %v5272_v56 = vsel %vm581_vm1, %v677_v52, %v678_v57  ;;  %v8385_v52 = vld [vmem:[#allocation60_spill] sm:$0xff] }
  0xc9   :  { %8365 = vst [vmem:[#allocation45_spill] sm:$0xff] %v5241_v42  ;;  %812 = vrot.lane.b32.xlu1 %v5231_v45, %s4007_s29  ;;  %8373 = vst [vmem:[#allocation164_spill] sm:$0xff] %v5265_v48  ;;  %v8375_v45 = vld [vmem:[#allocation54_spill] sm:$0xff] }
  0xca   :  { %810 = vrot.lane.b32.xlu0 %v5238_v59, %s4007_s29  ;;  %8377 = vst [vmem:[#allocation54_spill] sm:$0xff] %v5272_v56 }
  0xcb   :  { %v5252_v6 = vpop.permute.xlu1 %475 }
  0xcc   :  { %8369 = vst [vmem:[#allocation48_spill] sm:$0xff] %v5252_v6  ;;  %v5258_v42 = vpop.permute.xlu0 %473  ;;  %v685_v6 = vrot.slane %v8375_v45, 2 }
  0xcd   :  { %8372 = vst [vmem:[#allocation50_spill] sm:$0xff] %v5258_v42  ;;  %816 = vrot.lane.b32.xlu1 %v5248_v19, %s4007_s29  ;;  %v682_v42 = vrot.slane %v8378_v8, 2  ;;  %v8381_v19 = vld [vmem:[#allocation58_spill] sm:$0xff] }
  0xce   :  { %814 = vrot.lane.b32.xlu0 %v5255_v37, %s4007_s29  ;;  %v5282_v33 = vsel %vm581_vm1, %v683_v60, %v685_v6  ;;  %v688_v45 = vrot.slane %v8381_v19, 2  ;;  %v8382_v37 = vld [vmem:[#allocation59_spill] sm:$0xff] }
  0xcf   :  { %v5269_v40 = vpop.permute.xlu1 %479  ;;  %8380 = vst [vmem:[#allocation165_spill] sm:$0xff] %v5282_v33  ;;  %v5289_v57 = vsel %vm581_vm1, %v682_v42, %v683_v60  ;;  %v8392_v60 = vld [vmem:[#allocation65_spill] sm:$0xff] }
  0xd0   :  { %8376 = vst [vmem:[#allocation53_spill] sm:$0xff] %v5269_v40  ;;  %v5275_v59 = vpop.permute.xlu0 %477  ;;  %v690_v40 = vrot.slane %v8382_v37, 2  ;;  %8384 = vst [vmem:[#allocation59_spill] sm:$0xff] %v5289_v57 }
  0xd1   :  { %8379 = vst [vmem:[#allocation55_spill] sm:$0xff] %v5275_v59  ;;  %820 = vrot.lane.b32.xlu1 %v5265_v48, %s4007_s29  ;;  %v687_v59 = vrot.slane %v8385_v52, 2  ;;  %v8388_v48 = vld [vmem:[#allocation63_spill] sm:$0xff] }
  0xd2   :  { %818 = vrot.lane.b32.xlu0 %v5272_v56, %s4007_s29  ;;  %v5299_v6 = vsel %vm581_vm1, %v688_v45, %v690_v40  ;;  %v693_v37 = vrot.slane %v8388_v48, 2  ;;  %v8389_v56 = vld [vmem:[#allocation64_spill] sm:$0xff] }
  0xd3   :  { %v5286_v32 = vpop.permute.xlu1 %483  ;;  %8387 = vst [vmem:[#allocation166_spill] sm:$0xff] %v5299_v6  ;;  %v5306_v42 = vsel %vm581_vm1, %v687_v59, %v688_v45  ;;  %v8399_v45 = vld [vmem:[#allocation70_spill] sm:$0xff] }
  0xd4   :  { %8383 = vst [vmem:[#allocation58_spill] sm:$0xff] %v5286_v32  ;;  %v5292_v61 = vpop.permute.xlu0 %481  ;;  %v695_v32 = vrot.slane %v8389_v56, 2  ;;  %8391 = vst [vmem:[#allocation64_spill] sm:$0xff] %v5306_v42 }
  0xd5   :  { %8386 = vst [vmem:[#allocation60_spill] sm:$0xff] %v5292_v61  ;;  %824 = vrot.lane.b32.xlu1 %v5282_v33, %s4007_s29  ;;  %v692_v61 = vrot.slane %v8392_v60, 2  ;;  %v8395_v33 = vld [vmem:[#allocation68_spill] sm:$0xff] }
  0xd6   :  { %822 = vrot.lane.b32.xlu0 %v5289_v57, %s4007_s29  ;;  %v5316_v40 = vsel %vm581_vm1, %v693_v37, %v695_v32  ;;  %v698_v56 = vrot.slane %v8395_v33, 2  ;;  %v8396_v57 = vld [vmem:[#allocation69_spill] sm:$0xff] }
  0xd7   :  { %v5303_v24 = vpop.permute.xlu1 %487  ;;  %8394 = vst [vmem:[#allocation167_spill] sm:$0xff] %v5316_v40  ;;  %v5323_v59 = vsel %vm581_vm1, %v692_v61, %v693_v37  ;;  %v8406_v37 = vld [vmem:[#allocation75_spill] sm:$0xff] }
  0xd8   :  { %8390 = vst [vmem:[#allocation63_spill] sm:$0xff] %v5303_v24  ;;  %v5309_v27 = vpop.permute.xlu0 %485  ;;  %v700_v24 = vrot.slane %v8396_v57, 2  ;;  %8398 = vst [vmem:[#allocation69_spill] sm:$0xff] %v5323_v59 }
  0xd9   :  { %8393 = vst [vmem:[#allocation65_spill] sm:$0xff] %v5309_v27  ;;  %828 = vrot.lane.b32.xlu1 %v5299_v6, %s4007_s29  ;;  %v697_v27 = vrot.slane %v8399_v45, 2  ;;  %v8402_v6 = vld [vmem:[#allocation73_spill] sm:$0xff] }
  0xda   :  { %826 = vrot.lane.b32.xlu0 %v5306_v42, %s4007_s29  ;;  %v5333_v32 = vsel %vm581_vm1, %v698_v56, %v700_v24  ;;  %v703_v57 = vrot.slane %v8402_v6, 2  ;;  %v8403_v42 = vld [vmem:[#allocation74_spill] sm:$0xff] }
  0xdb   :  { %v5320_v28 = vpop.permute.xlu1 %491  ;;  %8401 = vst [vmem:[#allocation168_spill] sm:$0xff] %v5333_v32  ;;  %v5340_v61 = vsel %vm581_vm1, %v697_v27, %v698_v56  ;;  %v8413_v56 = vld [vmem:[#allocation80_spill] sm:$0xff] }
  0xdc   :  { %8397 = vst [vmem:[#allocation68_spill] sm:$0xff] %v5320_v28  ;;  %v5326_v29 = vpop.permute.xlu0 %489  ;;  %v705_v28 = vrot.slane %v8403_v42, 2  ;;  %8405 = vst [vmem:[#allocation74_spill] sm:$0xff] %v5340_v61 }
  0xdd   :  { %8400 = vst [vmem:[#allocation70_spill] sm:$0xff] %v5326_v29  ;;  %832 = vrot.lane.b32.xlu1 %v5316_v40, %s4007_s29  ;;  %v702_v29 = vrot.slane %v8406_v37, 2  ;;  %v8409_v40 = vld [vmem:[#allocation78_spill] sm:$0xff] }
  0xde   :  { %830 = vrot.lane.b32.xlu0 %v5323_v59, %s4007_s29  ;;  %v5350_v24 = vsel %vm581_vm1, %v703_v57, %v705_v28  ;;  %v708_v42 = vrot.slane %v8409_v40, 2  ;;  %v8410_v59 = vld [vmem:[#allocation79_spill] sm:$0xff] }
  0xdf   :  { %v5337_v15 = vpop.permute.xlu1 %495  ;;  %8408 = vst [vmem:[#allocation169_spill] sm:$0xff] %v5350_v24  ;;  %v5357_v27 = vsel %vm581_vm1, %v702_v29, %v703_v57  ;;  %v8420_v57 = vld [vmem:[#allocation85_spill] sm:$0xff] }
  0xe0   :  { %8404 = vst [vmem:[#allocation73_spill] sm:$0xff] %v5337_v15  ;;  %v5343_v26 = vpop.permute.xlu0 %493  ;;  %v710_v15 = vrot.slane %v8410_v59, 2  ;;  %8412 = vst [vmem:[#allocation79_spill] sm:$0xff] %v5357_v27 }
  0xe1   :  { %8407 = vst [vmem:[#allocation75_spill] sm:$0xff] %v5343_v26  ;;  %836 = vrot.lane.b32.xlu1 %v5333_v32, %s4007_s29  ;;  %v707_v26 = vrot.slane %v8413_v56, 2  ;;  %v8416_v32 = vld [vmem:[#allocation83_spill] sm:$0xff] }
  0xe2   :  { %834 = vrot.lane.b32.xlu0 %v5340_v61, %s4007_s29  ;;  %v5367_v28 = vsel %vm581_vm1, %v708_v42, %v710_v15  ;;  %v713_v59 = vrot.slane %v8416_v32, 2  ;;  %v8417_v61 = vld [vmem:[#allocation84_spill] sm:$0xff] }
  0xe3   :  { %v5354_v7 = vpop.permute.xlu1 %499  ;;  %8415 = vst [vmem:[#allocation170_spill] sm:$0xff] %v5367_v28  ;;  %v5374_v29 = vsel %vm581_vm1, %v707_v26, %v708_v42  ;;  %v8427_v42 = vld [vmem:[#allocation90_spill] sm:$0xff] }
  0xe4   :  { %8411 = vst [vmem:[#allocation78_spill] sm:$0xff] %v5354_v7  ;;  %v5360_v58 = vpop.permute.xlu0 %497  ;;  %v715_v7 = vrot.slane %v8417_v61, 2  ;;  %8419 = vst [vmem:[#allocation84_spill] sm:$0xff] %v5374_v29 }
  0xe5   :  { %8414 = vst [vmem:[#allocation80_spill] sm:$0xff] %v5360_v58  ;;  %840 = vrot.lane.b32.xlu1 %v5350_v24, %s4007_s29  ;;  %v712_v58 = vrot.slane %v8420_v57, 2  ;;  %v8423_v24 = vld [vmem:[#allocation88_spill] sm:$0xff] }
  0xe6   :  { %838 = vrot.lane.b32.xlu0 %v5357_v27, %s4007_s29  ;;  %v5384_v15 = vsel %vm581_vm1, %v713_v59, %v715_v7  ;;  %v718_v61 = vrot.slane %v8423_v24, 2  ;;  %v8424_v27 = vld [vmem:[#allocation89_spill] sm:$0xff] }
  0xe7   :  { %v5371_v0 = vpop.permute.xlu1 %503  ;;  %8422 = vst [vmem:[#allocation171_spill] sm:$0xff] %v5384_v15  ;;  %v5391_v26 = vsel %vm581_vm1, %v712_v58, %v713_v59  ;;  %v8434_v59 = vld [vmem:[#allocation95_spill] sm:$0xff] }
  0xe8   :  { %8418 = vst [vmem:[#allocation83_spill] sm:$0xff] %v5371_v0  ;;  %v5377_v53 = vpop.permute.xlu0 %501  ;;  %v720_v0 = vrot.slane %v8424_v27, 2  ;;  %8426 = vst [vmem:[#allocation89_spill] sm:$0xff] %v5391_v26 }
  0xe9   :  { %8421 = vst [vmem:[#allocation85_spill] sm:$0xff] %v5377_v53  ;;  %844 = vrot.lane.b32.xlu1 %v5367_v28, %s4007_s29  ;;  %v717_v53 = vrot.slane %v8427_v42, 2  ;;  %v8430_v28 = vld [vmem:[#allocation93_spill] sm:$0xff] }
  0xea   :  { %842 = vrot.lane.b32.xlu0 %v5374_v29, %s4007_s29  ;;  %v5401_v7 = vsel %vm581_vm1, %v718_v61, %v720_v0  ;;  %v723_v27 = vrot.slane %v8430_v28, 2  ;;  %v8431_v29 = vld [vmem:[#allocation94_spill] sm:$0xff] }
  0xeb   :  { %v5388_v36 = vpop.permute.xlu1 %507  ;;  %8429 = vst [vmem:[#allocation172_spill] sm:$0xff] %v5401_v7  ;;  %v5408_v58 = vsel %vm581_vm1, %v717_v53, %v718_v61  ;;  %v8441_v61 = vld [vmem:[#allocation100_spill] sm:$0xff] }
  0xec   :  { %8425 = vst [vmem:[#allocation88_spill] sm:$0xff] %v5388_v36  ;;  %v5394_v35 = vpop.permute.xlu0 %505  ;;  %v725_v36 = vrot.slane %v8431_v29, 2  ;;  %8433 = vst [vmem:[#allocation94_spill] sm:$0xff] %v5408_v58 }
  0xed   :  { %8428 = vst [vmem:[#allocation90_spill] sm:$0xff] %v5394_v35  ;;  %848 = vrot.lane.b32.xlu1 %v5384_v15, %s4007_s29  ;;  %v722_v35 = vrot.slane %v8434_v59, 2  ;;  %v8437_v15 = vld [vmem:[#allocation98_spill] sm:$0xff] }
  0xee   :  { %846 = vrot.lane.b32.xlu0 %v5391_v26, %s4007_s29  ;;  %v5418_v0 = vsel %vm581_vm1, %v723_v27, %v725_v36  ;;  %v728_v29 = vrot.slane %v8437_v15, 2  ;;  %v8438_v26 = vld [vmem:[#allocation99_spill] sm:$0xff] }
  0xef   :  { %v5405_v50 = vpop.permute.xlu1 %511  ;;  %8436 = vst [vmem:[#allocation173_spill] sm:$0xff] %v5418_v0  ;;  %v5425_v53 = vsel %vm581_vm1, %v722_v35, %v723_v27  ;;  %v8447_v27 = vld [vmem:[#allocation105_spill] sm:$0xff] }
  0xf0   :  { %8432 = vst [vmem:[#allocation93_spill] sm:$0xff] %v5405_v50  ;;  %v5411_v34 = vpop.permute.xlu0 %509  ;;  %v730_v50 = vrot.slane %v8438_v26, 2  ;;  %8440 = vst [vmem:[#allocation99_spill] sm:$0xff] %v5425_v53 }
  0xf1   :  { %8435 = vst [vmem:[#allocation95_spill] sm:$0xff] %v5411_v34  ;;  %852 = vrot.lane.b32.xlu1 %v5401_v7, %s4007_s29  ;;  %v727_v34 = vrot.slane %v8441_v61, 2  ;;  %v8444_v7 = vld [vmem:[#allocation103_spill] sm:$0xff] }
  0xf2   :  { %850 = vrot.lane.b32.xlu0 %v5408_v58, %s4007_s29  ;;  %v5435_v36 = vsel %vm581_vm1, %v728_v29, %v730_v50  ;;  %v733_v26 = vrot.slane %v8444_v7, 2  ;;  %v8445_v58 = vld [vmem:[#allocation104_spill] sm:$0xff] }
  0xf3   :  { %v5422_v12 = vpop.permute.xlu1 %515  ;;  %8443 = vst [vmem:[#allocation174_spill] sm:$0xff] %v5435_v36  ;;  %v5442_v35 = vsel %vm581_vm1, %v727_v34, %v728_v29  ;;  %v737_v29 = vrot.slane %v4913_v41, 2 }
  0xf4   :  { %8439 = vst [vmem:[#allocation98_spill] sm:$0xff] %v5422_v12  ;;  %v5428_v18 = vpop.permute.xlu0 %513  ;;  %v735_v12 = vrot.slane %v8445_v58, 2  ;;  %8446 = vst [vmem:[#allocation103_spill] sm:$0xff] %v5442_v35  ;;  %v738_v58 = vrot.slane %v4901_v17, 2 }
  0xf5   :  { %8442 = vst [vmem:[#allocation100_spill] sm:$0xff] %v5428_v18  ;;  %856 = vrot.lane.b32.xlu1 %v5418_v0, %s4007_s29  ;;  %v732_v18 = vrot.slane %v8447_v27, 2  ;;  %v740_v0 = vrot.slane %v4906_v21, 2 }
  0xf6   :  { %854 = vrot.lane.b32.xlu0 %v5425_v53, %s4007_s29  ;;  %v5452_v50 = vsel %vm581_vm1, %v733_v26, %v735_v12  ;;  %v5474_v21 = vsel %vm581_vm1, %v737_v29, %v738_v58 }
  0xf7   :  { %v5439_v51 = vpop.permute.xlu1 %744  ;;  %8448 = vst [vmem:[#allocation104_spill] sm:$0xff] %v5452_v50  ;;  %v5459_v34 = vsel %vm581_vm1, %v732_v18, %v733_v26  ;;  %v5469_v12 = vsel %vm581_vm1, %v738_v58, %v740_v0  ;;  %8454 = vst [vmem:[#allocation179_spill] sm:$0xff] %v5474_v21  ;;  %v5489_v0 = vld [vmem:[%s7900_s0 + $0x20] sm:$0xff]  ;;  %v5496_v58 = vld [vmem:[%s7900_s0 + $0x18] sm:$0xff] }
  0xf8   :  { %v5445_v16 = vpop.permute.xlu0 %742  ;;  %8450 = vst [vmem:[#allocation175_spill] sm:$0xff] %v5459_v34  ;;  %8452 = vst [vmem:[#allocation177_spill] sm:$0xff] %v5469_v12 }
  0xf9   :  { %860 = vrot.lane.b32.xlu1 %v5435_v36, %s4007_s29  ;;  %8458 = vst [vmem:[#allocation183_spill] sm:$0xff] %v5489_v0  ;;  %8459 = vst [vmem:[#allocation184_spill] sm:$0xff] %v5496_v58 }
  0xfa   :  { %858 = vrot.lane.b32.xlu0 %v5442_v35, %s4007_s29 }
  0xfb   :  { %v5456_v53 = vpop.permute.xlu1 %748 }
  0xfc   :  { %8449 = vst [vmem:[#allocation105_spill] sm:$0xff] %v5456_v53  ;;  %v5462_v49 = vpop.permute.xlu0 %746 }
  0xfd   :  { %8451 = vst [vmem:[#allocation176_spill] sm:$0xff] %v5462_v49  ;;  %864 = vrot.lane.b32.xlu1 %v5452_v50, %s4007_s29 }
  0xfe   :  { %862 = vrot.lane.b32.xlu0 %v5459_v34, %s4007_s29  ;;  %v5514_v34 = vld [vmem:[%s7900_s0 + $0x30] sm:$0xff] }
  0xff   :  { %v5471_v36 = vpop.permute.xlu1 %752 }
 0x100   :  { %8453 = vst [vmem:[#allocation178_spill] sm:$0xff] %v5471_v36  ;;  %v5476_v18 = vpop.permute.xlu0 %750 }
 0x101   :  { %8455 = vst [vmem:[#allocation180_spill] sm:$0xff] %v5476_v18  ;;  %868 = vrot.lane.b32.xlu1 %v5469_v12, %s4007_s29 }
 0x102   :  { %866 = vrot.lane.b32.xlu0 %v5474_v21, %s4007_s29  ;;  %v5507_v21 = vld [vmem:[%s7900_s0 + $0x38] sm:$0xff] }
 0x103   :  { %v5482_v26 = vpop.permute.xlu1 %756 }
 0x104   :  { %8456 = vst [vmem:[#allocation181_spill] sm:$0xff] %v5482_v26  ;;  %v5484_v50 = vpop.permute.xlu0 %754  ;;  %v5532_v26 = vld [vmem:[%s7900_s0 + $0x48] sm:$0xff] }
 0x105   :  { %8457 = vst [vmem:[#allocation182_spill] sm:$0xff] %v5484_v50  ;;  %940 = vrot.lane.b32.xlu1 %v5489_v0, %s4008_s7  ;;  %v5640_v0 = vld [vmem:[%s7900_s0 + $0xd8] sm:$0xff] }
 0x106   :  { %938 = vrot.lane.b32.xlu0 %v5496_v58, %s4008_s7  ;;  %8477 = vst [vmem:[#allocation202_spill] sm:$0xff] %v5640_v0 }
 0x107   :  { %v5500_v29 = vpop.permute.xlu1 %760 }
 0x108   :  { %8460 = vst [vmem:[#allocation185_spill] sm:$0xff] %v5500_v29  ;;  %v5502_v12 = vpop.permute.xlu0 %758 }
 0x109   :  { %8461 = vst [vmem:[#allocation186_spill] sm:$0xff] %v5502_v12  ;;  %944 = vrot.lane.b32.xlu1 %v5507_v21, %s4008_s7  ;;  %v5525_v12 = vld [vmem:[%s7900_s0 + $0x50] sm:$0xff] }
 0x10a   :  { %942 = vrot.lane.b32.xlu0 %v5514_v34, %s4008_s7 }
 0x10b   :  { %v5518_v35 = vpop.permute.xlu1 %764 }
 0x10c   :  { %8462 = vst [vmem:[#allocation187_spill] sm:$0xff] %v5518_v35  ;;  %v5520_v29 = vpop.permute.xlu0 %762 }
 0x10d   :  { %8463 = vst [vmem:[#allocation188_spill] sm:$0xff] %v5520_v29  ;;  %948 = vrot.lane.b32.xlu1 %v5525_v12, %s4008_s7  ;;  %v5543_v29 = vld [vmem:[%s7900_s0 + $0x68] sm:$0xff] }
 0x10e   :  { %946 = vrot.lane.b32.xlu0 %v5532_v26, %s4008_s7 }
 0x10f   :  { %v5536_v50 = vpop.permute.xlu1 %768 }
 0x110   :  { %8464 = vst [vmem:[#allocation189_spill] sm:$0xff] %v5536_v50  ;;  %v5538_v35 = vpop.permute.xlu0 %766 }
 0x111   :  { %8465 = vst [vmem:[#allocation190_spill] sm:$0xff] %v5538_v35  ;;  %952 = vrot.lane.b32.xlu1 %v5543_v29, %s4008_s7  ;;  %v5561_v35 = vld [vmem:[%s7900_s0 + $0x80] sm:$0xff] }
 0x112   :  { %950 = vrot.lane.b32.xlu0 %v5550_v63, %s4008_s7 }
 0x113   :  { %v5554_v44 = vpop.permute.xlu1 %772 }
 0x114   :  { %8466 = vst [vmem:[#allocation191_spill] sm:$0xff] %v5554_v44  ;;  %v5556_v50 = vpop.permute.xlu0 %770 }
 0x115   :  { %8467 = vst [vmem:[#allocation192_spill] sm:$0xff] %v5556_v50  ;;  %956 = vrot.lane.b32.xlu1 %v5561_v35, %s4008_s7  ;;  %v5579_v50 = vld [vmem:[%s7900_s0 + $0x98] sm:$0xff] }
 0x116   :  { %954 = vrot.lane.b32.xlu0 %v5568_v62, %s4008_s7 }
 0x117   :  { %v5572_v36 = vpop.permute.xlu1 %776 }
 0x118   :  { %8468 = vst [vmem:[#allocation193_spill] sm:$0xff] %v5572_v36  ;;  %v5574_v44 = vpop.permute.xlu0 %774 }
 0x119   :  { %8469 = vst [vmem:[#allocation194_spill] sm:$0xff] %v5574_v44  ;;  %960 = vrot.lane.b32.xlu1 %v5579_v50, %s4008_s7  ;;  %v5597_v44 = vld [vmem:[%s7900_s0 + $0xb0] sm:$0xff] }
 0x11a   :  { %958 = vrot.lane.b32.xlu0 %v5586_v25, %s4008_s7 }
 0x11b   :  { %v5590_v18 = vpop.permute.xlu1 %780 }
 0x11c   :  { %8470 = vst [vmem:[#allocation195_spill] sm:$0xff] %v5590_v18  ;;  %v5592_v36 = vpop.permute.xlu0 %778 }
 0x11d   :  { %8471 = vst [vmem:[#allocation196_spill] sm:$0xff] %v5592_v36  ;;  %964 = vrot.lane.b32.xlu1 %v5597_v44, %s4008_s7  ;;  %v5615_v36 = vld [vmem:[%s7900_s0 + $0xc8] sm:$0xff] }
 0x11e   :  { %962 = vrot.lane.b32.xlu0 %v5604_v55, %s4008_s7 }
 0x11f   :  { %v5608_v20 = vpop.permute.xlu1 %784 }
 0x120   :  { %8472 = vst [vmem:[#allocation197_spill] sm:$0xff] %v5608_v20  ;;  %v5610_v18 = vpop.permute.xlu0 %782 }
 0x121   :  { %8473 = vst [vmem:[#allocation198_spill] sm:$0xff] %v5610_v18  ;;  %968 = vrot.lane.b32.xlu1 %v5615_v36, %s4008_s7  ;;  %v5633_v18 = vld [vmem:[%s7900_s0 + $0xe0] sm:$0xff] }
 0x122   :  { %966 = vrot.lane.b32.xlu0 %v5622_v54, %s4008_s7  ;;  %8476 = vst [vmem:[#allocation201_spill] sm:$0xff] %v5633_v18 }
 0x123   :  { %v5626_v53 = vpop.permute.xlu1 %788 }
 0x124   :  { %8474 = vst [vmem:[#allocation199_spill] sm:$0xff] %v5626_v53  ;;  %v5628_v20 = vpop.permute.xlu0 %786 }
 0x125   :  { %8475 = vst [vmem:[#allocation200_spill] sm:$0xff] %v5628_v20  ;;  %972 = vrot.lane.b32.xlu1 %v5633_v18, %s4008_s7  ;;  %v5651_v20 = vld [vmem:[%s7900_s0 + $0xf8] sm:$0xff]  ;;  %v5658_v18 = vld [vmem:[%s7900_s0 + $0xf0] sm:$0xff] }
 0x126   :  { %970 = vrot.lane.b32.xlu0 %v5640_v0, %s4008_s7  ;;  %8480 = vst [vmem:[#allocation205_spill] sm:$0xff] %v5651_v20  ;;  %8481 = vst [vmem:[#allocation206_spill] sm:$0xff] %v5658_v18 }
 0x127   :  { %v5644_v49 = vpop.permute.xlu1 %792 }
 0x128   :  { %8478 = vst [vmem:[#allocation203_spill] sm:$0xff] %v5644_v49  ;;  %v5646_v53 = vpop.permute.xlu0 %790 }
 0x129   :  { %8479 = vst [vmem:[#allocation204_spill] sm:$0xff] %v5646_v53  ;;  %976 = vrot.lane.b32.xlu1 %v5651_v20, %s4008_s7  ;;  %v5669_v53 = vld [vmem:[%s7900_s0 + $0x110] sm:$0xff]  ;;  %v5676_v20 = vld [vmem:[%s7900_s0 + $0x108] sm:$0xff] }
 0x12a   :  { %974 = vrot.lane.b32.xlu0 %v5658_v18, %s4008_s7  ;;  %8484 = vst [vmem:[#allocation209_spill] sm:$0xff] %v5669_v53  ;;  %8485 = vst [vmem:[#allocation210_spill] sm:$0xff] %v5676_v20 }
 0x12b   :  { %v5662_v0 = vpop.permute.xlu1 %796 }
 0x12c   :  { %8482 = vst [vmem:[#allocation207_spill] sm:$0xff] %v5662_v0  ;;  %v5664_v49 = vpop.permute.xlu0 %794 }
 0x12d   :  { %8483 = vst [vmem:[#allocation208_spill] sm:$0xff] %v5664_v49  ;;  %980 = vrot.lane.b32.xlu1 %v5669_v53, %s4008_s7  ;;  %v5687_v49 = vld [vmem:[%s7900_s0 + $0x128] sm:$0xff]  ;;  %v5694_v53 = vld [vmem:[%s7900_s0 + $0x120] sm:$0xff] }
 0x12e   :  { %978 = vrot.lane.b32.xlu0 %v5676_v20, %s4008_s7  ;;  %8488 = vst [vmem:[#allocation213_spill] sm:$0xff] %v5687_v49  ;;  %8489 = vst [vmem:[#allocation214_spill] sm:$0xff] %v5694_v53 }
 0x12f   :  { %v5680_v18 = vpop.permute.xlu1 %800 }
 0x130   :  { %8486 = vst [vmem:[#allocation211_spill] sm:$0xff] %v5680_v18  ;;  %v5682_v0 = vpop.permute.xlu0 %798 }
 0x131   :  { %8487 = vst [vmem:[#allocation212_spill] sm:$0xff] %v5682_v0  ;;  %984 = vrot.lane.b32.xlu1 %v5687_v49, %s4008_s7  ;;  %v5705_v0 = vld [vmem:[%s7900_s0 + $0x140] sm:$0xff]  ;;  %v5712_v49 = vld [vmem:[%s7900_s0 + $0x138] sm:$0xff] }
 0x132   :  { %982 = vrot.lane.b32.xlu0 %v5694_v53, %s4008_s7  ;;  %8492 = vst [vmem:[#allocation217_spill] sm:$0xff] %v5705_v0  ;;  %8493 = vst [vmem:[#allocation218_spill] sm:$0xff] %v5712_v49 }
 0x133   :  { %v5698_v20 = vpop.permute.xlu1 %804 }
 0x134   :  { %8490 = vst [vmem:[#allocation215_spill] sm:$0xff] %v5698_v20  ;;  %v5700_v18 = vpop.permute.xlu0 %802 }
 0x135   :  { %8491 = vst [vmem:[#allocation216_spill] sm:$0xff] %v5700_v18  ;;  %988 = vrot.lane.b32.xlu1 %v5705_v0, %s4008_s7  ;;  %v5723_v18 = vld [vmem:[%s7900_s0 + $0x158] sm:$0xff]  ;;  %v5730_v0 = vld [vmem:[%s7900_s0 + $0x150] sm:$0xff] }
 0x136   :  { %986 = vrot.lane.b32.xlu0 %v5712_v49, %s4008_s7  ;;  %8496 = vst [vmem:[#allocation221_spill] sm:$0xff] %v5723_v18  ;;  %8497 = vst [vmem:[#allocation222_spill] sm:$0xff] %v5730_v0 }
 0x137   :  { %v5716_v53 = vpop.permute.xlu1 %808 }
 0x138   :  { %8494 = vst [vmem:[#allocation219_spill] sm:$0xff] %v5716_v53  ;;  %v5718_v20 = vpop.permute.xlu0 %806 }
 0x139   :  { %8495 = vst [vmem:[#allocation220_spill] sm:$0xff] %v5718_v20  ;;  %992 = vrot.lane.b32.xlu1 %v5723_v18, %s4008_s7  ;;  %v5741_v20 = vld [vmem:[%s7900_s0 + $0x170] sm:$0xff]  ;;  %v5748_v18 = vld [vmem:[%s7900_s0 + $0x168] sm:$0xff] }
 0x13a   :  { %990 = vrot.lane.b32.xlu0 %v5730_v0, %s4008_s7  ;;  %8500 = vst [vmem:[#allocation225_spill] sm:$0xff] %v5741_v20  ;;  %8501 = vst [vmem:[#allocation226_spill] sm:$0xff] %v5748_v18  ;;  %v72_v0 = vld [vmem:[%s7900_s0 + $0x180] sm:$0xff] }
 0x13b   :  { %v5734_v49 = vpop.permute.xlu1 %812 }
 0x13c   :  { %8498 = vst [vmem:[#allocation223_spill] sm:$0xff] %v5734_v49  ;;  %v5736_v53 = vpop.permute.xlu0 %810  ;;  %v73_v49 = vld [vmem:[%s7900_s0 + $0x188] sm:$0xff] }
 0x13d   :  { %8499 = vst [vmem:[#allocation224_spill] sm:$0xff] %v5736_v53  ;;  %996 = vrot.lane.b32.xlu1 %v5741_v20, %s4008_s7 }
 0x13e   :  { %994 = vrot.lane.b32.xlu0 %v5748_v18, %s4008_s7  ;;  %v3895_v18 = vld [vmem:[%s7900_s0 + $0x1d0] sm:$0xff] }
 0x13f   :  { %v5755_v53 = vpop.permute.xlu1 %816 }
 0x140   :  { %8502 = vst [vmem:[#allocation227_spill] sm:$0xff] %v5755_v53  ;;  %v5760_v47 = vpop.permute.xlu0 %814  ;;  %v3896_v53 = vld [vmem:[%s7900_s0 + $0x1c8] sm:$0xff] }
 0x141   :  { %8503 = vst [vmem:[#allocation228_spill] sm:$0xff] %v5760_v47  ;;  %1000 = vrot.lane.b32.xlu1 %v73_v49, %s4008_s7 }
 0x142   :  { %998 = vrot.lane.b32.xlu0 %v72_v0, %s4008_s7  ;;  %v3897_v0 = vld [vmem:[%s7900_s0 + $0x1e8] sm:$0xff] }
 0x143   :  { %v5764_v20 = vpop.permute.xlu1 %820 }
 0x144   :  { %8504 = vst [vmem:[#allocation229_spill] sm:$0xff] %v5764_v20  ;;  %v5766_v58 = vpop.permute.xlu0 %818 }
 0x145   :  { %8505 = vst [vmem:[#allocation230_spill] sm:$0xff] %v5766_v58  ;;  %1004 = vrot.lane.b32.xlu1 %v3895_v18, %s4008_s7  ;;  %v3898_v18 = vld [vmem:[%s7900_s0 + $0x1e0] sm:$0xff] }
 0x146   :  { %1002 = vrot.lane.b32.xlu0 %v3896_v53, %s4008_s7 }
 0x147   :  { %v5776_v47 = vpop.permute.xlu1 %824 }
 0x148   :  { %8506 = vst [vmem:[#allocation231_spill] sm:$0xff] %v5776_v47  ;;  %v5778_v49 = vpop.permute.xlu0 %822 }
 0x149   :  { %8507 = vst [vmem:[#allocation232_spill] sm:$0xff] %v5778_v49  ;;  %1008 = vrot.lane.b32.xlu1 %v3897_v0, %s4008_s7 }
 0x14a   :  { %1006 = vrot.lane.b32.xlu0 %v3898_v18, %s4008_s7 }
 0x14b   :  { %v5788_v20 = vpop.permute.xlu1 %828 }
 0x14c   :  { %8508 = vst [vmem:[#allocation233_spill] sm:$0xff] %v5788_v20  ;;  %v5790_v58 = vpop.permute.xlu0 %826 }
 0x14d   :  { %8509 = vst [vmem:[#allocation234_spill] sm:$0xff] %v5790_v58  ;;  %1012 = vrot.lane.b32.xlu1 %v8367_v43, %s4008_s7  ;;  %v8540_v58 = vld [vmem:[#allocation14_spill] sm:$0xff] }
 0x14e   :  { %1010 = vrot.lane.b32.xlu0 %v8371_v13, %s4008_s7 }
 0x14f   :  { %v5796_v53 = vpop.permute.xlu1 %832 }
 0x150   :  { %8510 = vst [vmem:[#allocation235_spill] sm:$0xff] %v5796_v53  ;;  %v5798_v47 = vpop.permute.xlu0 %830 }
 0x151   :  { %8511 = vst [vmem:[#allocation236_spill] sm:$0xff] %v5798_v47  ;;  %1016 = vrot.lane.b32.xlu1 %v8374_v3, %s4008_s7  ;;  %v8537_v47 = vld [vmem:[#allocation15_spill] sm:$0xff] }
 0x152   :  { %1014 = vrot.lane.b32.xlu0 %v8378_v8, %s4008_s7 }
 0x153   :  { %v5804_v0 = vpop.permute.xlu1 %836 }
 0x154   :  { %8512 = vst [vmem:[#allocation237_spill] sm:$0xff] %v5804_v0  ;;  %v5806_v18 = vpop.permute.xlu0 %834 }
 0x155   :  { %8513 = vst [vmem:[#allocation238_spill] sm:$0xff] %v5806_v18  ;;  %1020 = vrot.lane.b32.xlu1 %v8381_v19, %s4008_s7 }
 0x156   :  { %1018 = vrot.lane.b32.xlu0 %v8385_v52, %s4008_s7 }
 0x157   :  { %v5812_v43 = vpop.permute.xlu1 %840 }
 0x158   :  { %8514 = vst [vmem:[#allocation239_spill] sm:$0xff] %v5812_v43  ;;  %v5814_v13 = vpop.permute.xlu0 %838 }
 0x159   :  { %8515 = vst [vmem:[#allocation240_spill] sm:$0xff] %v5814_v13  ;;  %1024 = vrot.lane.b32.xlu1 %v8388_v48, %s4008_s7 }
 0x15a   :  { %1022 = vrot.lane.b32.xlu0 %v8392_v60, %s4008_s7 }
 0x15b   :  { %v5820_v3 = vpop.permute.xlu1 %844 }
 0x15c   :  { %8516 = vst [vmem:[#allocation241_spill] sm:$0xff] %v5820_v3  ;;  %v5822_v8 = vpop.permute.xlu0 %842 }
 0x15d   :  { %8517 = vst [vmem:[#allocation242_spill] sm:$0xff] %v5822_v8  ;;  %1028 = vrot.lane.b32.xlu1 %v8395_v33, %s4008_s7  ;;  %v8535_v8 = vld [vmem:[#allocation12_spill] sm:$0xff] }
 0x15e   :  { %1026 = vrot.lane.b32.xlu0 %v8399_v45, %s4008_s7 }
 0x15f   :  { %v5828_v19 = vpop.permute.xlu1 %848 }
 0x160   :  { %8518 = vst [vmem:[#allocation243_spill] sm:$0xff] %v5828_v19  ;;  %v5830_v52 = vpop.permute.xlu0 %846 }
 0x161   :  { %8519 = vst [vmem:[#allocation244_spill] sm:$0xff] %v5830_v52  ;;  %1032 = vrot.lane.b32.xlu1 %v8402_v6, %s4008_s7  ;;  %v8534_v52 = vld [vmem:[#allocation13_spill] sm:$0xff] }
 0x162   :  { %1030 = vrot.lane.b32.xlu0 %v8406_v37, %s4008_s7 }
 0x163   :  { %v5836_v48 = vpop.permute.xlu1 %852 }
 0x164   :  { %8520 = vst [vmem:[#allocation245_spill] sm:$0xff] %v5836_v48  ;;  %v5838_v60 = vpop.permute.xlu0 %850 }
 0x165   :  { %8521 = vst [vmem:[#allocation246_spill] sm:$0xff] %v5838_v60  ;;  %1036 = vrot.lane.b32.xlu1 %v8409_v40, %s4008_s7 }
 0x166   :  { %1034 = vrot.lane.b32.xlu0 %v8413_v56, %s4008_s7 }
 0x167   :  { %v5844_v33 = vpop.permute.xlu1 %856 }
 0x168   :  { %8522 = vst [vmem:[#allocation247_spill] sm:$0xff] %v5844_v33  ;;  %v5846_v45 = vpop.permute.xlu0 %854 }
 0x169   :  { %8523 = vst [vmem:[#allocation248_spill] sm:$0xff] %v5846_v45  ;;  %1040 = vrot.lane.b32.xlu1 %v8416_v32, %s4008_s7 }
 0x16a   :  { %1038 = vrot.lane.b32.xlu0 %v8420_v57, %s4008_s7 }
 0x16b   :  { %v5852_v6 = vpop.permute.xlu1 %860 }
 0x16c   :  { %8524 = vst [vmem:[#allocation249_spill] sm:$0xff] %v5852_v6  ;;  %v5854_v37 = vpop.permute.xlu0 %858 }
 0x16d   :  { %8525 = vst [vmem:[#allocation250_spill] sm:$0xff] %v5854_v37  ;;  %1044 = vrot.lane.b32.xlu1 %v8423_v24, %s4008_s7 }
 0x16e   :  { %1042 = vrot.lane.b32.xlu0 %v8427_v42, %s4008_s7 }
 0x16f   :  { %v5860_v40 = vpop.permute.xlu1 %864 }
 0x170   :  { %8526 = vst [vmem:[#allocation251_spill] sm:$0xff] %v5860_v40  ;;  %v5862_v56 = vpop.permute.xlu0 %862  ;;  %v2659_v40 = vld [vmem:[%s7901_s1 + $0x8] sm:$0xff] }
 0x171   :  { %8527 = vst [vmem:[#allocation252_spill] sm:$0xff] %v5862_v56  ;;  %1048 = vrot.lane.b32.xlu1 %v8430_v28, %s4008_s7 }
 0x172   :  { %1046 = vrot.lane.b32.xlu0 %v8434_v59, %s4008_s7 }
 0x173   :  { %v5868_v32 = vpop.permute.xlu1 %868 }
 0x174   :  { %8528 = vst [vmem:[#allocation253_spill] sm:$0xff] %v5868_v32  ;;  %v5870_v57 = vpop.permute.xlu0 %866  ;;  %v2658_v32 = vld [vmem:[%s7901_s1] sm:$0xff] }
 0x175   :  { %8529 = vst [vmem:[#allocation254_spill] sm:$0xff] %v5870_v57  ;;  %1052 = vrot.lane.b32.xlu1 %v8437_v15, %s4008_s7  ;;  %v127_v15 = vld [vmem:[%s7900_s0 + $0x338] sm:$0xff] }
 0x176   :  { %1050 = vrot.lane.b32.xlu0 %v8441_v61, %s4008_s7 }
 0x177   :  { %v5876_v24 = vpop.permute.xlu1 %940 }
 0x178   :  { %v5878_v42 = vpop.permute.xlu0 %938 }
 0x179   :  { %1056 = vrot.lane.b32.xlu1 %v8444_v7, %s4008_s7  ;;  %v126_v7 = vld [vmem:[%s7900_s0 + $0x330] sm:$0xff] }
 0x17a   :  { %1054 = vrot.lane.b32.xlu0 %v8447_v27, %s4008_s7 }
 0x17b   :  { %v5884_v28 = vpop.permute.xlu1 %944 }
 0x17c   :  { %v5886_v59 = vpop.permute.xlu0 %942 }
 0x17d   :  { %1060 = vrot.lane.b32.xlu1 %v4901_v17, %s4008_s7 }
 0x17e   :  { %1058 = vrot.lane.b32.xlu0 %v4913_v41, %s4008_s7  ;;  %v8530_v41 = vld [vmem:[#allocation9_spill] sm:$0xff] }
 0x17f   :  { %v5895_v61 = vpop.permute.xlu1 %948 }
 0x180   :  { %v5900_v27 = vpop.permute.xlu0 %946 }
 0x181   :  { %1064 = vrot.lane.b32.xlu1 %v127_v15, %s4008_s7  ;;  %v8531_v15 = vld [vmem:[#allocation8_spill] sm:$0xff] }
 0x182   :  { %1062 = vrot.lane.b32.xlu0 %v126_v7, %s4008_s7  ;;  %v3814_v7 = vpack.c.bf16 %v2659_v40, %v2658_v32  ;;  %s4010_s7 = smov 20  }
 0x183   :  { %v5904_v17 = vpop.permute.xlu1 %952 }
 0x184   :  { %v5906_v57 = vpop.permute.xlu0 %950  ;;  %3815 = vmatprep.subr.bf16.mxu0 %v3814_v7  ;;  %3846 = vmatprep.subr.bf16.mxu1 %v3814_v7 }
 0x185   :  { %1144 = vrot.lane.b32.xlu1 %v8530_v41, %s4009_s13  ;;  %3817 = vmatpush3.bf16.msra.mxu0 %v3814_v7  ;;  %v2660_v41 = vld [vmem:[%s7901_s1 + $0x10] sm:$0xff] }
 0x186   :  { %1142 = vrot.lane.b32.xlu0 %v8531_v15, %s4009_s13  ;;  %v2661_v15 = vld [vmem:[%s7901_s1 + $0x18] sm:$0xff]  ;;  %3849 = vmatpush3.bf16.msra.mxu1 %v3814_v7 }
 0x187   :  { %v5918_v56 = vpop.permute.xlu1 %956  ;;  %v3818_v40 = vpack.c.bf16 %v2661_v15, %v2660_v41  ;;  %v8532_v41 = vld [vmem:[#allocation11_spill] sm:$0xff] }
 0x188   :  { %v5920_v6 = vpop.permute.xlu0 %954 }
 0x189   :  { %1346 = vrot.lane.b32.xlu1 %v4965_v4, %s4010_s7  ;;  %3819 = vmatprep.subr.bf16.mxu0 %v3818_v40  ;;  %v2662_v4 = vld [vmem:[%s7901_s1 + $0x20] sm:$0xf]  ;;  %s4013_s1 = smov 32  }
 0x18a   :  { %1344 = vrot.lane.b32.xlu0 %v4972_v9, %s4010_s7  ;;  %3847 = vmatprep.subr.bf16.mxu1 %v3818_v40 }
 0x18b   :  { %v5932_v32 = vpop.permute.xlu1 %960  ;;  %3821 = vmatpush3.bf16.msra.mxu0 %v3818_v40  ;;  %3850 = vmatpush3.bf16.msra.mxu1 %v3818_v40  ;;  %v8533_v40 = vld [vmem:[#allocation10_spill] sm:$0xff] }
 0x18c   :  { %v5934_v37 = vpop.permute.xlu0 %958  ;;  %3681 = vmatprep.subr.msk.mxu0 %vm2863_vm2, %v2662_v4  ;;  %3848 = vmatprep.subr.msk.mxu1 %vm2863_vm2, %v2662_v4 }
 0x18d   :  { %1542 = vrot.lane.b32.xlu1 %v5507_v21, %s4011_s23 }
 0x18e   :  { %1540 = vrot.lane.b32.xlu0 %v5514_v34, %s4011_s23 }
 0x18f   :  { %v5943_v9 = vpop.permute.xlu1 %964  ;;  %3682 = vmatpush3.msk.msra.mxu0 %vm2863_vm2, %v2662_v4  ;;  %3851 = vmatpush3.msk.msra.mxu1 %vm2863_vm2, %v2662_v4 }
 0x190   :  { %v5945_v7 = vpop.permute.xlu0 %962 }
 0x191   :  { %1146 = vrot.lane.b32.xlu1 %v8532_v41, %s4009_s13 }
 0x192   :  { %1744 = vrot.lane.b32.xlu0 %v8532_v41, %s4012_s26 }
 0x193   :  { %v5951_v15 = vpop.permute.xlu1 %968 }
 0x194   :  { %v5953_v33 = vpop.permute.xlu0 %966 }
 0x195   :  { %1946 = vrot.lane.b32.xlu1 %v4989_v10, %s4013_s1 }
 0x196   :  { %1746 = vrot.lane.b32.xlu0 %v8533_v40, %s4012_s26 }
 0x197   :  { %v5959_v45 = vpop.permute.xlu1 %972 }
 0x198   :  { %v5961_v48 = vpop.permute.xlu0 %970 }
 0x199   :  { %1348 = vrot.lane.b32.xlu1 %v4989_v10, %s4010_s7 }
 0x19a   :  { %1148 = vrot.lane.b32.xlu0 %v8533_v40, %s4009_s13 }
 0x19b   :  { %v5967_v4 = vpop.permute.xlu1 %976 }
 0x19c   :  { %v5969_v41 = vpop.permute.xlu0 %974 }
 0x19d   :  { %1350 = vrot.lane.b32.xlu1 %v4982_v5, %s4010_s7 }
 0x19e   :  { %1948 = vrot.lane.b32.xlu0 %v4982_v5, %s4013_s1 }
 0x19f   :  { %v5975_v60 = vpop.permute.xlu1 %980 }
 0x1a0   :  { %v5977_v19 = vpop.permute.xlu0 %978 }
 0x1a1   :  { %1546 = vrot.lane.b32.xlu1 %v5525_v12, %s4011_s23 }
 0x1a2   :  { %1544 = vrot.lane.b32.xlu0 %v5532_v26, %s4011_s23 }
 0x1a3   :  { %v5983_v10 = vpop.permute.xlu1 %984 }
 0x1a4   :  { %v5985_v40 = vpop.permute.xlu0 %982 }
 0x1a5   :  { %1150 = vrot.lane.b32.xlu1 %v8534_v52, %s4009_s13 }
 0x1a6   :  { %1748 = vrot.lane.b32.xlu0 %v8534_v52, %s4012_s26 }
 0x1a7   :  { %v5991_v5 = vpop.permute.xlu1 %988 }
 0x1a8   :  { %v5993_v3 = vpop.permute.xlu0 %986 }
 0x1a9   :  { %1950 = vrot.lane.b32.xlu1 %v5006_v1, %s4013_s1 }
 0x1aa   :  { %1750 = vrot.lane.b32.xlu0 %v8535_v8, %s4012_s26 }
 0x1ab   :  { %v5999_v43 = vpop.permute.xlu1 %992 }
 0x1ac   :  { %v6001_v13 = vpop.permute.xlu0 %990 }
 0x1ad   :  { %1352 = vrot.lane.b32.xlu1 %v5006_v1, %s4010_s7 }
 0x1ae   :  { %1152 = vrot.lane.b32.xlu0 %v8535_v8, %s4009_s13 }
 0x1af   :  { %v6007_v52 = vpop.permute.xlu1 %996 }
 0x1b0   :  { %v6009_v0 = vpop.permute.xlu0 %994 }
 0x1b1   :  { %1354 = vrot.lane.b32.xlu1 %v4999_v2, %s4010_s7 }
 0x1b2   :  { %1952 = vrot.lane.b32.xlu0 %v4999_v2, %s4013_s1 }
 0x1b3   :  { %v6015_v18 = vpop.permute.xlu1 %1000 }
 0x1b4   :  { %v6017_v53 = vpop.permute.xlu0 %998 }
 0x1b5   :  { %1550 = vrot.lane.b32.xlu1 %v5543_v29, %s4011_s23 }
 0x1b6   :  { %1548 = vrot.lane.b32.xlu0 %v5550_v63, %s4011_s23 }
 0x1b7   :  { %v6023_v1 = vpop.permute.xlu1 %1004 }
 0x1b8   :  { %8536 = vst [vmem:[#allocation9_spill] sm:$0xff] %v6023_v1  ;;  %v6025_v8 = vpop.permute.xlu0 %1002 }
 0x1b9   :  { %1154 = vrot.lane.b32.xlu1 %v8537_v47, %s4009_s13 }
 0x1ba   :  { %1752 = vrot.lane.b32.xlu0 %v8537_v47, %s4012_s26 }
 0x1bb   :  { %v6031_v2 = vpop.permute.xlu1 %1008 }
 0x1bc   :  { %8538 = vst [vmem:[#allocation8_spill] sm:$0xff] %v6031_v2  ;;  %v6033_v20 = vpop.permute.xlu0 %1006 }
 0x1bd   :  { %8539 = vst [vmem:[#allocation11_spill] sm:$0xff] %v6033_v20  ;;  %1954 = vrot.lane.b32.xlu1 %v5023_v11, %s4013_s1 }
 0x1be   :  { %1754 = vrot.lane.b32.xlu0 %v8540_v58, %s4012_s26 }
 0x1bf   :  { %v6039_v49 = vpop.permute.xlu1 %1012 }
 0x1c0   :  { %8541 = vst [vmem:[#allocation10_spill] sm:$0xff] %v6039_v49  ;;  %v6041_v1 = vpop.permute.xlu0 %1010 }
 0x1c1   :  { %1356 = vrot.lane.b32.xlu1 %v5023_v11, %s4010_s7 }
 0x1c2   :  { %1156 = vrot.lane.b32.xlu0 %v8540_v58, %s4009_s13 }
 0x1c3   :  { %v6047_v47 = vpop.permute.xlu1 %1016 }
 0x1c4   :  { %8542 = vst [vmem:[#allocation13_spill] sm:$0xff] %v6047_v47  ;;  %v6049_v2 = vpop.permute.xlu0 %1014  ;;  %v8547_v47 = vld [vmem:[#allocation17_spill] sm:$0xff] }
 0x1c5   :  { %8543 = vst [vmem:[#allocation12_spill] sm:$0xff] %v6049_v2  ;;  %1358 = vrot.lane.b32.xlu1 %v5016_v14, %s4010_s7 }
 0x1c6   :  { %1956 = vrot.lane.b32.xlu0 %v5016_v14, %s4013_s1 }
 0x1c7   :  { %v6055_v20 = vpop.permute.xlu1 %1020 }
 0x1c8   :  { %8544 = vst [vmem:[#allocation15_spill] sm:$0xff] %v6055_v20  ;;  %v6057_v49 = vpop.permute.xlu0 %1018 }
 0x1c9   :  { %8545 = vst [vmem:[#allocation14_spill] sm:$0xff] %v6057_v49  ;;  %1554 = vrot.lane.b32.xlu1 %v5561_v35, %s4011_s23  ;;  %v8550_v49 = vld [vmem:[#allocation16_spill] sm:$0xff] }
 0x1ca   :  { %1552 = vrot.lane.b32.xlu0 %v5568_v62, %s4011_s23 }
 0x1cb   :  { %v6063_v11 = vpop.permute.xlu1 %1024 }
 0x1cc   :  { %8546 = vst [vmem:[#allocation255_spill] sm:$0xff] %v6063_v11  ;;  %v6065_v58 = vpop.permute.xlu0 %1022 }
 0x1cd   :  { %1158 = vrot.lane.b32.xlu1 %v8547_v47, %s4009_s13 }
 0x1ce   :  { %1756 = vrot.lane.b32.xlu0 %v8547_v47, %s4012_s26 }
 0x1cf   :  { %v6071_v14 = vpop.permute.xlu1 %1028 }
 0x1d0   :  { %8548 = vst [vmem:[#allocation17_spill] sm:$0xff] %v6071_v14  ;;  %v6073_v20 = vpop.permute.xlu0 %1026 }
 0x1d1   :  { %8549 = vst [vmem:[#allocation256_spill] sm:$0xff] %v6073_v20  ;;  %1958 = vrot.lane.b32.xlu1 %v5040_v22, %s4013_s1 }
 0x1d2   :  { %1758 = vrot.lane.b32.xlu0 %v8550_v49, %s4012_s26 }
 0x1d3   :  { %v6079_v2 = vpop.permute.xlu1 %1032 }
 0x1d4   :  { %8551 = vst [vmem:[#allocation16_spill] sm:$0xff] %v6079_v2  ;;  %v6081_v11 = vpop.permute.xlu0 %1030 }
 0x1d5   :  { %1360 = vrot.lane.b32.xlu1 %v5040_v22, %s4010_s7 }
 0x1d6   :  { %1160 = vrot.lane.b32.xlu0 %v8550_v49, %s4009_s13 }
 0x1d7   :  { %v6087_v47 = vpop.permute.xlu1 %1036 }
 0x1d8   :  { %8552 = vst [vmem:[#allocation257_spill] sm:$0xff] %v6087_v47  ;;  %v6089_v14 = vpop.permute.xlu0 %1034  ;;  %v8558_v47 = vld [vmem:[#allocation19_spill] sm:$0xff] }
 0x1d9   :  { %8553 = vst [vmem:[#allocation258_spill] sm:$0xff] %v6089_v14  ;;  %1362 = vrot.lane.b32.xlu1 %v5033_v23, %s4010_s7 }
 0x1da   :  { %1960 = vrot.lane.b32.xlu0 %v5033_v23, %s4013_s1 }
 0x1db   :  { %v6095_v20 = vpop.permute.xlu1 %1040 }
 0x1dc   :  { %8554 = vst [vmem:[#allocation259_spill] sm:$0xff] %v6095_v20  ;;  %v6097_v2 = vpop.permute.xlu0 %1038 }
 0x1dd   :  { %8555 = vst [vmem:[#allocation260_spill] sm:$0xff] %v6097_v2  ;;  %1558 = vrot.lane.b32.xlu1 %v5579_v50, %s4011_s23  ;;  %v8561_v50 = vld [vmem:[#allocation18_spill] sm:$0xff] }
 0x1de   :  { %1556 = vrot.lane.b32.xlu0 %v5586_v25, %s4011_s23 }
 0x1df   :  { %v6103_v22 = vpop.permute.xlu1 %1044 }
 0x1e0   :  { %8556 = vst [vmem:[#allocation261_spill] sm:$0xff] %v6103_v22  ;;  %v6105_v49 = vpop.permute.xlu0 %1042 }
 0x1e1   :  { %8557 = vst [vmem:[#allocation262_spill] sm:$0xff] %v6105_v49  ;;  %1162 = vrot.lane.b32.xlu1 %v8558_v47, %s4009_s13 }
 0x1e2   :  { %1760 = vrot.lane.b32.xlu0 %v8558_v47, %s4012_s26 }
 0x1e3   :  { %v6111_v23 = vpop.permute.xlu1 %1048 }
 0x1e4   :  { %8559 = vst [vmem:[#allocation19_spill] sm:$0xff] %v6111_v23  ;;  %v6113_v20 = vpop.permute.xlu0 %1046 }
 0x1e5   :  { %8560 = vst [vmem:[#allocation263_spill] sm:$0xff] %v6113_v20  ;;  %1962 = vrot.lane.b32.xlu1 %v5057_v30, %s4013_s1 }
 0x1e6   :  { %1762 = vrot.lane.b32.xlu0 %v8561_v50, %s4012_s26 }
 0x1e7   :  { %v6119_v2 = vpop.permute.xlu1 %1052 }
 0x1e8   :  { %8562 = vst [vmem:[#allocation18_spill] sm:$0xff] %v6119_v2  ;;  %v6121_v22 = vpop.permute.xlu0 %1050 }
 0x1e9   :  { %8563 = vst [vmem:[#allocation264_spill] sm:$0xff] %v6121_v22  ;;  %1364 = vrot.lane.b32.xlu1 %v5057_v30, %s4010_s7 }
 0x1ea   :  { %1164 = vrot.lane.b32.xlu0 %v8561_v50, %s4009_s13 }
 0x1eb   :  { %v6127_v47 = vpop.permute.xlu1 %1056 }
 0x1ec   :  { %8564 = vst [vmem:[#allocation265_spill] sm:$0xff] %v6127_v47  ;;  %v6129_v23 = vpop.permute.xlu0 %1054  ;;  %v8570_v47 = vld [vmem:[#allocation21_spill] sm:$0xff] }
 0x1ed   :  { %8565 = vst [vmem:[#allocation266_spill] sm:$0xff] %v6129_v23  ;;  %1366 = vrot.lane.b32.xlu1 %v5050_v31, %s4010_s7  ;;  %v8572_v23 = vld [vmem:[#allocation109_spill] sm:$0xff] }
 0x1ee   :  { %1964 = vrot.lane.b32.xlu0 %v5050_v31, %s4013_s1 }
 0x1ef   :  { %v6135_v20 = vpop.permute.xlu1 %1060 }
 0x1f0   :  { %8566 = vst [vmem:[#allocation267_spill] sm:$0xff] %v6135_v20  ;;  %v6137_v2 = vpop.permute.xlu0 %1058 }
 0x1f1   :  { %8567 = vst [vmem:[#allocation268_spill] sm:$0xff] %v6137_v2  ;;  %1562 = vrot.lane.b32.xlu1 %v5597_v44, %s4011_s23  ;;  %v8571_v44 = vld [vmem:[#allocation20_spill] sm:$0xff] }
 0x1f2   :  { %1560 = vrot.lane.b32.xlu0 %v5604_v55, %s4011_s23 }
 0x1f3   :  { %v6143_v30 = vpop.permute.xlu1 %1064 }
 0x1f4   :  { %8568 = vst [vmem:[#allocation269_spill] sm:$0xff] %v6143_v30  ;;  %v6145_v50 = vpop.permute.xlu0 %1062  ;;  %v3899_v30 = vld [vmem:[%s7900_s0] sm:$0xff] }
 0x1f5   :  { %8569 = vst [vmem:[#allocation270_spill] sm:$0xff] %v6145_v50  ;;  %1166 = vrot.lane.b32.xlu1 %v8570_v47, %s4009_s13  ;;  %v2139_v22 = vsel %vm2138_vm3, %v3899_v30, %v8572_v23 }
 0x1f6   :  { %1764 = vrot.lane.b32.xlu0 %v8570_v47, %s4012_s26 }
 0x1f7   :  { %v1145_v31 = vpop.permute.xlu1 %1144 }
 0x1f8   :  { %v1143_v20 = vpop.permute.xlu0 %1142 }
 0x1f9   :  { %1966 = vrot.lane.b32.xlu1 %v5074_v38, %s4013_s1 }
 0x1fa   :  { %1766 = vrot.lane.b32.xlu0 %v8571_v44, %s4012_s26 }
 0x1fb   :  { %v1347_v2 = vpop.permute.xlu1 %1346 }
 0x1fc   :  { %v1345_v55 = vpop.permute.xlu0 %1344 }
 0x1fd   :  { %1368 = vrot.lane.b32.xlu1 %v5074_v38, %s4010_s7  ;;  %v2204_v38 = vsel %vm2203_vm4, %v2139_v22, %v5445_v16 }
 0x1fe   :  { %1168 = vrot.lane.b32.xlu0 %v8571_v44, %s4009_s13  ;;  %v2269_v44 = vsel %vm2268_vm5, %v2204_v38, %v5878_v42  ;;  %v8573_v38 = vld [vmem:[#allocation23_spill] sm:$0xff] }
 0x1ff   :  { %v1543_v50 = vpop.permute.xlu1 %1542  ;;  %v2334_v14 = vsel %vm2333_vm6, %v2269_v44, %v1143_v20 }
 0x200   :  { %v1541_v47 = vpop.permute.xlu0 %1540  ;;  %v2399_v30 = vsel %vm2398_vm7, %v2334_v14, %v1345_v55  ;;  %v8574_v14 = vld [vmem:[#allocation113_spill] sm:$0xff] }
 0x201   :  { %1370 = vrot.lane.b32.xlu1 %v5067_v39, %s4010_s7  ;;  %v2464_v16 = vsel %vm2463_vm8, %v2399_v30, %v1541_v47 }
 0x202   :  { %1968 = vrot.lane.b32.xlu0 %v5067_v39, %s4013_s1 }
 0x203   :  { %v1147_v49 = vpop.permute.xlu1 %1146 }
 0x204   :  { %v1745_v23 = vpop.permute.xlu0 %1744 }
 0x205   :  { %1566 = vrot.lane.b32.xlu1 %v5615_v36, %s4011_s23  ;;  %v2529_v39 = vsel %vm2528_vm9, %v2464_v16, %v1745_v23  ;;  %v3900_v36 = vld [vmem:[%s7900_s0 + $0x8] sm:$0xff] }
 0x206   :  { %1564 = vrot.lane.b32.xlu0 %v5622_v54, %s4011_s23  ;;  %v2140_v55 = vsel %vm2138_vm3, %v3900_v36, %v8574_v14  ;;  %v8577_v14 = vld [vmem:[#allocation184_spill] sm:$0xff] }
 0x207   :  { %v1947_v42 = vpop.permute.xlu1 %1946  ;;  %v2205_v54 = vsel %vm2203_vm4, %v2140_v55, %v5439_v51  ;;  %v8578_v55 = vld [vmem:[#allocation134_spill] sm:$0xff] }
 0x208   :  { %v1747_v22 = vpop.permute.xlu0 %1746  ;;  %v2594_v20 = vsel %vm2593_vm10, %v2529_v39, %v1947_v42  ;;  %v2270_v44 = vsel %vm2268_vm5, %v2205_v54, %v5876_v24  ;;  %v8575_v39 = vld [vmem:[#allocation22_spill] sm:$0xff] }
 0x209   :  { %1170 = vrot.lane.b32.xlu1 %v8573_v38, %s4009_s13  ;;  %3683 = vmatprep.mubr.msk.f32.mxu0 %vm2670_vm11, %v2594_v20  ;;  %v2335_v30 = vsel %vm2333_vm6, %v2270_v44, %v1145_v31  ;;  %v8576_v31 = vld [vmem:[#allocation107_spill] sm:$0xff] }
 0x20a   :  { %1768 = vrot.lane.b32.xlu0 %v8573_v38, %s4012_s26  ;;  %v2400_v16 = vsel %vm2398_vm7, %v2335_v30, %v1347_v2 }
 0x20b   :  { %v1349_v47 = vpop.permute.xlu1 %1348  ;;  %v2465_v42 = vsel %vm2463_vm8, %v2400_v16, %v1543_v50  ;;  %v2141_v50 = vsel %vm2138_vm3, %v8577_v14, %v8576_v31 }
 0x20c   :  { %v1149_v23 = vpop.permute.xlu0 %1148  ;;  %v2530_v51 = vsel %vm2528_vm9, %v2465_v42, %v1747_v22  ;;  %v8579_v22 = vld [vmem:[#allocation176_spill] sm:$0xff]  ;;  %v8580_v42 = vld [vmem:[#allocation201_spill] sm:$0xff] }
 0x20d   :  { %1970 = vrot.lane.b32.xlu1 %v5091_v46, %s4013_s1  ;;  %v2206_v54 = vsel %vm2203_vm4, %v2141_v50, %v8579_v22  ;;  %v8582_v50 = vld [vmem:[#allocation25_spill] sm:$0xff] }
 0x20e   :  { %1770 = vrot.lane.b32.xlu0 %v8575_v39, %s4012_s26 }
 0x20f   :  { %v1351_v20 = vpop.permute.xlu1 %1350 }
 0x210   :  { %v1949_v38 = vpop.permute.xlu0 %1948 }
 0x211   :  { %v2595_v36 = vsel %vm2593_vm10, %v2530_v51, %v1949_v38  ;;  %1372 = vrot.lane.b32.xlu1 %v5091_v46, %s4010_s7  ;;  %v2271_v46 = vsel %vm2268_vm5, %v2206_v54, %v5886_v59  ;;  %v8581_v38 = vld [vmem:[#allocation202_spill] sm:$0xff] }
 0x212   :  { %1172 = vrot.lane.b32.xlu0 %v8575_v39, %s4009_s13  ;;  %3684 = vmatmul.mubr.msk.f32.vlgmr.msra.gmra.mrb[0].mxu0 %vm2670_vm11, %v2595_v36  ;;  %v2336_v30 = vsel %vm2333_vm6, %v2271_v46, %v1147_v49  ;;  %v8583_v49 = vld [vmem:[#allocation111_spill] sm:$0xff] }
 0x213   :  { %v1547_v24 = vpop.permute.xlu1 %1546  ;;  %v2401_v39 = vsel %vm2398_vm7, %v2336_v30, %v1349_v47  ;;  %v8584_v47 = vld [vmem:[#allocation183_spill] sm:$0xff] }
 0x214   :  { %v1545_v2 = vpop.permute.xlu0 %1544 }
 0x215   :  { %1374 = vrot.lane.b32.xlu1 %v8578_v55, %s4010_s7  ;;  %v2466_v51 = vsel %vm2463_vm8, %v2401_v39, %v1545_v2  ;;  %v8585_v2 = vld [vmem:[#allocation105_spill] sm:$0xff]  ;;  %v8586_v39 = vld [vmem:[#allocation139_spill] sm:$0xff] }
 0x216   :  { %1972 = vrot.lane.b32.xlu0 %v8578_v55, %s4013_s1  ;;  %v2142_v55 = vsel %vm2138_vm3, %v8584_v47, %v8583_v49  ;;  %v8589_v49 = vld [vmem:[#allocation137_spill] sm:$0xff] }
 0x217   :  { %v1151_v44 = vpop.permute.xlu1 %1150  ;;  %v2207_v22 = vsel %vm2203_vm4, %v2142_v55, %v8585_v2 }
 0x218   :  { %v1749_v16 = vpop.permute.xlu0 %1748  ;;  %v2272_v46 = vsel %vm2268_vm5, %v2207_v22, %v5884_v28 }
 0x219   :  { %1570 = vrot.lane.b32.xlu1 %v8580_v42, %s4011_s23  ;;  %v2531_v36 = vsel %vm2528_vm9, %v2466_v51, %v1749_v16  ;;  %v2337_v16 = vsel %vm2333_vm6, %v2272_v46, %v1149_v23  ;;  %v8587_v51 = vld [vmem:[#allocation24_spill] sm:$0xff] }
 0x21a   :  { %1568 = vrot.lane.b32.xlu0 %v8581_v38, %s4011_s23  ;;  %v2402_v42 = vsel %vm2398_vm7, %v2337_v16, %v1351_v20  ;;  %v8588_v20 = vld [vmem:[#allocation117_spill] sm:$0xff] }
 0x21b   :  { %v1951_v31 = vpop.permute.xlu1 %1950  ;;  %v2467_v38 = vsel %vm2463_vm8, %v2402_v42, %v1547_v24  ;;  %v2143_v24 = vsel %vm2138_vm3, %v5514_v34, %v8588_v20  ;;  %v8591_v34 = vld [vmem:[#allocation205_spill] sm:$0xff]  ;;  %v8592_v42 = vld [vmem:[#allocation206_spill] sm:$0xff] }
 0x21c   :  { %v2596_v14 = vsel %vm2593_vm10, %v2531_v36, %v1951_v31  ;;  %v1751_v59 = vpop.permute.xlu0 %1750 }
 0x21d   :  { %1174 = vrot.lane.b32.xlu1 %v8582_v50, %s4009_s13  ;;  %3686 = vmatprep.mubr.msk.f32.mxu0 %vm2670_vm11, %v2596_v14  ;;  %v2532_v31 = vsel %vm2528_vm9, %v2467_v38, %v1751_v59  ;;  %v8590_v59 = vld [vmem:[#allocation180_spill] sm:$0xff] }
 0x21e   :  { %1772 = vrot.lane.b32.xlu0 %v8582_v50, %s4012_s26  ;;  %v2208_v47 = vsel %vm2203_vm4, %v2143_v24, %v8590_v59 }
 0x21f   :  { %v1353_v54 = vpop.permute.xlu1 %1352  ;;  %v2273_v55 = vsel %vm2268_vm5, %v2208_v47, %v5900_v27  ;;  %v8596_v47 = vld [vmem:[#allocation143_spill] sm:$0xff] }
 0x220   :  { %v1153_v30 = vpop.permute.xlu0 %1152  ;;  %v2338_v22 = vsel %vm2333_vm6, %v2273_v55, %v1151_v44  ;;  %v8594_v44 = vld [vmem:[#allocation115_spill] sm:$0xff] }
 0x221   :  { %1974 = vrot.lane.b32.xlu1 %v8586_v39, %s4013_s1  ;;  %v2403_v16 = vsel %vm2398_vm7, %v2338_v22, %v1353_v54  ;;  %v2144_v54 = vsel %vm2138_vm3, %v5507_v21, %v8594_v44  ;;  %v8597_v21 = vld [vmem:[#allocation26_spill] sm:$0xff] }
 0x222   :  { %1774 = vrot.lane.b32.xlu0 %v8587_v51, %s4012_s26 }
 0x223   :  { %v1355_v36 = vpop.permute.xlu1 %1354 }
 0x224   :  { %v1953_v14 = vpop.permute.xlu0 %1952 }
 0x225   :  { %v2597_v50 = vsel %vm2593_vm10, %v2532_v31, %v1953_v14  ;;  %1376 = vrot.lane.b32.xlu1 %v8586_v39, %s4010_s7  ;;  %v8593_v14 = vld [vmem:[#allocation27_spill] sm:$0xff] }
 0x226   :  { %1176 = vrot.lane.b32.xlu0 %v8587_v51, %s4009_s13  ;;  %3687 = vmatmul.mubr.msk.f32.gmra.mrb[2].mxu0 %vm2670_vm11, %v2597_v50  ;;  %v8595_v50 = vld [vmem:[#allocation178_spill] sm:$0xff] }
 0x227   :  { %v1551_v28 = vpop.permute.xlu1 %1550 }
 0x228   :  { %v1549_v23 = vpop.permute.xlu0 %1548 }
 0x229   :  { %1378 = vrot.lane.b32.xlu1 %v8589_v49, %s4010_s7  ;;  %v2468_v39 = vsel %vm2463_vm8, %v2403_v16, %v1549_v23  ;;  %v2209_v23 = vsel %vm2203_vm4, %v2144_v54, %v8595_v50 }
 0x22a   :  { %1976 = vrot.lane.b32.xlu0 %v8589_v49, %s4013_s1  ;;  %v2274_v24 = vsel %vm2268_vm5, %v2209_v23, %v5895_v61  ;;  %v8602_v23 = vld [vmem:[#allocation210_spill] sm:$0xff] }
 0x22b   :  { %v1155_v2 = vpop.permute.xlu1 %1154  ;;  %v2339_v59 = vsel %vm2333_vm6, %v2274_v24, %v1153_v30 }
 0x22c   :  { %v1753_v46 = vpop.permute.xlu0 %1752  ;;  %v2404_v55 = vsel %vm2398_vm7, %v2339_v59, %v1355_v36  ;;  %v8598_v36 = vld [vmem:[#allocation119_spill] sm:$0xff] }
 0x22d   :  { %1574 = vrot.lane.b32.xlu1 %v8591_v34, %s4011_s23  ;;  %v2533_v51 = vsel %vm2528_vm9, %v2468_v39, %v1753_v46  ;;  %v2469_v22 = vsel %vm2463_vm8, %v2404_v55, %v1551_v28  ;;  %v2145_v28 = vsel %vm2138_vm3, %v5532_v26, %v8598_v36  ;;  %v8601_v26 = vld [vmem:[#allocation209_spill] sm:$0xff]  ;;  %v8606_v36 = vld [vmem:[#allocation147_spill] sm:$0xff] }
 0x22e   :  { %1572 = vrot.lane.b32.xlu0 %v8592_v42, %s4011_s23  ;;  %v8599_v42 = vld [vmem:[#allocation141_spill] sm:$0xff] }
 0x22f   :  { %v1955_v38 = vpop.permute.xlu1 %1954  ;;  %v8603_v55 = vld [vmem:[#allocation29_spill] sm:$0xff] }
 0x230   :  { %v2598_v31 = vsel %vm2593_vm10, %v2533_v51, %v1955_v38  ;;  %v1755_v27 = vpop.permute.xlu0 %1754  ;;  %v8600_v51 = vld [vmem:[#allocation182_spill] sm:$0xff] }
 0x231   :  { %1178 = vrot.lane.b32.xlu1 %v8593_v14, %s4009_s13  ;;  %3689 = vmatprep.mubr.msk.f32.mxu0 %vm2670_vm11, %v2598_v31  ;;  %v2534_v16 = vsel %vm2528_vm9, %v2469_v22, %v1755_v27  ;;  %v2210_v38 = vsel %vm2203_vm4, %v2145_v28, %v8600_v51 }
 0x232   :  { %1776 = vrot.lane.b32.xlu0 %v8593_v14, %s4012_s26  ;;  %v2275_v31 = vsel %vm2268_vm5, %v2210_v38, %v5906_v57 }
 0x233   :  { %v1357_v20 = vpop.permute.xlu1 %1356  ;;  %v2340_v14 = vsel %vm2333_vm6, %v2275_v31, %v1155_v2  ;;  %v8604_v2 = vld [vmem:[#allocation118_spill] sm:$0xff] }
 0x234   :  { %v1157_v49 = vpop.permute.xlu0 %1156  ;;  %v2405_v54 = vsel %vm2398_vm7, %v2340_v14, %v1357_v20  ;;  %v2146_v20 = vsel %vm2138_vm3, %v5525_v12, %v8604_v2  ;;  %v8607_v12 = vld [vmem:[#allocation28_spill] sm:$0xff] }
 0x235   :  { %1978 = vrot.lane.b32.xlu1 %v8596_v47, %s4013_s1 }
 0x236   :  { %1778 = vrot.lane.b32.xlu0 %v8597_v21, %s4012_s26 }
 0x237   :  { %v1359_v46 = vpop.permute.xlu1 %1358 }
 0x238   :  { %v1957_v34 = vpop.permute.xlu0 %1956 }
 0x239   :  { %v2599_v39 = vsel %vm2593_vm10, %v2534_v16, %v1957_v34  ;;  %1380 = vrot.lane.b32.xlu1 %v8596_v47, %s4010_s7 }
 0x23a   :  { %1180 = vrot.lane.b32.xlu0 %v8597_v21, %s4009_s13  ;;  %3690 = vmatmul.mubr.msk.f32.gmra.mrb[4].mxu0 %vm2670_vm11, %v2599_v39  ;;  %v8605_v21 = vld [vmem:[#allocation181_spill] sm:$0xff] }
 0x23b   :  { %v1555_v61 = vpop.permute.xlu1 %1554  ;;  %v2211_v22 = vsel %vm2203_vm4, %v2146_v20, %v8605_v21 }
 0x23c   :  { %v1553_v30 = vpop.permute.xlu0 %1552  ;;  %v2276_v34 = vsel %vm2268_vm5, %v2211_v22, %v5904_v17  ;;  %v8613_v22 = vld [vmem:[#allocation31_spill] sm:$0xff] }
 0x23d   :  { %1382 = vrot.lane.b32.xlu1 %v8599_v42, %s4010_s7  ;;  %v2470_v50 = vsel %vm2463_vm8, %v2405_v54, %v1553_v30  ;;  %v2341_v30 = vsel %vm2333_vm6, %v2276_v34, %v1157_v49  ;;  %v8610_v54 = vld [vmem:[#allocation186_spill] sm:$0xff]  ;;  %v8615_v34 = vld [vmem:[#allocation185_spill] sm:$0xff] }
 0x23e   :  { %1980 = vrot.lane.b32.xlu0 %v8599_v42, %s4013_s1  ;;  %v2406_v28 = vsel %vm2398_vm7, %v2341_v30, %v1359_v46  ;;  %v8608_v46 = vld [vmem:[#allocation121_spill] sm:$0xff] }
 0x23f   :  { %v1159_v27 = vpop.permute.xlu1 %1158  ;;  %v2471_v42 = vsel %vm2463_vm8, %v2406_v28, %v1555_v61  ;;  %v2147_v61 = vsel %vm2138_vm3, %v5550_v63, %v8608_v46  ;;  %v8611_v63 = vld [vmem:[#allocation213_spill] sm:$0xff] }
 0x240   :  { %v1757_v44 = vpop.permute.xlu0 %1756 }
 0x241   :  { %1578 = vrot.lane.b32.xlu1 %v8601_v26, %s4011_s23  ;;  %v2535_v24 = vsel %vm2528_vm9, %v2470_v50, %v1757_v44  ;;  %v8609_v44 = vld [vmem:[#allocation145_spill] sm:$0xff]  ;;  %v2212_v26 = vsel %vm2203_vm4, %v2147_v61, %v8610_v54 }
 0x242   :  { %1576 = vrot.lane.b32.xlu0 %v8602_v23, %s4011_s23  ;;  %v2277_v50 = vsel %vm2268_vm5, %v2212_v26, %v5920_v6  ;;  %v8619_v54 = vld [vmem:[#allocation149_spill] sm:$0xff]  ;;  %v8620_v26 = vld [vmem:[#allocation188_spill] sm:$0xff] }
 0x243   :  { %v1959_v59 = vpop.permute.xlu1 %1958 }
 0x244   :  { %v2600_v47 = vsel %vm2593_vm10, %v2535_v24, %v1959_v59  ;;  %v1759_v57 = vpop.permute.xlu0 %1758  ;;  %v2342_v24 = vsel %vm2333_vm6, %v2277_v50, %v1159_v27  ;;  %v8614_v27 = vld [vmem:[#allocation120_spill] sm:$0xff] }
 0x245   :  { %1182 = vrot.lane.b32.xlu1 %v8603_v55, %s4009_s13  ;;  %3692 = vmatprep.mubr.msk.f32.mxu0 %vm2670_vm11, %v2600_v47  ;;  %v2536_v38 = vsel %vm2528_vm9, %v2471_v42, %v1759_v57 }
 0x246   :  { %1780 = vrot.lane.b32.xlu0 %v8603_v55, %s4012_s26  ;;  %v8612_v55 = vld [vmem:[#allocation214_spill] sm:$0xff] }
 0x247   :  { %v1361_v16 = vpop.permute.xlu1 %1360 }
 0x248   :  { %v1161_v39 = vpop.permute.xlu0 %1160  ;;  %v2407_v47 = vsel %vm2398_vm7, %v2342_v24, %v1361_v16  ;;  %v2148_v16 = vsel %vm2138_vm3, %v5543_v29, %v8614_v27  ;;  %v8617_v29 = vld [vmem:[#allocation30_spill] sm:$0xff] }
 0x249   :  { %1982 = vrot.lane.b32.xlu1 %v8606_v36, %s4013_s1  ;;  %v2213_v30 = vsel %vm2203_vm4, %v2148_v16, %v8615_v34  ;;  %v8625_v16 = vld [vmem:[#allocation187_spill] sm:$0xff] }
 0x24a   :  { %1782 = vrot.lane.b32.xlu0 %v8607_v12, %s4012_s26  ;;  %v2278_v28 = vsel %vm2268_vm5, %v2213_v30, %v5918_v56 }
 0x24b   :  { %v1363_v51 = vpop.permute.xlu1 %1362  ;;  %v2343_v42 = vsel %vm2333_vm6, %v2278_v28, %v1161_v39 }
 0x24c   :  { %v1961_v31 = vpop.permute.xlu0 %1960 }
 0x24d   :  { %v2601_v14 = vsel %vm2593_vm10, %v2536_v38, %v1961_v31  ;;  %1384 = vrot.lane.b32.xlu1 %v8606_v36, %s4010_s7  ;;  %v8616_v38 = vld [vmem:[#allocation151_spill] sm:$0xff]  ;;  %v2408_v31 = vsel %vm2398_vm7, %v2343_v42, %v1363_v51 }
 0x24e   :  { %1184 = vrot.lane.b32.xlu0 %v8607_v12, %s4009_s13  ;;  %3693 = vmatmul.mubr.msk.f32.gmra.mrb[6].mxu0 %vm2670_vm11, %v2601_v14  ;;  %v8618_v51 = vld [vmem:[#allocation123_spill] sm:$0xff] }
 0x24f   :  { %v1559_v17 = vpop.permute.xlu1 %1558 }
 0x250   :  { %v1557_v49 = vpop.permute.xlu0 %1556  ;;  %v2473_v14 = vsel %vm2463_vm8, %v2408_v31, %v1559_v17  ;;  %v2149_v17 = vsel %vm2138_vm3, %v5568_v62, %v8618_v51  ;;  %v8621_v62 = vld [vmem:[#allocation217_spill] sm:$0xff]  ;;  %v8630_v51 = vld [vmem:[#allocation190_spill] sm:$0xff] }
 0x251   :  { %1386 = vrot.lane.b32.xlu1 %v8609_v44, %s4010_s7  ;;  %v2472_v57 = vsel %vm2463_vm8, %v2407_v47, %v1557_v49  ;;  %v2214_v50 = vsel %vm2203_vm4, %v2149_v17, %v8620_v26 }
 0x252   :  { %1984 = vrot.lane.b32.xlu0 %v8609_v44, %s4013_s1  ;;  %v2279_v24 = vsel %vm2268_vm5, %v2214_v50, %v5934_v37 }
 0x253   :  { %v1163_v23 = vpop.permute.xlu1 %1162 }
 0x254   :  { %v1761_v59 = vpop.permute.xlu0 %1760  ;;  %v2344_v47 = vsel %vm2333_vm6, %v2279_v24, %v1163_v23  ;;  %v8624_v23 = vld [vmem:[#allocation122_spill] sm:$0xff] }
 0x255   :  { %1582 = vrot.lane.b32.xlu1 %v8611_v63, %s4011_s23  ;;  %v2537_v2 = vsel %vm2528_vm9, %v2472_v57, %v1761_v59  ;;  %v2150_v27 = vsel %vm2138_vm3, %v5561_v35, %v8624_v23  ;;  %v8627_v35 = vld [vmem:[#allocation32_spill] sm:$0xff] }
 0x256   :  { %1580 = vrot.lane.b32.xlu0 %v8612_v55, %s4011_s23  ;;  %v2215_v34 = vsel %vm2203_vm4, %v2150_v27, %v8625_v16 }
 0x257   :  { %v1963_v20 = vpop.permute.xlu1 %1962 }
 0x258   :  { %v2602_v21 = vsel %vm2593_vm10, %v2537_v2, %v1963_v20  ;;  %v1763_v6 = vpop.permute.xlu0 %1762  ;;  %v8622_v2 = vld [vmem:[#allocation218_spill] sm:$0xff] }
 0x259   :  { %1186 = vrot.lane.b32.xlu1 %v8613_v22, %s4009_s13  ;;  %3695 = vmatprep.mubr.msk.f32.mxu0 %vm2670_vm11, %v2602_v21  ;;  %v2538_v46 = vsel %vm2528_vm9, %v2473_v14, %v1763_v6 }
 0x25a   :  { %1784 = vrot.lane.b32.xlu0 %v8613_v22, %s4012_s26  ;;  %v8623_v22 = vld [vmem:[#allocation33_spill] sm:$0xff] }
 0x25b   :  { %v1365_v36 = vpop.permute.xlu1 %1364 }
 0x25c   :  { %v1165_v12 = vpop.permute.xlu0 %1164  ;;  %v2409_v57 = vsel %vm2398_vm7, %v2344_v47, %v1365_v36  ;;  %v2280_v36 = vsel %vm2268_vm5, %v2215_v34, %v5932_v32 }
 0x25d   :  { %1986 = vrot.lane.b32.xlu1 %v8616_v38, %s4013_s1  ;;  %v2345_v42 = vsel %vm2333_vm6, %v2280_v36, %v1165_v12 }
 0x25e   :  { %1786 = vrot.lane.b32.xlu0 %v8617_v29, %s4012_s26 }
 0x25f   :  { %v1367_v49 = vpop.permute.xlu1 %1366 }
 0x260   :  { %v1965_v61 = vpop.permute.xlu0 %1964  ;;  %v2410_v31 = vsel %vm2398_vm7, %v2345_v42, %v1367_v49  ;;  %v8628_v49 = vld [vmem:[#allocation125_spill] sm:$0xff]  ;;  %v8637_v42 = vld [vmem:[#allocation34_spill] sm:$0xff] }
 0x261   :  { %v2603_v44 = vsel %vm2593_vm10, %v2538_v46, %v1965_v61  ;;  %1388 = vrot.lane.b32.xlu1 %v8616_v38, %s4010_s7  ;;  %v8626_v38 = vld [vmem:[#allocation155_spill] sm:$0xff] }
 0x262   :  { %1188 = vrot.lane.b32.xlu0 %v8617_v29, %s4009_s13  ;;  %3696 = vmatmul.mubr.msk.f32.gmra.mrb[8].mxu0 %vm2670_vm11, %v2603_v44 }
 0x263   :  { %v1563_v56 = vpop.permute.xlu1 %1562 }
 0x264   :  { %v1561_v39 = vpop.permute.xlu0 %1560  ;;  %v2475_v29 = vsel %vm2463_vm8, %v2410_v31, %v1563_v56  ;;  %v2151_v56 = vsel %vm2138_vm3, %v5586_v25, %v8628_v49  ;;  %v8631_v25 = vld [vmem:[#allocation221_spill] sm:$0xff] }
 0x265   :  { %1390 = vrot.lane.b32.xlu1 %v8619_v54, %s4010_s7  ;;  %v2474_v55 = vsel %vm2463_vm8, %v2409_v57, %v1561_v39  ;;  %v8629_v39 = vld [vmem:[#allocation153_spill] sm:$0xff]  ;;  %v2216_v17 = vsel %vm2203_vm4, %v2151_v56, %v8630_v51  ;;  %v8632_v57 = vld [vmem:[#allocation222_spill] sm:$0xff] }
 0x266   :  { %1988 = vrot.lane.b32.xlu0 %v8619_v54, %s4013_s1  ;;  %v2281_v54 = vsel %vm2268_vm5, %v2216_v17, %v5945_v7 }
 0x267   :  { %v1167_v59 = vpop.permute.xlu1 %1166 }
 0x268   :  { %v1765_v63 = vpop.permute.xlu0 %1764  ;;  %v2346_v50 = vsel %vm2333_vm6, %v2281_v54, %v1167_v59  ;;  %v3901_v59 = vld [vmem:[%s7900_s0 + $0x98] sm:$0xff] }
 0x269   :  { %1586 = vrot.lane.b32.xlu1 %v8621_v62, %s4011_s23  ;;  %v2539_v20 = vsel %vm2528_vm9, %v2474_v55, %v1765_v63 }
 0x26a   :  { %1584 = vrot.lane.b32.xlu0 %v8622_v2, %s4011_s23 }
 0x26b   :  { %v1967_v21 = vpop.permute.xlu1 %1966 }
 0x26c   :  { %v2604_v6 = vsel %vm2593_vm10, %v2539_v20, %v1967_v21  ;;  %v1767_v37 = vpop.permute.xlu0 %1766  ;;  %v8633_v20 = vld [vmem:[#allocation35_spill] sm:$0xff]  ;;  %v8634_v21 = vld [vmem:[#allocation124_spill] sm:$0xff] }
 0x26d   :  { %1190 = vrot.lane.b32.xlu1 %v8623_v22, %s4009_s13  ;;  %3698 = vmatprep.mubr.msk.f32.mxu0 %vm2670_vm11, %v2604_v6  ;;  %v2540_v46 = vsel %vm2528_vm9, %v2475_v29, %v1767_v37  ;;  %v2152_v6 = vsel %vm2138_vm3, %v3901_v59, %v8634_v21  ;;  %v8635_v37 = vld [vmem:[#allocation189_spill] sm:$0xff] }
 0x26e   :  { %1788 = vrot.lane.b32.xlu0 %v8623_v22, %s4012_s26  ;;  %v2217_v22 = vsel %vm2203_vm4, %v2152_v6, %v8635_v37 }
 0x26f   :  { %v1369_v30 = vpop.permute.xlu1 %1368  ;;  %v2282_v27 = vsel %vm2268_vm5, %v2217_v22, %v5943_v9  ;;  %v8646_v22 = vld [vmem:[#allocation162_spill] sm:$0xff] }
 0x270   :  { %v1169_v28 = vpop.permute.xlu0 %1168  ;;  %v2411_v47 = vsel %vm2398_vm7, %v2346_v50, %v1369_v30  ;;  %v8636_v30 = vld [vmem:[#allocation159_spill] sm:$0xff]  ;;  %v8641_v50 = vld [vmem:[#allocation225_spill] sm:$0xff] }
 0x271   :  { %1990 = vrot.lane.b32.xlu1 %v8626_v38, %s4013_s1  ;;  %v2347_v34 = vsel %vm2333_vm6, %v2282_v27, %v1169_v28  ;;  %v8647_v27 = vld [vmem:[#allocation38_spill] sm:$0xff] }
 0x272   :  { %1790 = vrot.lane.b32.xlu0 %v8627_v35, %s4012_s26 }
 0x273   :  { %v1371_v14 = vpop.permute.xlu1 %1370 }
 0x274   :  { %v1969_v61 = vpop.permute.xlu0 %1968  ;;  %v2412_v36 = vsel %vm2398_vm7, %v2347_v34, %v1371_v14  ;;  %v3902_v14 = vld [vmem:[%s7900_s0 + $0xa8] sm:$0xff] }
 0x275   :  { %v2605_v44 = vsel %vm2593_vm10, %v2540_v46, %v1969_v61  ;;  %1392 = vrot.lane.b32.xlu1 %v8626_v38, %s4010_s7  ;;  %v8638_v61 = vld [vmem:[#allocation127_spill] sm:$0xff] }
 0x276   :  { %1192 = vrot.lane.b32.xlu0 %v8627_v35, %s4009_s13  ;;  %3699 = vmatmul.mubr.msk.f32.gmra.mrb[10].mxu0 %vm2670_vm11, %v2605_v44  ;;  %v2153_v44 = vsel %vm2138_vm3, %v3902_v14, %v8638_v61  ;;  %v3905_v14 = vld [vmem:[%s7900_s0 + $0x188] sm:$0xff] }
 0x277   :  { %v1567_v32 = vpop.permute.xlu1 %1566  ;;  %v1133_v61 = vrot.slane %v3905_v14, 1 }
 0x278   :  { %v1565_v12 = vpop.permute.xlu0 %1564  ;;  %v2477_v38 = vsel %vm2463_vm8, %v2412_v36, %v1567_v32  ;;  %v8639_v32 = vld [vmem:[#allocation157_spill] sm:$0xff] }
 0x279   :  { %1394 = vrot.lane.b32.xlu1 %v8629_v39, %s4010_s7  ;;  %v2476_v63 = vsel %vm2463_vm8, %v2411_v47, %v1565_v12  ;;  %v8640_v12 = vld [vmem:[#allocation192_spill] sm:$0xff]  ;;  %v8642_v47 = vld [vmem:[#allocation226_spill] sm:$0xff] }
 0x27a   :  { %1992 = vrot.lane.b32.xlu0 %v8629_v39, %s4013_s1  ;;  %v2218_v49 = vsel %vm2203_vm4, %v2153_v44, %v8640_v12  ;;  %v3906_v44 = vld [vmem:[%s7900_s0 + $0x180] sm:$0xff] }
 0x27b   :  { %v1171_v26 = vpop.permute.xlu1 %1170  ;;  %v2283_v56 = vsel %vm2268_vm5, %v2218_v49, %v5953_v33 }
 0x27c   :  { %v1769_v24 = vpop.permute.xlu0 %1768  ;;  %v2348_v51 = vsel %vm2333_vm6, %v2283_v56, %v1171_v26  ;;  %v3903_v26 = vld [vmem:[%s7900_s0 + $0xb0] sm:$0xff] }
 0x27d   :  { %1590 = vrot.lane.b32.xlu1 %v8631_v25, %s4011_s23  ;;  %v2541_v62 = vsel %vm2528_vm9, %v2476_v63, %v1769_v24 }
 0x27e   :  { %1588 = vrot.lane.b32.xlu0 %v8632_v57, %s4011_s23 }
 0x27f   :  { %v1971_v55 = vpop.permute.xlu1 %1970 }
 0x280   :  { %v2606_v2 = vsel %vm2593_vm10, %v2541_v62, %v1971_v55  ;;  %v1771_v7 = vpop.permute.xlu0 %1770  ;;  %v8643_v62 = vld [vmem:[#allocation39_spill] sm:$0xff]  ;;  %v8644_v55 = vld [vmem:[#allocation126_spill] sm:$0xff] }
 0x281   :  { %1194 = vrot.lane.b32.xlu1 %v8633_v20, %s4009_s13  ;;  %3701 = vmatprep.mubr.msk.f32.mxu0 %vm2670_vm11, %v2606_v2  ;;  %v2542_v35 = vsel %vm2528_vm9, %v2477_v38, %v1771_v7  ;;  %v2154_v2 = vsel %vm2138_vm3, %v3903_v26, %v8644_v55  ;;  %v8645_v7 = vld [vmem:[#allocation191_spill] sm:$0xff]  ;;  %v8651_v26 = vld [vmem:[#allocation128_spill] sm:$0xff] }
 0x282   :  { %1792 = vrot.lane.b32.xlu0 %v8633_v20, %s4012_s26  ;;  %v2219_v20 = vsel %vm2203_vm4, %v2154_v2, %v8645_v7  ;;  %v8652_v7 = vld [vmem:[#allocation193_spill] sm:$0xff] }
 0x283   :  { %v1373_v23 = vpop.permute.xlu1 %1372  ;;  %v2284_v21 = vsel %vm2268_vm5, %v2219_v20, %v5951_v15 }
 0x284   :  { %v1173_v16 = vpop.permute.xlu0 %1172  ;;  %v2413_v54 = vsel %vm2398_vm7, %v2348_v51, %v1373_v23 }
 0x285   :  { %1994 = vrot.lane.b32.xlu1 %v8636_v30, %s4013_s1  ;;  %v2349_v37 = vsel %vm2333_vm6, %v2284_v21, %v1173_v16 }
 0x286   :  { %1794 = vrot.lane.b32.xlu0 %v8637_v42, %s4012_s26 }
 0x287   :  { %v1375_v31 = vpop.permute.xlu1 %1374 }
 0x288   :  { %v1973_v29 = vpop.permute.xlu0 %1972  ;;  %v2414_v23 = vsel %vm2398_vm7, %v2349_v37, %v1375_v31  ;;  %v3904_v31 = vld [vmem:[%s7900_s0 + $0xc0] sm:$0xff] }
 0x289   :  { %v2607_v46 = vsel %vm2593_vm10, %v2542_v35, %v1973_v29  ;;  %1396 = vrot.lane.b32.xlu1 %v8636_v30, %s4010_s7  ;;  %v8648_v35 = vld [vmem:[#allocation129_spill] sm:$0xff] }
 0x28a   :  { %1196 = vrot.lane.b32.xlu0 %v8637_v42, %s4009_s13  ;;  %3702 = vmatmul.mubr.msk.f32.gmra.mrb[12].mxu0 %vm2670_vm11, %v2607_v46  ;;  %v2155_v29 = vsel %vm2138_vm3, %v3904_v31, %v8648_v35  ;;  %v8649_v46 = vld [vmem:[#allocation161_spill] sm:$0xff]  ;;  %v75_v35 = vld [vmem:[%s7900_s0 + $0x198] sm:$0xff] }
 0x28b   :  { %v1571_v9 = vpop.permute.xlu1 %1570 }
 0x28c   :  { %v1569_v28 = vpop.permute.xlu0 %1568  ;;  %v2479_v34 = vsel %vm2463_vm8, %v2414_v23, %v1571_v9  ;;  %v8650_v9 = vld [vmem:[#allocation194_spill] sm:$0xff] }
 0x28d   :  { %1398 = vrot.lane.b32.xlu1 %v8639_v32, %s4010_s7  ;;  %v2478_v24 = vsel %vm2463_vm8, %v2413_v54, %v1569_v28  ;;  %v2220_v28 = vsel %vm2203_vm4, %v2155_v29, %v8650_v9  ;;  %v3908_v29 = vld [vmem:[%s7900_s0 + $0xd8] sm:$0xff] }
 0x28e   :  { %1996 = vrot.lane.b32.xlu0 %v8639_v32, %s4013_s1  ;;  %v1132_v32 = vrot.slane %v3906_v44, 1  ;;  %v2285_v12 = vsel %vm2268_vm5, %v2220_v28, %v5961_v48  ;;  %v8654_v28 = vld [vmem:[#allocation196_spill] sm:$0xff] }
 0x28f   :  { %v1175_v39 = vpop.permute.xlu1 %1174 }
 0x290   :  { %v1773_v17 = vpop.permute.xlu0 %1772  ;;  %v2350_v56 = vsel %vm2333_vm6, %v2285_v12, %v1175_v39  ;;  %v1134_v48 = vsel %vm228_vm0, %v1132_v32, %v1133_v61  ;;  %v1734_v12 = vrot.slane %v75_v35, 1 }
 0x291   :  { %1594 = vrot.lane.b32.xlu1 %v8641_v50, %s4011_s23  ;;  %v2543_v25 = vsel %vm2528_vm9, %v2478_v24, %v1773_v17  ;;  %v74_v17 = vld [vmem:[%s7900_s0 + $0x190] sm:$0x3]  ;;  %v1335_v50 = vrot.slane %v3905_v14, 2  ;;  %v1334_v24 = vrot.slane %v3906_v44, 2 }
 0x292   :  { %1592 = vrot.lane.b32.xlu0 %v8642_v47, %s4011_s23 }
 0x293   :  { %v1975_v63 = vpop.permute.xlu1 %1974  ;;  %v1336_v2 = vsel %vm581_vm1, %v1334_v24, %v1335_v50 }
 0x294   :  { %v2608_v57 = vsel %vm2593_vm10, %v2543_v25, %v1975_v63  ;;  %v1775_v33 = vpop.permute.xlu0 %1774  ;;  %v1135_v63 = vrot.slane %v74_v17, 1 }
 0x295   :  { %1198 = vrot.lane.b32.xlu1 %v8643_v62, %s4009_s13  ;;  %3704 = vmatprep.mubr.msk.f32.mxu0 %vm2670_vm11, %v2608_v57  ;;  %v2544_v36 = vsel %vm2528_vm9, %v2479_v34, %v1775_v33  ;;  %v1337_v34 = vrot.slane %v74_v17, 2  ;;  %v77_v17 = vld [vmem:[%s7900_s0 + $0x1a8] sm:$0x3] }
 0x296   :  { %1796 = vrot.lane.b32.xlu0 %v8643_v62, %s4012_s26  ;;  %v3907_v62 = vld [vmem:[%s7900_s0 + $0xc8] sm:$0xff]  ;;  %v1136_v21 = vsel %vm228_vm0, %v1133_v61, %v1135_v63 }
 0x297   :  { %v1377_v59 = vpop.permute.xlu1 %1376  ;;  %v2156_v55 = vsel %vm2138_vm3, %v3907_v62, %v8651_v26  ;;  %v8656_v62 = vld [vmem:[#allocation130_spill] sm:$0xff] }
 0x298   :  { %v1177_v6 = vpop.permute.xlu0 %1176  ;;  %v2415_v54 = vsel %vm2398_vm7, %v2350_v56, %v1377_v59  ;;  %v2221_v20 = vsel %vm2203_vm4, %v2156_v55, %v8652_v7 }
 0x299   :  { %1998 = vrot.lane.b32.xlu1 %v8646_v22, %s4013_s1  ;;  %v2286_v37 = vsel %vm2268_vm5, %v2221_v20, %v5959_v45  ;;  %v1338_v45 = vsel %vm581_vm1, %v1335_v50, %v1337_v34 }
 0x29a   :  { %1798 = vrot.lane.b32.xlu0 %v8647_v27, %s4012_s26  ;;  %v2351_v23 = vsel %vm2333_vm6, %v2286_v37, %v1177_v6 }
 0x29b   :  { %v1379_v30 = vpop.permute.xlu1 %1378 }
 0x29c   :  { %v1977_v42 = vpop.permute.xlu0 %1976 }
 0x29d   :  { %v2609_v38 = vsel %vm2593_vm10, %v2544_v36, %v1977_v42  ;;  %1400 = vrot.lane.b32.xlu1 %v8646_v22, %s4010_s7 }
 0x29e   :  { %1200 = vrot.lane.b32.xlu0 %v8647_v27, %s4009_s13  ;;  %3705 = vmatmul.mubr.msk.f32.gmra.mrb[14].mxu0 %vm2670_vm11, %v2609_v38  ;;  %v2416_v27 = vsel %vm2398_vm7, %v2351_v23, %v1379_v30 }
 0x29f   :  { %v1575_v15 = vpop.permute.xlu1 %1574 }
 0x2a0   :  { %v1573_v16 = vpop.permute.xlu0 %1572  ;;  %v2481_v36 = vsel %vm2463_vm8, %v2416_v27, %v1575_v15  ;;  %v76_v15 = vld [vmem:[%s7900_s0 + $0x1a0] sm:$0xff] }
 0x2a1   :  { %1402 = vrot.lane.b32.xlu1 %v8649_v46, %s4010_s7  ;;  %v2480_v47 = vsel %vm2463_vm8, %v2415_v54, %v1573_v16  ;;  %v1735_v32 = vrot.slane %v76_v15, 1  ;;  %v1937_v24 = vrot.slane %v76_v15, 2 }
 0x2a2   :  { %2000 = vrot.lane.b32.xlu0 %v8649_v46, %s4013_s1  ;;  %v8653_v46 = vld [vmem:[#allocation131_spill] sm:$0xff] }
 0x2a3   :  { %v1179_v49 = vpop.permute.xlu1 %1178  ;;  %v2157_v9 = vsel %vm2138_vm3, %v3908_v29, %v8653_v46  ;;  %v8661_v46 = vld [vmem:[#allocation52_spill] sm:$0xff] }
 0x2a4   :  { %v1777_v51 = vpop.permute.xlu0 %1776 }
 0x2a5   :  { %1598 = vrot.lane.b32.xlu1 %v3905_v14, %s4011_s23  ;;  %v2545_v25 = vsel %vm2528_vm9, %v2480_v47, %v1777_v51  ;;  %v2222_v14 = vsel %vm2203_vm4, %v2157_v9, %v8654_v28  ;;  %v1936_v47 = vrot.slane %v75_v35, 2  ;;  %v8662_v9 = vld [vmem:[#allocation198_spill] sm:$0xff] }
 0x2a6   :  { %1596 = vrot.lane.b32.xlu0 %v3906_v44, %s4011_s23  ;;  %v2287_v61 = vsel %vm2268_vm5, %v2222_v14, %v5969_v41 }
 0x2a7   :  { %v1979_v39 = vpop.permute.xlu1 %1978  ;;  %v2352_v56 = vsel %vm2333_vm6, %v2287_v61, %v1179_v49  ;;  %v1736_v49 = vsel %vm228_vm0, %v1734_v12, %v1735_v32  ;;  %v1938_v55 = vsel %vm581_vm1, %v1936_v47, %v1937_v24  ;;  %v8664_v47 = vld [vmem:[#allocation49_spill] sm:$0xff] }
 0x2a8   :  { %v2610_v57 = vsel %vm2593_vm10, %v2545_v25, %v1979_v39  ;;  %v1779_v33 = vpop.permute.xlu0 %1778  ;;  %v1737_v25 = vrot.slane %v77_v17, 1 }
 0x2a9   :  { %1202 = vrot.lane.b32.xlu1 %v1134_v48, %s4009_s13  ;;  %3707 = vmatprep.mubr.msk.f32.mxu0 %vm2670_vm11, %v2610_v57  ;;  %v2546_v38 = vsel %vm2528_vm9, %v2481_v36, %v1779_v33  ;;  %v8655_v57 = vld [vmem:[#allocation47_spill] sm:$0xff] }
 0x2aa   :  { %1800 = vrot.lane.b32.xlu0 %v1134_v48, %s4012_s26  ;;  %v3909_v33 = vld [vmem:[%s7900_s0 + $0xe0] sm:$0xff] }
 0x2ab   :  { %v1381_v59 = vpop.permute.xlu1 %1380  ;;  %v2158_v26 = vsel %vm2138_vm3, %v3909_v33, %v8656_v62 }
 0x2ac   :  { %v1181_v22 = vpop.permute.xlu0 %1180  ;;  %v2417_v54 = vsel %vm2398_vm7, %v2352_v56, %v1381_v59  ;;  %v1738_v59 = vsel %vm228_vm0, %v1735_v32, %v1737_v25  ;;  %v8666_v25 = vld [vmem:[#allocation51_spill] sm:$0xff] }
 0x2ad   :  { %2002 = vrot.lane.b32.xlu1 %v1336_v2, %s4013_s1 }
 0x2ae   :  { %1802 = vrot.lane.b32.xlu0 %v1136_v21, %s4012_s26 }
 0x2af   :  { %v1383_v42 = vpop.permute.xlu1 %1382 }
 0x2b0   :  { %v1981_v16 = vpop.permute.xlu0 %1980 }
 0x2b1   :  { %v2611_v31 = vsel %vm2593_vm10, %v2546_v38, %v1981_v16  ;;  %1404 = vrot.lane.b32.xlu1 %v1336_v2, %s4010_s7  ;;  %v8657_v2 = vld [vmem:[#allocation195_spill] sm:$0xff]  ;;  %v1939_v38 = vrot.slane %v77_v17, 2 }
 0x2b2   :  { %1204 = vrot.lane.b32.xlu0 %v1136_v21, %s4009_s13  ;;  %3708 = vmatmul.mubr.msk.f32.gmra.mrb[16].mxu0 %vm2670_vm11, %v2611_v31  ;;  %v2223_v7 = vsel %vm2203_vm4, %v2158_v26, %v8657_v2  ;;  %v6695_v2 = vld [vmem:[%s7900_s0 + $0x1e8] sm:$0xff] }
 0x2b3   :  { %v1579_v6 = vpop.permute.xlu1 %1578  ;;  %v2288_v21 = vsel %vm2268_vm5, %v2223_v7, %v5967_v4  ;;  %v8658_v4 = vld [vmem:[#allocation44_spill] sm:$0xff] }
 0x2b4   :  { %v1577_v30 = vpop.permute.xlu0 %1576  ;;  %v2353_v23 = vsel %vm2333_vm6, %v2288_v21, %v1181_v22  ;;  %v8659_v22 = vld [vmem:[#allocation46_spill] sm:$0xff] }
 0x2b5   :  { %1406 = vrot.lane.b32.xlu1 %v1338_v45, %s4010_s7  ;;  %v2482_v50 = vsel %vm2463_vm8, %v2417_v54, %v1577_v30  ;;  %v2418_v27 = vsel %vm2398_vm7, %v2353_v23, %v1383_v42  ;;  %v1940_v30 = vsel %vm581_vm1, %v1937_v24, %v1939_v38  ;;  %v8663_v54 = vld [vmem:[#allocation42_spill] sm:$0xff]  ;;  %v8668_v23 = vld [vmem:[#allocation163_spill] sm:$0xff]  ;;  %v8669_v38 = vld [vmem:[#allocation136_spill] sm:$0xff] }
 0x2b6   :  { %2004 = vrot.lane.b32.xlu0 %v1338_v45, %s4013_s1  ;;  %v2483_v34 = vsel %vm2463_vm8, %v2418_v27, %v1579_v6  ;;  %v3910_v6 = vld [vmem:[%s7900_s0 + $0xf0] sm:$0xff] }
 0x2b7   :  { %v1183_v44 = vpop.permute.xlu1 %1182 }
 0x2b8   :  { %v1781_v51 = vpop.permute.xlu0 %1780 }
 0x2b9   :  { %1602 = vrot.lane.b32.xlu1 %v76_v15, %s4011_s23  ;;  %v2547_v41 = vsel %vm2528_vm9, %v2482_v50, %v1781_v51  ;;  %v6665_v51 = vld [vmem:[%s7900_s0 + $0x1e0] sm:$0xff] }
 0x2ba   :  { %1600 = vrot.lane.b32.xlu0 %v75_v35, %s4011_s23  ;;  %v8660_v35 = vld [vmem:[#allocation133_spill] sm:$0xff] }
 0x2bb   :  { %v1983_v48 = vpop.permute.xlu1 %1982  ;;  %v2159_v29 = vsel %vm2138_vm3, %v3910_v6, %v8660_v35  ;;  %v8671_v6 = vld [vmem:[#allocation57_spill] sm:$0xff] }
 0x2bc   :  { %v2612_v39 = vsel %vm2593_vm10, %v2547_v41, %v1983_v48  ;;  %v1783_v63 = vpop.permute.xlu0 %1782  ;;  %v2224_v28 = vsel %vm2203_vm4, %v2159_v29, %v8662_v9  ;;  %v3912_v41 = vld [vmem:[%s7900_s0 + $0xf8] sm:$0xff]  ;;  %v8665_v48 = vld [vmem:[#allocation132_spill] sm:$0xff]  ;;  %v6741_v9 = vld [vmem:[%s7902_s2] ss:$0 sm:$0xff] }
 0x2bd   :  { %1206 = vrot.lane.b32.xlu1 %v8655_v57, %s4009_s13  ;;  %3710 = vmatprep.mubr.msk.f32.mxu0 %vm2670_vm11, %v2612_v39  ;;  %v2548_v16 = vsel %vm2528_vm9, %v2483_v34, %v1783_v63  ;;  %v2289_v14 = vsel %vm2268_vm5, %v2224_v28, %v5977_v19  ;;  %v8667_v39 = vld [vmem:[#allocation197_spill] sm:$0xff]  ;;  %v6733_v29 = vld [vmem:[%s7900_s0 + $0x200] sm:$0xff] }
 0x2be   :  { %1804 = vrot.lane.b32.xlu0 %v1736_v49, %s4012_s26  ;;  %v2354_v32 = vsel %vm2333_vm6, %v2289_v14, %v1183_v44  ;;  %v2160_v49 = vsel %vm2138_vm3, %v3912_v41, %v8665_v48 }
 0x2bf   :  { %v1385_v20 = vpop.permute.xlu1 %1384  ;;  %v2225_v63 = vsel %vm2203_vm4, %v2160_v49, %v8667_v39  ;;  %v8674_v39 = vld [vmem:[#allocation54_spill] sm:$0xff] }
 0x2c0   :  { %v1185_v37 = vpop.permute.xlu0 %1184  ;;  %v2419_v56 = vsel %vm2398_vm7, %v2354_v32, %v1385_v20  ;;  %v2290_v33 = vsel %vm2268_vm5, %v2225_v63, %v5975_v60  ;;  %v3917_v32 = vld [vmem:[%s7900_s0 + $0x110] sm:$0xff] }
 0x2c1   :  { %2006 = vrot.lane.b32.xlu1 %v1938_v55, %s4013_s1  ;;  %v2355_v26 = vsel %vm2333_vm6, %v2290_v33, %v1185_v37  ;;  %v6705_v37 = vld [vmem:[%s7900_s0 + $0x1f8] sm:$0xff] }
 0x2c2   :  { %1806 = vrot.lane.b32.xlu0 %v1738_v59, %s4012_s26 }
 0x2c3   :  { %v1387_v36 = vpop.permute.xlu1 %1386 }
 0x2c4   :  { %v1985_v31 = vpop.permute.xlu0 %1984  ;;  %v2420_v55 = vsel %vm2398_vm7, %v2355_v26, %v1387_v36  ;;  %v3915_v36 = vld [vmem:[%s7900_s0 + $0x108] sm:$0xff] }
 0x2c5   :  { %v2613_v45 = vsel %vm2593_vm10, %v2548_v16, %v1985_v31  ;;  %1408 = vrot.lane.b32.xlu1 %v8658_v4, %s4010_s7  ;;  %v2161_v16 = vsel %vm2138_vm3, %v3915_v36, %v8669_v38  ;;  %v8670_v31 = vld [vmem:[#allocation200_spill] sm:$0xff] }
 0x2c6   :  { %1208 = vrot.lane.b32.xlu0 %v8659_v22, %s4009_s13  ;;  %3711 = vmatmul.mubr.msk.f32.gmra.mrb[18].mxu0 %vm2670_vm11, %v2613_v45  ;;  %v2226_v45 = vsel %vm2203_vm4, %v2161_v16, %v8670_v31 }
 0x2c7   :  { %v1583_v42 = vpop.permute.xlu1 %1582  ;;  %v2291_v4 = vsel %vm2268_vm5, %v2226_v45, %v5985_v40 }
 0x2c8   :  { %v1581_v15 = vpop.permute.xlu0 %1580  ;;  %v2485_v7 = vsel %vm2463_vm8, %v2420_v55, %v1583_v42 }
 0x2c9   :  { %1210 = vrot.lane.b32.xlu1 %v8661_v46, %s4009_s13  ;;  %v2484_v17 = vsel %vm2463_vm8, %v2419_v56, %v1581_v15 }
 0x2ca   :  { %2008 = vrot.lane.b32.xlu0 %v1940_v30, %s4013_s1 }
 0x2cb   :  { %v1187_v61 = vpop.permute.xlu1 %1186 }
 0x2cc   :  { %v1785_v12 = vpop.permute.xlu0 %1784  ;;  %v2356_v42 = vsel %vm2333_vm6, %v2291_v4, %v1187_v61 }
 0x2cd   :  { %1604 = vrot.lane.b32.xlu1 %v6665_v51, %s4011_s23  ;;  %v2549_v19 = vsel %vm2528_vm9, %v2484_v17, %v1785_v12  ;;  %v8672_v12 = vld [vmem:[#allocation135_spill] sm:$0xff] }
 0x2ce   :  { %1410 = vrot.lane.b32.xlu0 %v8663_v54, %s4010_s7  ;;  %v2162_v56 = vsel %vm2138_vm3, %v3917_v32, %v8672_v12  ;;  %v8681_v12 = vld [vmem:[#allocation203_spill] sm:$0xff] }
 0x2cf   :  { %v1987_v50 = vpop.permute.xlu1 %1986 }
 0x2d0   :  { %v2614_v44 = vsel %vm2593_vm10, %v2549_v19, %v1987_v50  ;;  %v1787_v24 = vpop.permute.xlu0 %1786  ;;  %v8673_v19 = vld [vmem:[#allocation199_spill] sm:$0xff] }
 0x2d1   :  { %1412 = vrot.lane.b32.xlu1 %v8664_v47, %s4010_s7  ;;  %3713 = vmatprep.mubr.msk.f32.mxu0 %vm2670_vm11, %v2614_v44  ;;  %v2550_v60 = vsel %vm2528_vm9, %v2485_v7, %v1787_v24  ;;  %v2227_v50 = vsel %vm2203_vm4, %v2162_v56, %v8673_v19 }
 0x2d2   :  { %1212 = vrot.lane.b32.xlu0 %v8666_v25, %s4009_s13 }
 0x2d3   :  { %v1389_v57 = vpop.permute.xlu1 %1388 }
 0x2d4   :  { %v1189_v62 = vpop.permute.xlu0 %1188  ;;  %v2421_v15 = vsel %vm2398_vm7, %v2356_v42, %v1389_v57  ;;  %v8675_v57 = vld [vmem:[#allocation56_spill] sm:$0xff]  ;;  %v6792_v42 = vld [vmem:[%s7900_s0 + $0x218] sm:$0xff] }
 0x2d5   :  { %1808 = vrot.lane.b32.xlu1 %v8661_v46, %s4012_s26 }
 0x2d6   :  { %1606 = vrot.lane.b32.xlu0 %v6695_v2, %s4011_s23 }
 0x2d7   :  { %v1391_v20 = vpop.permute.xlu1 %1390 }
 0x2d8   :  { %v1989_v59 = vpop.permute.xlu0 %1988 }
 0x2d9   :  { %v2615_v21 = vsel %vm2593_vm10, %v2550_v60, %v1989_v59  ;;  %1608 = vrot.lane.b32.xlu1 %v6705_v37, %s4011_s23  ;;  %v3918_v59 = vld [vmem:[%s7900_s0 + $0x120] sm:$0xff] }
 0x2da   :  { %1414 = vrot.lane.b32.xlu0 %v8668_v23, %s4010_s7  ;;  %3714 = vmatmul.mubr.msk.f32.gmra.mrb[20].mxu0 %vm2670_vm11, %v2615_v21  ;;  %v8676_v21 = vld [vmem:[#allocation140_spill] sm:$0xff] }
 0x2db   :  { %v1587_v27 = vpop.permute.xlu1 %1586 }
 0x2dc   :  { %v1585_v34 = vpop.permute.xlu0 %1584 }
 0x2dd   :  { %2010 = vrot.lane.b32.xlu1 %v8664_v47, %s4013_s1  ;;  %v2486_v35 = vsel %vm2463_vm8, %v2421_v15, %v1585_v34  ;;  %v2292_v47 = vsel %vm2268_vm5, %v2227_v50, %v5983_v10  ;;  %v8678_v34 = vld [vmem:[#allocation204_spill] sm:$0xff] }
 0x2de   :  { %1810 = vrot.lane.b32.xlu0 %v8666_v25, %s4012_s26  ;;  %v2357_v49 = vsel %vm2333_vm6, %v2292_v47, %v1189_v62 }
 0x2df   :  { %v1191_v22 = vpop.permute.xlu1 %1190  ;;  %v2422_v63 = vsel %vm2398_vm7, %v2357_v49, %v1391_v20 }
 0x2e0   :  { %v1789_v30 = vpop.permute.xlu0 %1788  ;;  %v2487_v33 = vsel %vm2463_vm8, %v2422_v63, %v1587_v27  ;;  %v8677_v27 = vld [vmem:[#allocation164_spill] sm:$0xff] }
 0x2e1   :  { %1812 = vrot.lane.b32.xlu1 %v8671_v6, %s4012_s26  ;;  %v2551_v40 = vsel %vm2528_vm9, %v2486_v35, %v1789_v30 }
 0x2e2   :  { %1610 = vrot.lane.b32.xlu0 %v6733_v29, %s4011_s23 }
 0x2e3   :  { %v1991_v46 = vpop.permute.xlu1 %1990 }
 0x2e4   :  { %v2616_v28 = vsel %vm2593_vm10, %v2551_v40, %v1991_v46  ;;  %v1791_v14 = vpop.permute.xlu0 %1790  ;;  %v8679_v46 = vld [vmem:[#allocation62_spill] sm:$0xff] }
 0x2e5   :  { %v3685_v61 = vpop.f32.mrb[0].mxu0  ;;  %1214 = vrot.lane.b32.xlu1 %v8671_v6, %s4009_s13  ;;  %3716 = vmatprep.mubr.msk.f32.mxu0 %vm2670_vm11, %v2616_v28  ;;  %v2552_v7 = vsel %vm2528_vm9, %v2487_v33, %v1791_v14  ;;  %v3921_v28 = vld [vmem:[%s7900_s0 + $0x128] sm:$0xff]  ;;  %v8680_v14 = vld [vmem:[#allocation138_spill] sm:$0xff] }
 0x2e6   :  { %v2939_v17 = vadd.f32 %v3685_v61, %v6741_v9  ;;  %v2933_v54 = vpop.f32.mrb[1].mxu0  ;;  %2012 = vrot.lane.b32.xlu0 %v8668_v23, %s4013_s1  ;;  %v2163_v23 = vsel %vm2138_vm3, %v3918_v59, %v8676_v21  ;;  %v2164_v61 = vsel %vm2138_vm3, %v3921_v28, %v8680_v14  ;;  %v8685_v59 = vld [vmem:[#allocation165_spill] sm:$0xff]  ;;  %v8686_v21 = vld [vmem:[#allocation208_spill] sm:$0xff] }
 0x2e7   :  { %v2934_v44 = vadd.f32 %v6741_v9, %v2933_v54  ;;  %v1393_v24 = vpop.permute.xlu1 %1392  ;;  %v2228_v36 = vsel %vm2203_vm4, %v2163_v23, %v8678_v34  ;;  %v2229_v56 = vsel %vm2203_vm4, %v2164_v61, %v8681_v12  ;;  %v8689_v61 = vld [vmem:[#allocation207_spill] sm:$0xff] }
 0x2e8   :  { %v3253_v41 = vmax.f32 %v2939_v17, 0.0  ;;  %v1193_v48 = vpop.permute.xlu0 %1192  ;;  %v2293_v38 = vsel %vm2268_vm5, %v2228_v36, %v5993_v3  ;;  %v6800_v3 = vld [vmem:[%s7900_s0 + $0x210] sm:$0xff]  ;;  %v2294_v50 = vsel %vm2268_vm5, %v2229_v56, %v5991_v5 }
 0x2e9   :  { %v3252_v25 = vmax.f32 %v2934_v44, 0.0  ;;  %2014 = vrot.lane.b32.xlu1 %v8674_v39, %s4013_s1  ;;  %v2358_v31 = vsel %vm2333_vm6, %v2293_v38, %v1191_v22 }
 0x2ea   :  { %1814 = vrot.lane.b32.xlu0 %v8675_v57, %s4012_s26  ;;  %v2423_v4 = vsel %vm2398_vm7, %v2358_v31, %v1393_v24  ;;  %v2359_v24 = vsel %vm2333_vm6, %v2294_v50, %v1193_v48 }
 0x2eb   :  { %v3316_v26 = vadd.f32 %v3253_v41, %v3252_v25  ;;  %v1395_v55 = vpop.permute.xlu1 %1394  ;;  %v8682_v41 = vld [vmem:[#allocation59_spill] sm:$0xff]  ;;  %v8683_v25 = vld [vmem:[#allocation61_spill] sm:$0xff] }
 0x2ec   :  { %v1993_v10 = vpop.permute.xlu0 %1992  ;;  %v2424_v49 = vsel %vm2398_vm7, %v2359_v24, %v1395_v55 }
 0x2ed   :  { %v2617_v60 = vsel %vm2593_vm10, %v2552_v7, %v1993_v10  ;;  %1416 = vrot.lane.b32.xlu1 %v8674_v39, %s4010_s7 }
 0x2ee   :  { %1216 = vrot.lane.b32.xlu0 %v8675_v57, %s4009_s13  ;;  %3717 = vmatmul.mubr.msk.f32.gmra.mrb[22].mxu0 %vm2670_vm11, %v2617_v60 }
 0x2ef   :  { %v1591_v62 = vpop.permute.xlu1 %1590 }
 0x2f0   :  { %v1589_v20 = vpop.permute.xlu0 %1588  ;;  %v2489_v39 = vsel %vm2463_vm8, %v2424_v49, %v1591_v62  ;;  %v8684_v62 = vld [vmem:[#allocation144_spill] sm:$0xff]  ;;  %v8691_v49 = vld [vmem:[#allocation66_spill] sm:$0xff] }
 0x2f1   :  { %1418 = vrot.lane.b32.xlu1 %v8677_v27, %s4010_s7  ;;  %v2488_v30 = vsel %vm2463_vm8, %v2423_v4, %v1589_v20 }
 0x2f2   :  { %2016 = vrot.lane.b32.xlu0 %v8677_v27, %s4013_s1 }
 0x2f3   :  { %v1195_v16 = vpop.permute.xlu1 %1194 }
 0x2f4   :  { %v1793_v45 = vpop.permute.xlu0 %1792 }
 0x2f5   :  { %1614 = vrot.lane.b32.xlu1 %v6792_v42, %s4011_s23  ;;  %v2553_v22 = vsel %vm2528_vm9, %v2488_v30, %v1793_v45  ;;  %v6854_v45 = vld [vmem:[%s7900_s0 + $0x230] sm:$0xff] }
 0x2f6   :  { %1612 = vrot.lane.b32.xlu0 %v6800_v3, %s4011_s23 }
 0x2f7   :  { %v1995_v15 = vpop.permute.xlu1 %1994 }
 0x2f8   :  { %v2618_v6 = vsel %vm2593_vm10, %v2553_v22, %v1995_v15  ;;  %v1795_v35 = vpop.permute.xlu0 %1794 }
 0x2f9   :  { %v3688_v40 = vpop.f32.mrb[2].mxu0  ;;  %1218 = vrot.lane.b32.xlu1 %v8679_v46, %s4009_s13  ;;  %3719 = vmatprep.mubr.msk.f32.mxu0 %vm2670_vm11, %v2618_v6  ;;  %v2554_v7 = vsel %vm2528_vm9, %v2489_v39, %v1795_v35  ;;  %v8687_v35 = vld [vmem:[#allocation67_spill] sm:$0xff] }
 0x2fa   :  { %v2943_v32 = vpop.f32.mrb[3].mxu0  ;;  %1816 = vrot.lane.b32.xlu0 %v8679_v46, %s4012_s26  ;;  %v2949_v17 = vadd.f32 %v3688_v40, %v6741_v9  ;;  %v3925_v40 = vld [vmem:[%s7900_s0 + $0x140] sm:$0xff]  ;;  %v8688_v46 = vld [vmem:[#allocation142_spill] sm:$0xff] }
 0x2fb   :  { %v2944_v54 = vadd.f32 %v6741_v9, %v2943_v32  ;;  %v1397_v19 = vpop.permute.xlu1 %1396  ;;  %v2166_v28 = vsel %vm2138_vm3, %v3925_v40, %v8688_v46 }
 0x2fc   :  { %v1197_v44 = vpop.permute.xlu0 %1196  ;;  %v3255_v63 = vmax.f32 %v2949_v17, 0.0  ;;  %v2231_v32 = vsel %vm2203_vm4, %v2166_v28, %v8689_v61  ;;  %v8697_v28 = vld [vmem:[#allocation211_spill] sm:$0xff] }
 0x2fd   :  { %v3254_v47 = vmax.f32 %v2944_v54, 0.0  ;;  %2018 = vrot.lane.b32.xlu1 %v8682_v41, %s4013_s1  ;;  %v2296_v54 = vsel %vm2268_vm5, %v2231_v32, %v5999_v43 }
 0x2fe   :  { %1818 = vrot.lane.b32.xlu0 %v8683_v25, %s4012_s26  ;;  %v2361_v50 = vsel %vm2333_vm6, %v2296_v54, %v1197_v44 }
 0x2ff   :  { %v3317_v57 = vadd.f32 %v3316_v26, %v3254_v47  ;;  %v1399_v33 = vpop.permute.xlu1 %1398  ;;  %v3922_v26 = vld [vmem:[%s7900_s0 + $0x138] sm:$0xff]  ;;  %v8690_v47 = vld [vmem:[#allocation64_spill] sm:$0xff] }
 0x300   :  { %v1997_v5 = vpop.permute.xlu0 %1996  ;;  %v2165_v20 = vsel %vm2138_vm3, %v3922_v26, %v8684_v62  ;;  %v8693_v26 = vld [vmem:[#allocation166_spill] sm:$0xff]  ;;  %v8694_v62 = vld [vmem:[#allocation212_spill] sm:$0xff] }
 0x301   :  { %v2619_v10 = vsel %vm2593_vm10, %v2554_v7, %v1997_v5  ;;  %1420 = vrot.lane.b32.xlu1 %v8682_v41, %s4010_s7  ;;  %v3318_v48 = vadd.f32 %v3317_v57, %v3255_v63  ;;  %v2230_v23 = vsel %vm2203_vm4, %v2165_v20, %v8686_v21  ;;  %v2426_v41 = vsel %vm2398_vm7, %v2361_v50, %v1399_v33 }
 0x302   :  { %1220 = vrot.lane.b32.xlu0 %v8683_v25, %s4009_s13  ;;  %3720 = vmatmul.mubr.msk.f32.gmra.mrb[24].mxu0 %vm2670_vm11, %v2619_v10  ;;  %v2295_v27 = vsel %vm2268_vm5, %v2230_v23, %v6001_v13  ;;  %v6862_v13 = vld [vmem:[%s7900_s0 + $0x228] sm:$0xff] }
 0x303   :  { %v1595_v55 = vpop.permute.xlu1 %1594  ;;  %v2360_v36 = vsel %vm2333_vm6, %v2295_v27, %v1195_v16 }
 0x304   :  { %v1593_v60 = vpop.permute.xlu0 %1592  ;;  %v2425_v31 = vsel %vm2398_vm7, %v2360_v36, %v1397_v19  ;;  %v2491_v25 = vsel %vm2463_vm8, %v2426_v41, %v1595_v55  ;;  %v8692_v55 = vld [vmem:[#allocation148_spill] sm:$0xff]  ;;  %v8699_v41 = vld [vmem:[#allocation71_spill] sm:$0xff] }
 0x305   :  { %1422 = vrot.lane.b32.xlu1 %v8685_v59, %s4010_s7  ;;  %v2490_v4 = vsel %vm2463_vm8, %v2425_v31, %v1593_v60 }
 0x306   :  { %2020 = vrot.lane.b32.xlu0 %v8685_v59, %s4013_s1 }
 0x307   :  { %v1199_v34 = vpop.permute.xlu1 %1198 }
 0x308   :  { %v1797_v38 = vpop.permute.xlu0 %1796 }
 0x309   :  { %1618 = vrot.lane.b32.xlu1 %v6854_v45, %s4011_s23  ;;  %v2555_v16 = vsel %vm2528_vm9, %v2490_v4, %v1797_v38  ;;  %v6916_v38 = vld [vmem:[%s7900_s0 + $0x248] sm:$0xff] }
 0x30a   :  { %1616 = vrot.lane.b32.xlu0 %v6862_v13, %s4011_s23 }
 0x30b   :  { %v1999_v30 = vpop.permute.xlu1 %1998 }
 0x30c   :  { %v2620_v22 = vsel %vm2593_vm10, %v2555_v16, %v1999_v30  ;;  %v1799_v15 = vpop.permute.xlu0 %1798 }
 0x30d   :  { %v3691_v6 = vpop.f32.mrb[4].mxu0  ;;  %1222 = vrot.lane.b32.xlu1 %v8687_v35, %s4009_s13  ;;  %3722 = vmatprep.mubr.msk.f32.mxu0 %vm2670_vm11, %v2620_v22  ;;  %v2556_v7 = vsel %vm2528_vm9, %v2491_v25, %v1799_v15  ;;  %v8695_v15 = vld [vmem:[#allocation72_spill] sm:$0xff] }
 0x30e   :  { %v2953_v14 = vpop.f32.mrb[5].mxu0  ;;  %1820 = vrot.lane.b32.xlu0 %v8687_v35, %s4012_s26  ;;  %v2959_v12 = vadd.f32 %v3691_v6, %v6741_v9  ;;  %v3929_v6 = vld [vmem:[%s7900_s0 + $0x158] sm:$0xff] }
 0x30f   :  { %v2954_v56 = vadd.f32 %v6741_v9, %v2953_v14  ;;  %v1401_v17 = vpop.permute.xlu1 %1400  ;;  %v8696_v35 = vld [vmem:[#allocation146_spill] sm:$0xff] }
 0x310   :  { %v1201_v19 = vpop.permute.xlu0 %1200  ;;  %v3257_v39 = vmax.f32 %v2959_v12, 0.0  ;;  %v2168_v40 = vsel %vm2138_vm3, %v3929_v6, %v8696_v35 }
 0x311   :  { %v3256_v24 = vmax.f32 %v2954_v56, 0.0  ;;  %2022 = vrot.lane.b32.xlu1 %v8690_v47, %s4013_s1  ;;  %v2233_v14 = vsel %vm2203_vm4, %v2168_v40, %v8697_v28  ;;  %v8705_v40 = vld [vmem:[#allocation215_spill] sm:$0xff] }
 0x312   :  { %1822 = vrot.lane.b32.xlu0 %v8691_v49, %s4012_s26  ;;  %v2298_v56 = vsel %vm2268_vm5, %v2233_v14, %v6007_v52 }
 0x313   :  { %v3319_v63 = vadd.f32 %v3318_v48, %v3256_v24  ;;  %v1403_v57 = vpop.permute.xlu1 %1402  ;;  %v3926_v48 = vld [vmem:[%s7900_s0 + $0x150] sm:$0xff]  ;;  %v2363_v54 = vsel %vm2333_vm6, %v2298_v56, %v1201_v19 }
 0x314   :  { %v2001_v43 = vpop.permute.xlu0 %2000  ;;  %v2167_v60 = vsel %vm2138_vm3, %v3926_v48, %v8692_v55  ;;  %v8698_v24 = vld [vmem:[#allocation69_spill] sm:$0xff]  ;;  %v8701_v48 = vld [vmem:[#allocation167_spill] sm:$0xff]  ;;  %v8702_v55 = vld [vmem:[#allocation216_spill] sm:$0xff] }
 0x315   :  { %v2621_v5 = vsel %vm2593_vm10, %v2556_v7, %v2001_v43  ;;  %1424 = vrot.lane.b32.xlu1 %v8690_v47, %s4010_s7  ;;  %v3320_v44 = vadd.f32 %v3319_v63, %v3257_v39  ;;  %v2232_v20 = vsel %vm2203_vm4, %v2167_v60, %v8694_v62  ;;  %v2428_v47 = vsel %vm2398_vm7, %v2363_v54, %v1403_v57 }
 0x316   :  { %1224 = vrot.lane.b32.xlu0 %v8691_v49, %s4009_s13  ;;  %3723 = vmatmul.mubr.msk.f32.gmra.mrb[26].mxu0 %vm2670_vm11, %v2621_v5  ;;  %v2297_v59 = vsel %vm2268_vm5, %v2232_v20, %v6009_v0  ;;  %v6924_v0 = vld [vmem:[%s7900_s0 + $0x240] sm:$0xff] }
 0x317   :  { %v1599_v33 = vpop.permute.xlu1 %1598  ;;  %v2362_v23 = vsel %vm2333_vm6, %v2297_v59, %v1199_v34 }
 0x318   :  { %v1597_v10 = vpop.permute.xlu0 %1596  ;;  %v2427_v36 = vsel %vm2398_vm7, %v2362_v23, %v1401_v17  ;;  %v2493_v49 = vsel %vm2463_vm8, %v2428_v47, %v1599_v33  ;;  %v8700_v33 = vld [vmem:[#allocation152_spill] sm:$0xff] }
 0x319   :  { %1426 = vrot.lane.b32.xlu1 %v8693_v26, %s4010_s7  ;;  %v2492_v31 = vsel %vm2463_vm8, %v2427_v36, %v1597_v10  ;;  %v8707_v47 = vld [vmem:[#allocation76_spill] sm:$0xff] }
 0x31a   :  { %2024 = vrot.lane.b32.xlu0 %v8693_v26, %s4013_s1 }
 0x31b   :  { %v1203_v21 = vpop.permute.xlu1 %1202 }
 0x31c   :  { %v1801_v27 = vpop.permute.xlu0 %1800 }
 0x31d   :  { %1622 = vrot.lane.b32.xlu1 %v6916_v38, %s4011_s23  ;;  %v2557_v34 = vsel %vm2528_vm9, %v2492_v31, %v1801_v27  ;;  %v6980_v27 = vld [vmem:[%s7900_s0 + $0x260] sm:$0xff] }
 0x31e   :  { %1620 = vrot.lane.b32.xlu0 %v6924_v0, %s4011_s23 }
 0x31f   :  { %v2003_v4 = vpop.permute.xlu1 %2002 }
 0x320   :  { %v2622_v16 = vsel %vm2593_vm10, %v2557_v34, %v2003_v4  ;;  %v1803_v30 = vpop.permute.xlu0 %1802 }
 0x321   :  { %v3694_v22 = vpop.f32.mrb[6].mxu0  ;;  %1226 = vrot.lane.b32.xlu1 %v8695_v15, %s4009_s13  ;;  %3725 = vmatprep.mubr.msk.f32.mxu0 %vm2670_vm11, %v2622_v16  ;;  %v2558_v7 = vsel %vm2528_vm9, %v2493_v49, %v1803_v30  ;;  %v8703_v30 = vld [vmem:[#allocation77_spill] sm:$0xff] }
 0x322   :  { %v2963_v46 = vpop.f32.mrb[7].mxu0  ;;  %1824 = vrot.lane.b32.xlu0 %v8695_v15, %s4012_s26  ;;  %v2969_v61 = vadd.f32 %v3694_v22, %v6741_v9  ;;  %v3933_v22 = vld [vmem:[%s7900_s0 + $0x170] sm:$0xff] }
 0x323   :  { %v2964_v32 = vadd.f32 %v6741_v9, %v2963_v46  ;;  %v1405_v12 = vpop.permute.xlu1 %1404  ;;  %v8704_v15 = vld [vmem:[#allocation150_spill] sm:$0xff] }
 0x324   :  { %v1205_v17 = vpop.permute.xlu0 %1204  ;;  %v3259_v25 = vmax.f32 %v2969_v61, 0.0  ;;  %v2170_v6 = vsel %vm2138_vm3, %v3933_v22, %v8704_v15 }
 0x325   :  { %v3258_v50 = vmax.f32 %v2964_v32, 0.0  ;;  %2026 = vrot.lane.b32.xlu1 %v8698_v24, %s4013_s1  ;;  %v2235_v46 = vsel %vm2203_vm4, %v2170_v6, %v8705_v40 }
 0x326   :  { %1826 = vrot.lane.b32.xlu0 %v8699_v41, %s4012_s26  ;;  %v2300_v32 = vsel %vm2268_vm5, %v2235_v46, %v6015_v18 }
 0x327   :  { %v3321_v39 = vadd.f32 %v3320_v44, %v3258_v50  ;;  %v1407_v63 = vpop.permute.xlu1 %1406  ;;  %v3930_v44 = vld [vmem:[%s7900_s0 + $0x168] sm:$0xff]  ;;  %v2365_v56 = vsel %vm2333_vm6, %v2300_v32, %v1205_v17  ;;  %v8706_v50 = vld [vmem:[#allocation74_spill] sm:$0xff] }
 0x328   :  { %v2005_v52 = vpop.permute.xlu0 %2004  ;;  %v2169_v10 = vsel %vm2138_vm3, %v3930_v44, %v8700_v33  ;;  %v7037_v44 = vld [vmem:[%s7900_s0 + $0x278] sm:$0xff]  ;;  %v7044_v33 = vld [vmem:[%s7900_s0 + $0x270] sm:$0xff] }
 0x329   :  { %v2623_v43 = vsel %vm2593_vm10, %v2558_v7, %v2005_v52  ;;  %1428 = vrot.lane.b32.xlu1 %v8698_v24, %s4010_s7  ;;  %v3322_v19 = vadd.f32 %v3321_v39, %v3259_v25  ;;  %v2234_v60 = vsel %vm2203_vm4, %v2169_v10, %v8702_v55  ;;  %v2430_v24 = vsel %vm2398_vm7, %v2365_v56, %v1407_v63  ;;  %v3936_v55 = vld [vmem:[%s7900_s0 + $0x1b0] sm:$0xff] }
 0x32a   :  { %1228 = vrot.lane.b32.xlu0 %v8699_v41, %s4009_s13  ;;  %3726 = vmatmul.mubr.msk.f32.gmra.mrb[28].mxu0 %vm2670_vm11, %v2623_v43  ;;  %v2299_v26 = vsel %vm2268_vm5, %v2234_v60, %v6017_v53  ;;  %v6988_v53 = vld [vmem:[%s7900_s0 + $0x258] sm:$0xff]  ;;  %v8709_v60 = vld [vmem:[#allocation156_spill] sm:$0xff] }
 0x32b   :  { %v1603_v57 = vpop.permute.xlu1 %1602  ;;  %v2364_v20 = vsel %vm2333_vm6, %v2299_v26, %v1203_v21  ;;  %v2171_v26 = vsel %vm2138_vm3, %v3936_v55, %v8709_v60  ;;  %v8719_v55 = vld [vmem:[#allocation224_spill] sm:$0xff] }
 0x32c   :  { %v1601_v5 = vpop.permute.xlu0 %1600  ;;  %v2429_v23 = vsel %vm2398_vm7, %v2364_v20, %v1405_v12  ;;  %v2495_v41 = vsel %vm2463_vm8, %v2430_v24, %v1603_v57 }
 0x32d   :  { %1430 = vrot.lane.b32.xlu1 %v8701_v48, %s4010_s7  ;;  %v2494_v36 = vsel %vm2463_vm8, %v2429_v23, %v1601_v5  ;;  %v8711_v23 = vld [vmem:[#allocation220_spill] sm:$0xff] }
 0x32e   :  { %2028 = vrot.lane.b32.xlu0 %v8701_v48, %s4013_s1 }
 0x32f   :  { %v6973_v62 = vpop.permute.xlu1 %1206 }
 0x330   :  { %v1805_v59 = vpop.permute.xlu0 %1804 }
 0x331   :  { %1626 = vrot.lane.b32.xlu1 %v6980_v27, %s4011_s23  ;;  %v2559_v21 = vsel %vm2528_vm9, %v2494_v36, %v1805_v59  ;;  %v8710_v59 = vld [vmem:[#allocation82_spill] sm:$0xff]  ;;  %v2236_v36 = vsel %vm2203_vm4, %v2171_v26, %v8711_v23 }
 0x332   :  { %1624 = vrot.lane.b32.xlu0 %v6988_v53, %s4011_s23 }
 0x333   :  { %v2007_v31 = vpop.permute.xlu1 %2006 }
 0x334   :  { %v2624_v34 = vsel %vm2593_vm10, %v2559_v21, %v2007_v31  ;;  %v1807_v4 = vpop.permute.xlu0 %1806  ;;  %v2301_v31 = vsel %vm2268_vm5, %v2236_v36, %v6025_v8  ;;  %v8713_v8 = vld [vmem:[#allocation81_spill] sm:$0xff] }
 0x335   :  { %v3697_v16 = vpop.f32.mrb[8].mxu0  ;;  %1230 = vrot.lane.b32.xlu1 %v8703_v30, %s4009_s13  ;;  %3728 = vmatprep.mubr.msk.f32.mxu0 %vm2670_vm11, %v2624_v34  ;;  %v2560_v18 = vsel %vm2528_vm9, %v2495_v41, %v1807_v4 }
 0x336   :  { %v2973_v35 = vpop.f32.mrb[9].mxu0  ;;  %1828 = vrot.lane.b32.xlu0 %v8703_v30, %s4012_s26  ;;  %v2979_v28 = vadd.f32 %v3697_v16, %v6741_v9  ;;  %v2366_v30 = vsel %vm2333_vm6, %v2301_v31, %v6973_v62 }
 0x337   :  { %v2974_v14 = vadd.f32 %v6741_v9, %v2973_v35  ;;  %v1409_v61 = vpop.permute.xlu1 %1408  ;;  %v8712_v35 = vld [vmem:[#allocation79_spill] sm:$0xff] }
 0x338   :  { %v7010_v12 = vpop.permute.xlu0 %1208  ;;  %v3261_v49 = vmax.f32 %v2979_v28, 0.0  ;;  %v2431_v15 = vsel %vm2398_vm7, %v2366_v30, %v1409_v61 }
 0x339   :  { %v3260_v54 = vmax.f32 %v2974_v14, 0.0  ;;  %2030 = vrot.lane.b32.xlu1 %v8706_v50, %s4013_s1 }
 0x33a   :  { %1830 = vrot.lane.b32.xlu0 %v8707_v47, %s4012_s26 }
 0x33b   :  { %v3323_v25 = vadd.f32 %v3322_v19, %v3260_v54  ;;  %v7019_v39 = vpop.permute.xlu1 %1210  ;;  %v8708_v19 = vld [vmem:[#allocation168_spill] sm:$0xff]  ;;  %v3937_v54 = vld [vmem:[%s7900_s0 + $0x1b8] sm:$0xff] }
 0x33c   :  { %v2009_v7 = vpop.permute.xlu0 %2008 }
 0x33d   :  { %v2625_v17 = vsel %vm2593_vm10, %v2560_v18, %v2009_v7  ;;  %1432 = vrot.lane.b32.xlu1 %v8706_v50, %s4010_s7  ;;  %v3324_v52 = vadd.f32 %v3323_v25, %v3261_v49  ;;  %v8714_v50 = vld [vmem:[#allocation154_spill] sm:$0xff]  ;;  %v8716_v25 = vld [vmem:[#allocation9_spill] sm:$0xff] }
 0x33e   :  { %1232 = vrot.lane.b32.xlu0 %v8707_v47, %s4009_s13  ;;  %3729 = vmatmul.mubr.msk.f32.gmra.mrb[30].mxu0 %vm2670_vm11, %v2625_v17  ;;  %v2172_v24 = vsel %vm2138_vm3, %v3937_v54, %v8714_v50  ;;  %v8715_v47 = vld [vmem:[#allocation219_spill] sm:$0xff]  ;;  %v3938_v17 = vld [vmem:[%s7900_s0 + $0x1c8] sm:$0xff] }
 0x33f   :  { %v1605_v63 = vpop.permute.xlu1 %1604  ;;  %v2237_v41 = vsel %vm2203_vm4, %v2172_v24, %v8715_v47  ;;  %v8724_v50 = vld [vmem:[#allocation8_spill] sm:$0xff] }
 0x340   :  { %v1411_v43 = vpop.permute.xlu0 %1410  ;;  %v2496_v40 = vsel %vm2463_vm8, %v2431_v15, %v1605_v63  ;;  %v2302_v18 = vsel %vm2268_vm5, %v2237_v41, %v8716_v25  ;;  %v8725_v25 = vld [vmem:[#allocation84_spill] sm:$0xff] }
 0x341   :  { %1434 = vrot.lane.b32.xlu1 %v8708_v19, %s4010_s7 }
 0x342   :  { %2032 = vrot.lane.b32.xlu0 %v8708_v19, %s4013_s1  ;;  %v2367_v19 = vsel %vm2333_vm6, %v2302_v18, %v7010_v12 }
 0x343   :  { %v1413_v57 = vpop.permute.xlu1 %1412  ;;  %v2432_v26 = vsel %vm2398_vm7, %v2367_v19, %v1411_v43  ;;  %v7114_v43 = vld [vmem:[%s7900_s0 + $0x290] sm:$0xff] }
 0x344   :  { %v7032_v5 = vpop.permute.xlu0 %1212 }
 0x345   :  { %1630 = vrot.lane.b32.xlu1 %v7037_v44, %s4011_s23 }
 0x346   :  { %1628 = vrot.lane.b32.xlu0 %v7044_v33, %s4011_s23 }
 0x347   :  { %v1809_v10 = vpop.permute.xlu1 %1808 }
 0x348   :  { %v1607_v48 = vpop.permute.xlu0 %1606  ;;  %v2561_v46 = vsel %vm2528_vm9, %v2496_v40, %v1809_v10  ;;  %v8718_v10 = vld [vmem:[#allocation169_spill] sm:$0xff]  ;;  %v8721_v40 = vld [vmem:[#allocation87_spill] sm:$0xff] }
 0x349   :  { %v3700_v20 = vpop.f32.mrb[10].mxu0  ;;  %1234 = vrot.lane.b32.xlu1 %v8710_v59, %s4009_s13  ;;  %v2497_v23 = vsel %vm2463_vm8, %v2432_v26, %v1607_v48 }
 0x34a   :  { %v2983_v21 = vpop.f32.mrb[11].mxu0  ;;  %1832 = vrot.lane.b32.xlu0 %v8710_v59, %s4012_s26  ;;  %v2989_v34 = vadd.f32 %v3700_v20, %v6741_v9  ;;  %v8720_v20 = vld [vmem:[#allocation11_spill] sm:$0xff] }
 0x34b   :  { %v2984_v4 = vadd.f32 %v6741_v9, %v2983_v21  ;;  %v1609_v16 = vpop.permute.xlu1 %1608 }
 0x34c   :  { %v7065_v22 = vpop.permute.xlu0 %1414  ;;  %v3263_v28 = vmax.f32 %v2989_v34, 0.0 }
 0x34d   :  { %v3262_v6 = vmax.f32 %v2984_v4, 0.0  ;;  %2034 = vrot.lane.b32.xlu1 %v8712_v35, %s4013_s1 }
 0x34e   :  { %1834 = vrot.lane.b32.xlu0 %v8713_v8, %s4012_s26 }
 0x34f   :  { %v3325_v14 = vadd.f32 %v3324_v52, %v3262_v6  ;;  %v2011_v32 = vpop.permute.xlu1 %2010  ;;  %v8717_v52 = vld [vmem:[#allocation160_spill] sm:$0xff] }
 0x350   :  { %v2626_v62 = vsel %vm2593_vm10, %v2561_v46, %v2011_v32  ;;  %v1811_v56 = vpop.permute.xlu0 %1810  ;;  %v2173_v63 = vsel %vm2138_vm3, %v3938_v17, %v8717_v52  ;;  %v8726_v17 = vld [vmem:[#allocation86_spill] sm:$0xff] }
 0x351   :  { %1436 = vrot.lane.b32.xlu1 %v8712_v35, %s4010_s7  ;;  %3731 = vmatprep.mubr.msk.f32.mxu0 %vm2670_vm11, %v2626_v62  ;;  %v3326_v61 = vadd.f32 %v3325_v14, %v3263_v28  ;;  %v2238_v60 = vsel %vm2203_vm4, %v2173_v63, %v8719_v55  ;;  %v2562_v21 = vsel %vm2528_vm9, %v2497_v23, %v1811_v56  ;;  %v8723_v14 = vld [vmem:[#allocation223_spill] sm:$0xff]  ;;  %v8729_v23 = vld [vmem:[#allocation228_spill] sm:$0xff] }
 0x352   :  { %1236 = vrot.lane.b32.xlu0 %v8713_v8, %s4009_s13  ;;  %v2303_v59 = vsel %vm2268_vm5, %v2238_v60, %v8720_v20  ;;  %v8722_v8 = vld [vmem:[#allocation158_spill] sm:$0xff] }
 0x353   :  { %v1813_v49 = vpop.permute.xlu1 %1812  ;;  %v2368_v12 = vsel %vm2333_vm6, %v2303_v59, %v7019_v39  ;;  %v7122_v39 = vld [vmem:[%s7900_s0 + $0x288] sm:$0xff]  ;;  %v8728_v59 = vld [vmem:[#allocation170_spill] sm:$0xff] }
 0x354   :  { %v1611_v7 = vpop.permute.xlu0 %1610  ;;  %v2433_v34 = vsel %vm2398_vm7, %v2368_v12, %v1413_v57 }
 0x355   :  { %1438 = vrot.lane.b32.xlu1 %v8718_v10, %s4010_s7  ;;  %v2498_v48 = vsel %vm2463_vm8, %v2433_v34, %v1609_v16  ;;  %v3941_v16 = vld [vmem:[%s7900_s0 + $0x1d0] sm:$0xff] }
 0x356   :  { %2036 = vrot.lane.b32.xlu0 %v8718_v10, %s4013_s1  ;;  %v2563_v57 = vsel %vm2528_vm9, %v2498_v48, %v1813_v49  ;;  %v2174_v46 = vsel %vm2138_vm3, %v3941_v16, %v8722_v8  ;;  %v8731_v16 = vld [vmem:[#allocation36_spill] sm:$0xff] }
 0x357   :  { %v1215_v36 = vpop.permute.xlu1 %1214  ;;  %v2239_v32 = vsel %vm2203_vm4, %v2174_v46, %v8723_v14  ;;  %v2176_v8 = vsel %vm2138_vm3, %v6695_v2, %v8731_v16  ;;  %v8734_v2 = vld [vmem:[#allocation89_spill] sm:$0xff]  ;;  %v8741_v16 = vld [vmem:[#allocation40_spill] sm:$0xff] }
 0x358   :  { %v2013_v31 = vpop.permute.xlu0 %2012  ;;  %v2304_v24 = vsel %vm2268_vm5, %v2239_v32, %v8724_v50 }
 0x359   :  { %v2627_v4 = vsel %vm2593_vm10, %v2562_v21, %v2013_v31  ;;  %1634 = vrot.lane.b32.xlu1 %v7114_v43, %s4011_s23  ;;  %v2369_v41 = vsel %vm2333_vm6, %v2304_v24, %v7032_v5 }
 0x35a   :  { %1632 = vrot.lane.b32.xlu0 %v7122_v39, %s4011_s23  ;;  %3732 = vmatmul.mubr.msk.f32.gmra.mrb[32].mxu0 %vm2670_vm11, %v2627_v4  ;;  %v2434_v18 = vsel %vm2398_vm7, %v2369_v41, %v7065_v22 }
 0x35b   :  { %v2015_v30 = vpop.permute.xlu1 %2014  ;;  %v2499_v52 = vsel %vm2463_vm8, %v2434_v18, %v1611_v7  ;;  %v8727_v7 = vld [vmem:[#allocation37_spill] sm:$0xff]  ;;  %v8735_v18 = vld [vmem:[#allocation91_spill] sm:$0xff] }
 0x35c   :  { %v1815_v15 = vpop.permute.xlu0 %1814  ;;  %v2628_v6 = vsel %vm2593_vm10, %v2563_v57, %v2015_v30 }
 0x35d   :  { %v3703_v35 = vpop.f32.mrb[12].mxu0  ;;  %1238 = vrot.lane.b32.xlu1 %v8721_v40, %s4009_s13  ;;  %3734 = vmatprep.mubr.msk.f32.mxu1 %vm2670_vm11, %v2628_v6  ;;  %v2564_v55 = vsel %vm2528_vm9, %v2499_v52, %v1815_v15 }
 0x35e   :  { %v2993_v28 = vpop.f32.mrb[13].mxu0  ;;  %1836 = vrot.lane.b32.xlu0 %v8721_v40, %s4012_s26  ;;  %v2999_v62 = vadd.f32 %v3703_v35, %v6741_v9  ;;  %v8730_v40 = vld [vmem:[#allocation92_spill] sm:$0xff] }
 0x35f   :  { %v2994_v56 = vadd.f32 %v6741_v9, %v2993_v28  ;;  %v1417_v54 = vpop.permute.xlu1 %1416  ;;  %v8732_v28 = vld [vmem:[#allocation227_spill] sm:$0xff] }
 0x360   :  { %v1217_v47 = vpop.permute.xlu0 %1216  ;;  %v3265_v63 = vmax.f32 %v2999_v62, 0.0  ;;  %v2241_v14 = vsel %vm2203_vm4, %v2176_v8, %v8732_v28  ;;  %v2178_v8 = vsel %vm2138_vm3, %v6733_v29, %v8741_v16  ;;  %v8742_v28 = vld [vmem:[#allocation229_spill] sm:$0xff]  ;;  %v8744_v29 = vld [vmem:[#allocation94_spill] sm:$0xff]  ;;  %v8751_v16 = vld [vmem:[#allocation43_spill] sm:$0xff] }
 0x361   :  { %v3264_v49 = vmax.f32 %v2994_v56, 0.0  ;;  %2038 = vrot.lane.b32.xlu1 %v8725_v25, %s4013_s1 }
 0x362   :  { %1838 = vrot.lane.b32.xlu0 %v8726_v17, %s4012_s26 }
 0x363   :  { %v3327_v19 = vadd.f32 %v3326_v61, %v3264_v49  ;;  %v1419_v10 = vpop.permute.xlu1 %1418  ;;  %v2175_v61 = vsel %vm2138_vm3, %v6665_v51, %v8727_v7  ;;  %v7177_v51 = vld [vmem:[%s7900_s0 + $0x2a8] sm:$0xff]  ;;  %v8737_v7 = vld [vmem:[#allocation171_spill] sm:$0xff] }
 0x364   :  { %v2017_v60 = vpop.permute.xlu0 %2016  ;;  %v2240_v12 = vsel %vm2203_vm4, %v2175_v61, %v8729_v23  ;;  %v8738_v61 = vld [vmem:[#allocation230_spill] sm:$0xff]  ;;  %v8739_v23 = vld [vmem:[#allocation12_spill] sm:$0xff] }
 0x365   :  { %v2629_v5 = vsel %vm2593_vm10, %v2564_v55, %v2017_v60  ;;  %1440 = vrot.lane.b32.xlu1 %v8725_v25, %s4010_s7  ;;  %v3328_v26 = vadd.f32 %v3327_v19, %v3265_v63  ;;  %v2305_v21 = vsel %vm2268_vm5, %v2240_v12, %v6041_v1  ;;  %v7185_v1 = vld [vmem:[%s7900_s0 + $0x2a0] sm:$0xff] }
 0x366   :  { %1240 = vrot.lane.b32.xlu0 %v8726_v17, %s4009_s13  ;;  %3735 = vmatmul.mubr.msk.f32.vlgmr.msra.gmra.mrb[0].mxu1 %vm2670_vm11, %v2629_v5  ;;  %v2370_v34 = vsel %vm2333_vm6, %v2305_v21, %v1215_v36 }
 0x367   :  { %v1615_v22 = vpop.permute.xlu1 %1614  ;;  %v2435_v48 = vsel %vm2398_vm7, %v2370_v34, %v1417_v54  ;;  %v8733_v54 = vld [vmem:[#allocation10_spill] sm:$0xff] }
 0x368   :  { %v1613_v20 = vpop.permute.xlu0 %1612  ;;  %v2306_v50 = vsel %vm2268_vm5, %v2241_v14, %v8733_v54  ;;  %v2243_v14 = vsel %vm2203_vm4, %v2178_v8, %v8742_v28  ;;  %v8743_v54 = vld [vmem:[#allocation13_spill] sm:$0xff]  ;;  %v2180_v8 = vsel %vm2138_vm3, %v6792_v42, %v8751_v16  ;;  %v8752_v28 = vld [vmem:[#allocation231_spill] sm:$0xff] }
 0x369   :  { %1442 = vrot.lane.b32.xlu1 %v8728_v59, %s4010_s7  ;;  %v2500_v57 = vsel %vm2463_vm8, %v2435_v48, %v1613_v20  ;;  %v2371_v41 = vsel %vm2333_vm6, %v2306_v50, %v1217_v47  ;;  %v2308_v50 = vsel %vm2268_vm5, %v2243_v14, %v8743_v54  ;;  %v2245_v14 = vsel %vm2203_vm4, %v2180_v8, %v8752_v28  ;;  %v8753_v54 = vld [vmem:[#allocation15_spill] sm:$0xff]  ;;  %v8761_v8 = vld [vmem:[#allocation233_spill] sm:$0xff] }
 0x36a   :  { %2040 = vrot.lane.b32.xlu0 %v8728_v59, %s4013_s1  ;;  %v2436_v25 = vsel %vm2398_vm7, %v2371_v41, %v1419_v10  ;;  %v8754_v42 = vld [vmem:[#allocation99_spill] sm:$0xff] }
 0x36b   :  { %v1219_v31 = vpop.permute.xlu1 %1218  ;;  %v2501_v17 = vsel %vm2463_vm8, %v2436_v25, %v1615_v22  ;;  %v8736_v22 = vld [vmem:[#allocation41_spill] sm:$0xff] }
 0x36c   :  { %v1817_v4 = vpop.permute.xlu0 %1816 }
 0x36d   :  { %1638 = vrot.lane.b32.xlu1 %v7177_v51, %s4011_s23  ;;  %v2565_v36 = vsel %vm2528_vm9, %v2500_v57, %v1817_v4 }
 0x36e   :  { %1636 = vrot.lane.b32.xlu0 %v7185_v1, %s4011_s23 }
 0x36f   :  { %v2019_v30 = vpop.permute.xlu1 %2018 }
 0x370   :  { %v2630_v15 = vsel %vm2593_vm10, %v2565_v36, %v2019_v30  ;;  %v1819_v6 = vpop.permute.xlu0 %1818  ;;  %v7243_v36 = vld [vmem:[%s7900_s0 + $0x2b8] sm:$0xff] }
 0x371   :  { %v3706_v35 = vpop.f32.mrb[14].mxu0  ;;  %1242 = vrot.lane.b32.xlu1 %v8730_v40, %s4009_s13  ;;  %3737 = vmatprep.mubr.msk.f32.mxu1 %vm2670_vm11, %v2630_v15  ;;  %v2566_v55 = vsel %vm2528_vm9, %v2501_v17, %v1819_v6 }
 0x372   :  { %v3003_v46 = vpop.f32.mrb[15].mxu0  ;;  %1840 = vrot.lane.b32.xlu0 %v8730_v40, %s4012_s26  ;;  %v3009_v32 = vadd.f32 %v3706_v35, %v6741_v9  ;;  %v8740_v40 = vld [vmem:[#allocation97_spill] sm:$0xff] }
 0x373   :  { %v3004_v62 = vadd.f32 %v6741_v9, %v3003_v46  ;;  %v1421_v56 = vpop.permute.xlu1 %1420 }
 0x374   :  { %v1221_v24 = vpop.permute.xlu0 %1220  ;;  %v3267_v52 = vmax.f32 %v3009_v32, 0.0 }
 0x375   :  { %v3266_v49 = vmax.f32 %v3004_v62, 0.0  ;;  %2042 = vrot.lane.b32.xlu1 %v8734_v2, %s4013_s1 }
 0x376   :  { %1842 = vrot.lane.b32.xlu0 %v8735_v18, %s4012_s26 }
 0x377   :  { %v3329_v63 = vadd.f32 %v3328_v26, %v3266_v49  ;;  %v1423_v19 = vpop.permute.xlu1 %1422  ;;  %v2177_v26 = vsel %vm2138_vm3, %v6705_v37, %v8736_v22  ;;  %v7235_v37 = vld [vmem:[%s7900_s0 + $0x2c0] sm:$0xff]  ;;  %v2373_v49 = vsel %vm2333_vm6, %v2308_v50, %v1221_v24  ;;  %v2310_v50 = vsel %vm2268_vm5, %v2245_v14, %v8753_v54 }
 0x378   :  { %v2021_v60 = vpop.permute.xlu0 %2020  ;;  %v2242_v59 = vsel %vm2203_vm4, %v2177_v26, %v8738_v61  ;;  %v2438_v25 = vsel %vm2398_vm7, %v2373_v49, %v1423_v19  ;;  %v8747_v26 = vld [vmem:[#allocation172_spill] sm:$0xff] }
 0x379   :  { %v2631_v5 = vsel %vm2593_vm10, %v2566_v55, %v2021_v60  ;;  %1444 = vrot.lane.b32.xlu1 %v8734_v2, %s4010_s7  ;;  %v3330_v47 = vadd.f32 %v3329_v63, %v3267_v52  ;;  %v2307_v12 = vsel %vm2268_vm5, %v2242_v59, %v8739_v23  ;;  %v8749_v59 = vld [vmem:[#allocation14_spill] sm:$0xff] }
 0x37a   :  { %1244 = vrot.lane.b32.xlu0 %v8735_v18, %s4009_s13  ;;  %3738 = vmatmul.mubr.msk.f32.gmra.mrb[2].mxu1 %vm2670_vm11, %v2631_v5  ;;  %v2372_v34 = vsel %vm2333_vm6, %v2307_v12, %v1219_v31  ;;  %v8745_v18 = vld [vmem:[#allocation96_spill] sm:$0xff] }
 0x37b   :  { %v1619_v10 = vpop.permute.xlu1 %1618  ;;  %v2437_v48 = vsel %vm2398_vm7, %v2372_v34, %v1421_v56 }
 0x37c   :  { %v1617_v20 = vpop.permute.xlu0 %1616  ;;  %v2503_v17 = vsel %vm2463_vm8, %v2438_v25, %v1619_v10  ;;  %v8746_v10 = vld [vmem:[#allocation45_spill] sm:$0xff] }
 0x37d   :  { %1446 = vrot.lane.b32.xlu1 %v8737_v7, %s4010_s7  ;;  %v2502_v57 = vsel %vm2463_vm8, %v2437_v48, %v1617_v20 }
 0x37e   :  { %2044 = vrot.lane.b32.xlu0 %v8737_v7, %s4013_s1  ;;  %v8748_v7 = vld [vmem:[#allocation232_spill] sm:$0xff] }
 0x37f   :  { %v1223_v21 = vpop.permute.xlu1 %1222 }
 0x380   :  { %v1821_v4 = vpop.permute.xlu0 %1820 }
 0x381   :  { %1642 = vrot.lane.b32.xlu1 %v7235_v37, %s4011_s23  ;;  %v2567_v31 = vsel %vm2528_vm9, %v2502_v57, %v1821_v4 }
 0x382   :  { %1640 = vrot.lane.b32.xlu0 %v7243_v36, %s4011_s23 }
 0x383   :  { %v2023_v30 = vpop.permute.xlu1 %2022 }
 0x384   :  { %v2632_v15 = vsel %vm2593_vm10, %v2567_v31, %v2023_v30  ;;  %v1823_v6 = vpop.permute.xlu0 %1822  ;;  %v7301_v31 = vld [vmem:[%s7900_s0 + $0x2d0] sm:$0xff] }
 0x385   :  { %v3709_v35 = vpop.f32.mrb[16].mxu0  ;;  %1246 = vrot.lane.b32.xlu1 %v8740_v40, %s4009_s13  ;;  %3740 = vmatprep.mubr.msk.f32.mxu1 %vm2670_vm11, %v2632_v15  ;;  %v2568_v60 = vsel %vm2528_vm9, %v2503_v17, %v1823_v6 }
 0x386   :  { %v3013_v46 = vpop.f32.mrb[17].mxu0  ;;  %1844 = vrot.lane.b32.xlu0 %v8740_v40, %s4012_s26  ;;  %v3019_v32 = vadd.f32 %v3709_v35, %v6741_v9  ;;  %v8750_v40 = vld [vmem:[#allocation102_spill] sm:$0xff] }
 0x387   :  { %v3014_v62 = vadd.f32 %v6741_v9, %v3013_v46  ;;  %v1425_v56 = vpop.permute.xlu1 %1424 }
 0x388   :  { %v1225_v41 = vpop.permute.xlu0 %1224  ;;  %v3269_v52 = vmax.f32 %v3019_v32, 0.0 }
 0x389   :  { %v3268_v2 = vmax.f32 %v3014_v62, 0.0  ;;  %2046 = vrot.lane.b32.xlu1 %v8744_v29, %s4013_s1 }
 0x38a   :  { %1846 = vrot.lane.b32.xlu0 %v8745_v18, %s4012_s26 }
 0x38b   :  { %v3331_v63 = vadd.f32 %v3330_v47, %v3268_v2  ;;  %v1427_v55 = vpop.permute.xlu1 %1426  ;;  %v2179_v47 = vsel %vm2138_vm3, %v6800_v3, %v8746_v10  ;;  %v7293_v3 = vld [vmem:[%s7900_s0 + $0x2d8] sm:$0xff]  ;;  %v2375_v2 = vsel %vm2333_vm6, %v2310_v50, %v1225_v41 }
 0x38c   :  { %v2025_v5 = vpop.permute.xlu0 %2024  ;;  %v2244_v61 = vsel %vm2203_vm4, %v2179_v47, %v8748_v7  ;;  %v2440_v25 = vsel %vm2398_vm7, %v2375_v2, %v1427_v55  ;;  %v8757_v47 = vld [vmem:[#allocation173_spill] sm:$0xff] }
 0x38d   :  { %v2633_v20 = vsel %vm2593_vm10, %v2568_v60, %v2025_v5  ;;  %1448 = vrot.lane.b32.xlu1 %v8744_v29, %s4010_s7  ;;  %v3332_v24 = vadd.f32 %v3331_v63, %v3269_v52  ;;  %v2309_v23 = vsel %vm2268_vm5, %v2244_v61, %v8749_v59 }
 0x38e   :  { %1248 = vrot.lane.b32.xlu0 %v8745_v18, %s4009_s13  ;;  %3741 = vmatmul.mubr.msk.f32.gmra.mrb[4].mxu1 %vm2670_vm11, %v2633_v20  ;;  %v2374_v34 = vsel %vm2333_vm6, %v2309_v23, %v1223_v21  ;;  %v8755_v18 = vld [vmem:[#allocation101_spill] sm:$0xff] }
 0x38f   :  { %v1623_v19 = vpop.permute.xlu1 %1622  ;;  %v2439_v48 = vsel %vm2398_vm7, %v2374_v34, %v1425_v56 }
 0x390   :  { %v1621_v22 = vpop.permute.xlu0 %1620  ;;  %v2505_v17 = vsel %vm2463_vm8, %v2440_v25, %v1623_v19  ;;  %v8756_v19 = vld [vmem:[#allocation50_spill] sm:$0xff] }
 0x391   :  { %1450 = vrot.lane.b32.xlu1 %v8747_v26, %s4010_s7  ;;  %v2504_v57 = vsel %vm2463_vm8, %v2439_v48, %v1621_v22 }
 0x392   :  { %2048 = vrot.lane.b32.xlu0 %v8747_v26, %s4013_s1  ;;  %v8758_v26 = vld [vmem:[#allocation234_spill] sm:$0xff] }
 0x393   :  { %v1227_v12 = vpop.permute.xlu1 %1226 }
 0x394   :  { %v1825_v4 = vpop.permute.xlu0 %1824 }
 0x395   :  { %1646 = vrot.lane.b32.xlu1 %v7293_v3, %s4011_s23  ;;  %v2569_v21 = vsel %vm2528_vm9, %v2504_v57, %v1825_v4 }
 0x396   :  { %1644 = vrot.lane.b32.xlu0 %v7301_v31, %s4011_s23 }
 0x397   :  { %v2027_v30 = vpop.permute.xlu1 %2026 }
 0x398   :  { %v2634_v15 = vsel %vm2593_vm10, %v2569_v21, %v2027_v30  ;;  %v1827_v6 = vpop.permute.xlu0 %1826 }
 0x399   :  { %v3712_v35 = vpop.f32.mrb[18].mxu0  ;;  %1250 = vrot.lane.b32.xlu1 %v8750_v40, %s4009_s13  ;;  %3743 = vmatprep.mubr.msk.f32.mxu1 %vm2670_vm11, %v2634_v15  ;;  %v2570_v5 = vsel %vm2528_vm9, %v2505_v17, %v1827_v6  ;;  %v8759_v6 = vld [vmem:[#allocation108_spill] sm:$0xff] }
 0x39a   :  { %v3023_v46 = vpop.f32.mrb[19].mxu0  ;;  %1848 = vrot.lane.b32.xlu0 %v8750_v40, %s4012_s26  ;;  %v3029_v32 = vadd.f32 %v3712_v35, %v6741_v9  ;;  %v8760_v35 = vld [vmem:[#allocation48_spill] sm:$0xff] }
 0x39b   :  { %v3024_v62 = vadd.f32 %v6741_v9, %v3023_v46  ;;  %v1429_v56 = vpop.permute.xlu1 %1428  ;;  %v2182_v40 = vsel %vm2138_vm3, %v6854_v45, %v8760_v35  ;;  %v8763_v45 = vld [vmem:[#allocation103_spill] sm:$0xff] }
 0x39c   :  { %v1229_v49 = vpop.permute.xlu0 %1228  ;;  %v3271_v52 = vmax.f32 %v3029_v32, 0.0  ;;  %v2247_v46 = vsel %vm2203_vm4, %v2182_v40, %v8761_v8  ;;  %v8771_v40 = vld [vmem:[#allocation235_spill] sm:$0xff] }
 0x39d   :  { %v3270_v29 = vmax.f32 %v3024_v62, 0.0  ;;  %2050 = vrot.lane.b32.xlu1 %v8754_v42, %s4013_s1  ;;  %v8762_v62 = vld [vmem:[#allocation255_spill] sm:$0xff] }
 0x39e   :  { %1850 = vrot.lane.b32.xlu0 %v8755_v18, %s4012_s26  ;;  %v7436_v8 = vld [vmem:[%s7902_s2] ss:$0 sm:$0xff] }
 0x39f   :  { %v3333_v63 = vadd.f32 %v3332_v24, %v3270_v29  ;;  %v1431_v60 = vpop.permute.xlu1 %1430  ;;  %v2181_v24 = vsel %vm2138_vm3, %v6862_v13, %v8756_v19  ;;  %v7351_v13 = vld [vmem:[%s7900_s0 + $0x2f0] sm:$0xff] }
 0x3a0   :  { %v2029_v20 = vpop.permute.xlu0 %2028  ;;  %v2246_v7 = vsel %vm2203_vm4, %v2181_v24, %v8758_v26  ;;  %v8768_v24 = vld [vmem:[#allocation256_spill] sm:$0xff] }
 0x3a1   :  { %v2635_v22 = vsel %vm2593_vm10, %v2570_v5, %v2029_v20  ;;  %1452 = vrot.lane.b32.xlu1 %v8754_v42, %s4010_s7  ;;  %v3334_v41 = vadd.f32 %v3333_v63, %v3271_v52  ;;  %v2311_v61 = vsel %vm2268_vm5, %v2246_v7, %v6065_v58  ;;  %v7359_v58 = vld [vmem:[%s7900_s0 + $0x2e8] sm:$0xff]  ;;  %v8764_v42 = vld [vmem:[#allocation106_spill] sm:$0xff] }
 0x3a2   :  { %1252 = vrot.lane.b32.xlu0 %v8755_v18, %s4009_s13  ;;  %3744 = vmatmul.mubr.msk.f32.gmra.mrb[6].mxu1 %vm2670_vm11, %v2635_v22  ;;  %v2376_v23 = vsel %vm2333_vm6, %v2311_v61, %v1227_v12  ;;  %v8765_v22 = vld [vmem:[#allocation55_spill] sm:$0xff] }
 0x3a3   :  { %v1627_v55 = vpop.permute.xlu1 %1626  ;;  %v2441_v4 = vsel %vm2398_vm7, %v2376_v23, %v1429_v56  ;;  %v2312_v56 = vsel %vm2268_vm5, %v2247_v46, %v8762_v62 }
 0x3a4   :  { %v1625_v10 = vpop.permute.xlu0 %1624  ;;  %v2377_v50 = vsel %vm2333_vm6, %v2312_v56, %v1229_v49 }
 0x3a5   :  { %1454 = vrot.lane.b32.xlu1 %v8757_v47, %s4010_s7  ;;  %v2506_v48 = vsel %vm2463_vm8, %v2441_v4, %v1625_v10  ;;  %v2442_v29 = vsel %vm2398_vm7, %v2377_v50, %v1431_v60  ;;  %v8767_v10 = vld [vmem:[#allocation236_spill] sm:$0xff] }
 0x3a6   :  { %2052 = vrot.lane.b32.xlu0 %v8757_v47, %s4013_s1  ;;  %v2507_v25 = vsel %vm2463_vm8, %v2442_v29, %v1627_v55  ;;  %v8766_v55 = vld [vmem:[#allocation174_spill] sm:$0xff]  ;;  %v7417_v4 = vld [vmem:[%s7900_s0 + $0x300] sm:$0xff] }
 0x3a7   :  { %v1231_v59 = vpop.permute.xlu1 %1230  ;;  %v8774_v29 = vld [vmem:[#allocation110_spill] sm:$0xff] }
 0x3a8   :  { %v1829_v34 = vpop.permute.xlu0 %1828 }
 0x3a9   :  { %1650 = vrot.lane.b32.xlu1 %v7351_v13, %s4011_s23  ;;  %v2571_v12 = vsel %vm2528_vm9, %v2506_v48, %v1829_v34 }
 0x3aa   :  { %1648 = vrot.lane.b32.xlu0 %v7359_v58, %s4011_s23 }
 0x3ab   :  { %v2031_v57 = vpop.permute.xlu1 %2030 }
 0x3ac   :  { %v2636_v21 = vsel %vm2593_vm10, %v2571_v12, %v2031_v57  ;;  %v1831_v30 = vpop.permute.xlu0 %1830 }
 0x3ad   :  { %v3715_v15 = vpop.f32.mrb[20].mxu0  ;;  %1254 = vrot.lane.b32.xlu1 %v8759_v6, %s4009_s13  ;;  %3746 = vmatprep.mubr.msk.f32.mxu1 %vm2670_vm11, %v2636_v21  ;;  %v2572_v52 = vsel %vm2528_vm9, %v2507_v25, %v1831_v30  ;;  %v8769_v30 = vld [vmem:[#allocation112_spill] sm:$0xff] }
 0x3ae   :  { %v3033_v16 = vpop.f32.mrb[21].mxu0  ;;  %1852 = vrot.lane.b32.xlu0 %v8759_v6, %s4012_s26  ;;  %v3039_v28 = vadd.f32 %v3715_v15, %v6741_v9  ;;  %v8770_v15 = vld [vmem:[#allocation53_spill] sm:$0xff] }
 0x3af   :  { %v3034_v14 = vadd.f32 %v6741_v9, %v3033_v16  ;;  %v1433_v32 = vpop.permute.xlu1 %1432  ;;  %v2184_v6 = vsel %vm2138_vm3, %v6916_v38, %v8770_v15  ;;  %v8780_v15 = vld [vmem:[#allocation237_spill] sm:$0xff] }
 0x3b0   :  { %v1233_v54 = vpop.permute.xlu0 %1232  ;;  %v3273_v18 = vmax.f32 %v3039_v28, 0.0  ;;  %v2249_v16 = vsel %vm2203_vm4, %v2184_v6, %v8771_v40 }
 0x3b1   :  { %v3272_v2 = vmax.f32 %v3034_v14, 0.0  ;;  %2054 = vrot.lane.b32.xlu1 %v8763_v45, %s4013_s1 }
 0x3b2   :  { %1854 = vrot.lane.b32.xlu0 %v8764_v42, %s4012_s26 }
 0x3b3   :  { %v3335_v9 = vadd.f32 %v3334_v41, %v3272_v2  ;;  %v1435_v17 = vpop.permute.xlu1 %1434  ;;  %v2183_v41 = vsel %vm2138_vm3, %v6924_v0, %v8765_v22  ;;  %v7409_v0 = vld [vmem:[%s7900_s0 + $0x308] sm:$0xff]  ;;  %v8773_v2 = vld [vmem:[#allocation175_spill] sm:$0xff] }
 0x3b4   :  { %v2033_v63 = vpop.permute.xlu0 %2032  ;;  %v2248_v19 = vsel %vm2203_vm4, %v2183_v41, %v8767_v10  ;;  %v8776_v22 = vld [vmem:[#allocation104_spill] sm:$0xff]  ;;  %v8777_v41 = vld [vmem:[#allocation238_spill] sm:$0xff] }
 0x3b5   :  { %v2637_v5 = vsel %vm2593_vm10, %v2572_v52, %v2033_v63  ;;  %1456 = vrot.lane.b32.xlu1 %v8763_v45, %s4010_s7  ;;  %v3336_v49 = vadd.f32 %v3335_v9, %v3273_v18  ;;  %v2313_v47 = vsel %vm2268_vm5, %v2248_v19, %v8768_v24 }
 0x3b6   :  { %1256 = vrot.lane.b32.xlu0 %v8764_v42, %s4009_s13  ;;  %3747 = vmatmul.mubr.msk.f32.gmra.mrb[8].mxu1 %vm2670_vm11, %v2637_v5  ;;  %v2378_v7 = vsel %vm2333_vm6, %v2313_v47, %v1231_v59 }
 0x3b7   :  { %v1631_v60 = vpop.permute.xlu1 %1630  ;;  %v2443_v23 = vsel %vm2398_vm7, %v2378_v7, %v1433_v32  ;;  %v8772_v32 = vld [vmem:[#allocation17_spill] sm:$0xff] }
 0x3b8   :  { %v1629_v20 = vpop.permute.xlu0 %1628  ;;  %v2314_v38 = vsel %vm2268_vm5, %v2249_v16, %v8772_v32 }
 0x3b9   :  { %1458 = vrot.lane.b32.xlu1 %v8766_v55, %s4010_s7  ;;  %v2508_v34 = vsel %vm2463_vm8, %v2443_v23, %v1629_v20  ;;  %v2379_v56 = vsel %vm2333_vm6, %v2314_v38, %v1233_v54 }
 0x3ba   :  { %2056 = vrot.lane.b32.xlu0 %v8766_v55, %s4013_s1  ;;  %v2444_v45 = vsel %vm2398_vm7, %v2379_v56, %v1435_v17 }
 0x3bb   :  { %v1235_v26 = vpop.permute.xlu1 %1234  ;;  %v2509_v42 = vsel %vm2463_vm8, %v2444_v45, %v1631_v60  ;;  %v8775_v60 = vld [vmem:[#allocation60_spill] sm:$0xff] }
 0x3bc   :  { %v1833_v61 = vpop.permute.xlu0 %1832 }
 0x3bd   :  { %1654 = vrot.lane.b32.xlu1 %v7409_v0, %s4011_s23  ;;  %v2573_v59 = vsel %vm2528_vm9, %v2508_v34, %v1833_v61 }
 0x3be   :  { %1652 = vrot.lane.b32.xlu0 %v7417_v4, %s4011_s23 }
 0x3bf   :  { %v2035_v48 = vpop.permute.xlu1 %2034 }
 0x3c0   :  { %v2638_v12 = vsel %vm2593_vm10, %v2573_v59, %v2035_v48  ;;  %v1835_v57 = vpop.permute.xlu0 %1834 }
 0x3c1   :  { %v3718_v21 = vpop.f32.mrb[22].mxu0  ;;  %1258 = vrot.lane.b32.xlu1 %v8769_v30, %s4009_s13  ;;  %3749 = vmatprep.mubr.msk.f32.mxu1 %vm2670_vm11, %v2638_v12  ;;  %v2574_v52 = vsel %vm2528_vm9, %v2509_v42, %v1835_v57  ;;  %v8778_v12 = vld [vmem:[#allocation116_spill] sm:$0xff]  ;;  %v8779_v57 = vld [vmem:[#allocation58_spill] sm:$0xff] }
 0x3c2   :  { %v3043_v35 = vpop.f32.mrb[23].mxu0  ;;  %1856 = vrot.lane.b32.xlu0 %v8769_v30, %s4012_s26  ;;  %v3049_v46 = vadd.f32 %v7436_v8, %v3718_v21  ;;  %v2186_v21 = vsel %vm2138_vm3, %v6980_v27, %v8779_v57  ;;  %v8782_v27 = vld [vmem:[#allocation179_spill] sm:$0xff] }
 0x3c3   :  { %v3044_v28 = vadd.f32 %v7436_v8, %v3043_v35  ;;  %v1437_v14 = vpop.permute.xlu1 %1436  ;;  %v2251_v6 = vsel %vm2203_vm4, %v2186_v21, %v8780_v15 }
 0x3c4   :  { %v1237_v62 = vpop.permute.xlu0 %1236  ;;  %v3275_v25 = vmax.f32 %v3049_v46, 0.0  ;;  %v8781_v46 = vld [vmem:[#allocation16_spill] sm:$0xff] }
 0x3c5   :  { %v3274_v50 = vmax.f32 %v3044_v28, 0.0  ;;  %2058 = vrot.lane.b32.xlu1 %v8773_v2, %s4013_s1  ;;  %v2316_v28 = vsel %vm2268_vm5, %v2251_v6, %v8781_v46  ;;  %v8788_v6 = vld [vmem:[#allocation63_spill] sm:$0xff] }
 0x3c6   :  { %1858 = vrot.lane.b32.xlu0 %v8774_v29, %s4012_s26  ;;  %v2381_v32 = vsel %vm2333_vm6, %v2316_v28, %v1237_v62  ;;  %v8789_v46 = vld [vmem:[#allocation239_spill] sm:$0xff] }
 0x3c7   :  { %v3337_v18 = vadd.f32 %v3336_v49, %v3274_v50  ;;  %v1439_v9 = vpop.permute.xlu1 %1438  ;;  %v2185_v49 = vsel %vm2138_vm3, %v6988_v53, %v8775_v60  ;;  %v7472_v53 = vld [vmem:[%s7900_s0 + $0x320] sm:$0xff]  ;;  %v8783_v50 = vld [vmem:[#allocation114_spill] sm:$0xff] }
 0x3c8   :  { %v2037_v63 = vpop.permute.xlu0 %2036  ;;  %v2250_v55 = vsel %vm2203_vm4, %v2185_v49, %v8777_v41  ;;  %v2446_v56 = vsel %vm2398_vm7, %v2381_v32, %v1439_v9  ;;  %v3955_v49 = vld [vmem:[%s7900_s0 + $0x338] sm:$0xff]  ;;  %v3956_v41 = vld [vmem:[%s7900_s0 + $0x330] sm:$0xff] }
 0x3c9   :  { %v2639_v5 = vsel %vm2593_vm10, %v2574_v52, %v2037_v63  ;;  %1460 = vrot.lane.b32.xlu1 %v8773_v2, %s4010_s7  ;;  %v3338_v54 = vadd.f32 %v3337_v18, %v3275_v25  ;;  %v2315_v10 = vsel %vm2268_vm5, %v2250_v55, %v6081_v11  ;;  %v7480_v11 = vld [vmem:[%s7900_s0 + $0x318] sm:$0xff]  ;;  %v1137_v55 = vrot.slane %v3956_v41, 1 }
 0x3ca   :  { %1260 = vrot.lane.b32.xlu0 %v8774_v29, %s4009_s13  ;;  %3750 = vmatmul.mubr.msk.f32.gmra.mrb[10].mxu1 %vm2670_vm11, %v2639_v5  ;;  %v2380_v24 = vsel %vm2333_vm6, %v2315_v10, %v1235_v26  ;;  %v8784_v5 = vld [vmem:[#allocation65_spill] sm:$0xff] }
 0x3cb   :  { %v1635_v17 = vpop.permute.xlu1 %1634  ;;  %v2445_v7 = vsel %vm2398_vm7, %v2380_v24, %v1437_v14 }
 0x3cc   :  { %v1633_v20 = vpop.permute.xlu0 %1632  ;;  %v2511_v2 = vsel %vm2463_vm8, %v2446_v56, %v1635_v17  ;;  %v8785_v17 = vld [vmem:[#allocation177_spill] sm:$0xff] }
 0x3cd   :  { %1462 = vrot.lane.b32.xlu1 %v8776_v22, %s4010_s7  ;;  %v2510_v61 = vsel %vm2463_vm8, %v2445_v7, %v1633_v20  ;;  %v8786_v20 = vld [vmem:[#allocation240_spill] sm:$0xff] }
 0x3ce   :  { %2060 = vrot.lane.b32.xlu0 %v8776_v22, %s4013_s1  ;;  %v1138_v22 = vrot.slane %v3955_v49, 1 }
 0x3cf   :  { %v1239_v19 = vpop.permute.xlu1 %1238 }
 0x3d0   :  { %v1837_v47 = vpop.permute.xlu0 %1836 }
 0x3d1   :  { %1658 = vrot.lane.b32.xlu1 %v7472_v53, %s4011_s23  ;;  %v2575_v26 = vsel %vm2528_vm9, %v2510_v61, %v1837_v47  ;;  %v128_v61 = vld [vmem:[%s7900_s0 + $0x340] sm:$0x3] }
 0x3d2   :  { %1656 = vrot.lane.b32.xlu0 %v7480_v11, %s4011_s23  ;;  %v1140_v57 = vrot.slane %v128_v61, 1 }
 0x3d3   :  { %v2039_v23 = vpop.permute.xlu1 %2038 }
 0x3d4   :  { %v2640_v34 = vsel %vm2593_vm10, %v2575_v26, %v2039_v23  ;;  %v1839_v59 = vpop.permute.xlu0 %1838  ;;  %v1340_v23 = vrot.slane %v3955_v49, 2  ;;  %v1141_v56 = vsel %vm228_vm0, %v1138_v22, %v1140_v57 }
 0x3d5   :  { %v3721_v48 = vpop.f32.mrb[24].mxu0  ;;  %1262 = vrot.lane.b32.xlu1 %v8778_v12, %s4009_s13  ;;  %3752 = vmatprep.mubr.msk.f32.mxu1 %vm2670_vm11, %v2640_v34  ;;  %v2576_v25 = vsel %vm2528_vm9, %v2511_v2, %v1839_v59  ;;  %v1339_v34 = vrot.slane %v3956_v41, 2 }
 0x3d6   :  { %v3053_v30 = vpop.f32.mrb[25].mxu0  ;;  %1860 = vrot.lane.b32.xlu0 %v8778_v12, %s4012_s26  ;;  %v3059_v35 = vadd.f32 %v7436_v8, %v3721_v48  ;;  %v1139_v48 = vsel %vm228_vm0, %v1137_v55, %v1138_v22  ;;  %v8791_v55 = vld [vmem:[#allocation70_spill] sm:$0xff] }
 0x3d7   :  { %v3054_v40 = vadd.f32 %v7436_v8, %v3053_v30  ;;  %v1441_v16 = vpop.permute.xlu1 %1440 }
 0x3d8   :  { %v1241_v14 = vpop.permute.xlu0 %1240  ;;  %v3277_v45 = vmax.f32 %v3059_v35, 0.0  ;;  %v2188_v35 = vsel %vm2138_vm3, %v7037_v44, %v8788_v6 }
 0x3d9   :  { %v3276_v38 = vmax.f32 %v3054_v40, 0.0  ;;  %2062 = vrot.lane.b32.xlu1 %v8782_v27, %s4013_s1  ;;  %v2253_v28 = vsel %vm2203_vm4, %v2188_v35, %v8789_v46 }
 0x3da   :  { %1862 = vrot.lane.b32.xlu0 %v8783_v50, %s4012_s26 }
 0x3db   :  { %v3339_v29 = vadd.f32 %v3338_v54, %v3276_v38  ;;  %v1443_v42 = vpop.permute.xlu1 %1442  ;;  %v2187_v54 = vsel %vm2138_vm3, %v7044_v33, %v8784_v5  ;;  %v8787_v33 = vld [vmem:[#allocation258_spill] sm:$0xff] }
 0x3dc   :  { %v2041_v18 = vpop.permute.xlu0 %2040  ;;  %v2252_v60 = vsel %vm2203_vm4, %v2187_v54, %v8786_v20 }
 0x3dd   :  { %v2641_v52 = vsel %vm2593_vm10, %v2576_v25, %v2041_v18  ;;  %1464 = vrot.lane.b32.xlu1 %v8782_v27, %s4010_s7  ;;  %v3340_v62 = vadd.f32 %v3339_v29, %v3277_v45  ;;  %v2317_v10 = vsel %vm2268_vm5, %v2252_v60, %v8787_v33  ;;  %v1342_v18 = vrot.slane %v128_v61, 2 }
 0x3de   :  { %1264 = vrot.lane.b32.xlu0 %v8783_v50, %s4009_s13  ;;  %3753 = vmatmul.mubr.msk.f32.gmra.mrb[12].mxu1 %vm2670_vm11, %v2641_v52  ;;  %v2382_v47 = vsel %vm2333_vm6, %v2317_v10, %v1239_v19  ;;  %v8790_v50 = vld [vmem:[#allocation257_spill] sm:$0xff]  ;;  %v2189_v33 = vsel %vm2138_vm3, %v7122_v39, %v8791_v55  ;;  %v8792_v10 = vld [vmem:[#allocation242_spill] sm:$0xff] }
 0x3df   :  { %v1639_v9 = vpop.permute.xlu1 %1638  ;;  %v2447_v26 = vsel %vm2398_vm7, %v2382_v47, %v1441_v16  ;;  %v1341_v16 = vsel %vm581_vm1, %v1339_v34, %v1340_v23  ;;  %v2318_v2 = vsel %vm2268_vm5, %v2253_v28, %v8790_v50  ;;  %v2254_v47 = vsel %vm2203_vm4, %v2189_v33, %v8792_v10  ;;  %v8794_v28 = vld [vmem:[#allocation68_spill] sm:$0xff]  ;;  %v8797_v10 = vld [vmem:[#allocation75_spill] sm:$0xff] }
 0x3e0   :  { %v1637_v63 = vpop.permute.xlu0 %1636  ;;  %v2383_v44 = vsel %vm2333_vm6, %v2318_v2, %v1241_v14 }
 0x3e1   :  { %1466 = vrot.lane.b32.xlu1 %v8785_v17, %s4010_s7  ;;  %v2512_v59 = vsel %vm2463_vm8, %v2447_v26, %v1637_v63  ;;  %v2448_v25 = vsel %vm2398_vm7, %v2383_v44, %v1443_v42  ;;  %v1343_v42 = vsel %vm581_vm1, %v1340_v23, %v1342_v18  ;;  %v8793_v26 = vld [vmem:[#allocation260_spill] sm:$0xff]  ;;  %v8796_v18 = vld [vmem:[#allocation259_spill] sm:$0xff] }
 0x3e2   :  { %2064 = vrot.lane.b32.xlu0 %v8785_v17, %s4013_s1  ;;  %v2513_v52 = vsel %vm2463_vm8, %v2448_v25, %v1639_v9  ;;  %v131_v9 = vld [vmem:[%s7900_s0 + $0x358] sm:$0x3]  ;;  %v2319_v23 = vsel %vm2268_vm5, %v2254_v47, %v8793_v26  ;;  %v8798_v47 = vld [vmem:[#allocation244_spill] sm:$0xff] }
 0x3e3   :  { %v7531_v24 = vpop.permute.xlu1 %1242  ;;  %v1742_v61 = vrot.slane %v131_v9, 1 }
 0x3e4   :  { %v1841_v7 = vpop.permute.xlu0 %1840 }
 0x3e5   :  { %1662 = vrot.lane.b32.xlu1 %v3955_v49, %s4011_s23  ;;  %v2577_v12 = vsel %vm2528_vm9, %v2512_v59, %v1841_v7 }
 0x3e6   :  { %1660 = vrot.lane.b32.xlu0 %v3956_v41, %s4011_s23  ;;  %v129_v41 = vld [vmem:[%s7900_s0 + $0x348] sm:$0xff] }
 0x3e7   :  { %v2043_v19 = vpop.permute.xlu1 %2042  ;;  %v1739_v59 = vrot.slane %v129_v41, 1  ;;  %v1941_v6 = vrot.slane %v129_v41, 2 }
 0x3e8   :  { %v2642_v21 = vsel %vm2593_vm10, %v2577_v12, %v2043_v19  ;;  %v1843_v30 = vpop.permute.xlu0 %1842 }
 0x3e9   :  { %v3724_v15 = vpop.f32.mrb[26].mxu0  ;;  %1266 = vrot.lane.b32.xlu1 %v1139_v48, %s4009_s13  ;;  %3755 = vmatprep.mubr.msk.f32.mxu1 %vm2670_vm11, %v2642_v21  ;;  %v2578_v17 = vsel %vm2528_vm9, %v2513_v52, %v1843_v30  ;;  %v1944_v30 = vrot.slane %v131_v9, 2 }
 0x3ea   :  { %v3063_v40 = vpop.f32.mrb[27].mxu0  ;;  %1864 = vrot.lane.b32.xlu0 %v1139_v48, %s4012_s26  ;;  %v3069_v32 = vadd.f32 %v7436_v8, %v3724_v15  ;;  %v2384_v48 = vsel %vm2333_vm6, %v2319_v23, %v7531_v24 }
 0x3eb   :  { %v3064_v38 = vadd.f32 %v7436_v8, %v3063_v40  ;;  %v1445_v27 = vpop.permute.xlu1 %1444 }
 0x3ec   :  { %v7558_v45 = vpop.permute.xlu0 %1244  ;;  %v3279_v63 = vmax.f32 %v3069_v32, 0.0  ;;  %v2449_v39 = vsel %vm2398_vm7, %v2384_v48, %v1445_v27  ;;  %v2190_v32 = vsel %vm2138_vm3, %v7114_v43, %v8794_v28 }
 0x3ed   :  { %v3278_v29 = vmax.f32 %v3064_v38, 0.0  ;;  %2066 = vrot.lane.b32.xlu1 %v1341_v16, %s4013_s1 }
 0x3ee   :  { %1866 = vrot.lane.b32.xlu0 %v1141_v56, %s4012_s26 }
 0x3ef   :  { %v3341_v5 = vadd.f32 %v3340_v62, %v3278_v29  ;;  %v1447_v54 = vpop.permute.xlu1 %1446  ;;  %v130_v62 = vld [vmem:[%s7900_s0 + $0x350] sm:$0xff] }
 0x3f0   :  { %v2045_v20 = vpop.permute.xlu0 %2044  ;;  %v1740_v7 = vrot.slane %v130_v62, 1  ;;  %v1942_v57 = vrot.slane %v130_v62, 2 }
 0x3f1   :  { %v2643_v60 = vsel %vm2593_vm10, %v2578_v17, %v2045_v20  ;;  %1468 = vrot.lane.b32.xlu1 %v1341_v16, %s4010_s7  ;;  %v3342_v14 = vadd.f32 %v3341_v5, %v3279_v63 }
 0x3f2   :  { %1268 = vrot.lane.b32.xlu0 %v1141_v56, %s4009_s13  ;;  %3756 = vmatmul.mubr.msk.f32.gmra.mrb[14].mxu1 %vm2670_vm11, %v2643_v60  ;;  %v1743_v21 = vsel %vm228_vm0, %v1740_v7, %v1742_v61  ;;  %v1741_v40 = vsel %vm228_vm0, %v1739_v59, %v1740_v7  ;;  %v1945_v27 = vsel %vm581_vm1, %v1942_v57, %v1944_v30  ;;  %v8795_v56 = vld [vmem:[#allocation241_spill] sm:$0xff]  ;;  %v8799_v7 = vld [vmem:[#allocation262_spill] sm:$0xff] }
 0x3f3   :  { %v1643_v49 = vpop.permute.xlu1 %1642  ;;  %v2255_v50 = vsel %vm2203_vm4, %v2190_v32, %v8795_v56  ;;  %v1943_v25 = vsel %vm581_vm1, %v1941_v6, %v1942_v57 }
 0x3f4   :  { %v1641_v22 = vpop.permute.xlu0 %1640  ;;  %v2320_v52 = vsel %vm2268_vm5, %v2255_v50, %v8796_v18 }
 0x3f5   :  { %1470 = vrot.lane.b32.xlu1 %v1343_v42, %s4010_s7  ;;  %v2514_v19 = vsel %vm2463_vm8, %v2449_v39, %v1641_v22  ;;  %v2385_v43 = vsel %vm2333_vm6, %v2320_v52, %v7558_v45 }
 0x3f6   :  { %2068 = vrot.lane.b32.xlu0 %v1343_v42, %s4013_s1  ;;  %v2450_v17 = vsel %vm2398_vm7, %v2385_v43, %v1447_v54  ;;  %v2191_v54 = vsel %vm2138_vm3, %v7185_v1, %v8797_v10 }
 0x3f7   :  { %v1247_v34 = vpop.permute.xlu1 %1246  ;;  %v2515_v20 = vsel %vm2463_vm8, %v2450_v17, %v1643_v49  ;;  %v2256_v49 = vsel %vm2203_vm4, %v2191_v54, %v8798_v47  ;;  %v8804_v17 = vld [vmem:[#allocation246_spill] sm:$0xff] }
 0x3f8   :  { %v1845_v12 = vpop.permute.xlu0 %1844  ;;  %v8806_v54 = vld [vmem:[#allocation78_spill] sm:$0xff] }
 0x3f9   :  { %1666 = vrot.lane.b32.xlu1 %v130_v62, %s4011_s23  ;;  %v2579_v15 = vsel %vm2528_vm9, %v2514_v19, %v1845_v12  ;;  %v2194_v47 = vsel %vm2138_vm3, %v7235_v37, %v8806_v54 }
 0x3fa   :  { %1664 = vrot.lane.b32.xlu0 %v129_v41, %s4011_s23 }
 0x3fb   :  { %v2047_v35 = vpop.permute.xlu1 %2046 }
 0x3fc   :  { %v2644_v24 = vsel %vm2593_vm10, %v2579_v15, %v2047_v35  ;;  %v1847_v16 = vpop.permute.xlu0 %1846 }
 0x3fd   :  { %v3727_v46 = vpop.f32.mrb[28].mxu0  ;;  %1870 = vrot.lane.b32.xlu1 %v1743_v21, %s4012_s26  ;;  %3758 = vmatprep.mubr.msk.f32.mxu1 %vm2670_vm11, %v2644_v24  ;;  %v2580_v9 = vsel %vm2528_vm9, %v2515_v20, %v1847_v16  ;;  %v8800_v21 = vld [vmem:[#allocation73_spill] sm:$0xff] }
 0x3fe   :  { %v3073_v38 = vpop.f32.mrb[29].mxu0  ;;  %1868 = vrot.lane.b32.xlu0 %v1741_v40, %s4012_s26  ;;  %v3079_v2 = vadd.f32 %v7436_v8, %v3727_v46  ;;  %v2192_v30 = vsel %vm2138_vm3, %v7177_v51, %v8800_v21  ;;  %v8802_v16 = vld [vmem:[#allocation261_spill] sm:$0xff] }
 0x3ff   :  { %v3074_v44 = vadd.f32 %v7436_v8, %v3073_v38  ;;  %v1449_v29 = vpop.permute.xlu1 %1448 }
 0x400   :  { %v1249_v63 = vpop.permute.xlu0 %1248  ;;  %v3281_v60 = vmax.f32 %v3079_v2, 0.0 }
 0x401   :  { %v3280_v5 = vmax.f32 %v3074_v44, 0.0  ;;  %2072 = vrot.lane.b32.xlu1 %v1945_v27, %s4013_s1 }
 0x402   :  { %2070 = vrot.lane.b32.xlu0 %v1943_v25, %s4013_s1 }
 0x403   :  { %v3343_v42 = vadd.f32 %v3342_v14, %v3280_v5  ;;  %v1451_v62 = vpop.permute.xlu1 %1450  ;;  %v2321_v14 = vsel %vm2268_vm5, %v2256_v49, %v8799_v7  ;;  %v8807_v49 = vld [vmem:[#allocation245_spill] sm:$0xff] }
 0x404   :  { %v2049_v22 = vpop.permute.xlu0 %2048  ;;  %v2386_v26 = vsel %vm2333_vm6, %v2321_v14, %v1247_v34  ;;  %v8801_v34 = vld [vmem:[#allocation243_spill] sm:$0xff]  ;;  %v2259_v7 = vsel %vm2203_vm4, %v2194_v47, %v8807_v49 }
 0x405   :  { %v2645_v41 = vsel %vm2593_vm10, %v2580_v9, %v2049_v22  ;;  %v3344_v55 = vadd.f32 %v3343_v42, %v3281_v60  ;;  %v2451_v59 = vsel %vm2398_vm7, %v2386_v26, %v1449_v29  ;;  %v2257_v6 = vsel %vm2203_vm4, %v2192_v30, %v8801_v34  ;;  %v8805_v60 = vld [vmem:[#allocation263_spill] sm:$0xff] }
 0x406   :  { %3759 = vmatmul.mubr.msk.f32.gmra.mrb[16].mxu1 %vm2670_vm11, %v2645_v41  ;;  %v2322_v46 = vsel %vm2268_vm5, %v2257_v6, %v8802_v16 }
 0x407   :  { %v1647_v45 = vpop.permute.xlu1 %1646  ;;  %v2387_v32 = vsel %vm2333_vm6, %v2322_v46, %v1249_v63  ;;  %v8803_v63 = vld [vmem:[#allocation80_spill] sm:$0xff] }
 0x408   :  { %v1645_v33 = vpop.permute.xlu0 %1644  ;;  %v2452_v27 = vsel %vm2398_vm7, %v2387_v32, %v1451_v62  ;;  %v2193_v5 = vsel %vm2138_vm3, %v7243_v36, %v8803_v63  ;;  %v8810_v46 = vld [vmem:[#allocation248_spill] sm:$0xff]  ;;  %v8812_v63 = vld [vmem:[#allocation83_spill] sm:$0xff] }
 0x409   :  { %v2516_v48 = vsel %vm2463_vm8, %v2451_v59, %v1645_v33  ;;  %v2517_v51 = vsel %vm2463_vm8, %v2452_v27, %v1647_v45  ;;  %v2258_v20 = vsel %vm2203_vm4, %v2193_v5, %v8804_v17  ;;  %v8811_v32 = vld [vmem:[#allocation264_spill] sm:$0xff]  ;;  %v2196_v5 = vsel %vm2138_vm3, %v7293_v3, %v8812_v63 }
 0x40a   :  { %v2323_v42 = vsel %vm2268_vm5, %v2258_v20, %v8805_v60  ;;  %v8813_v20 = vld [vmem:[#allocation247_spill] sm:$0xff] }
 0x40b   :  { %v1251_v61 = vpop.permute.xlu1 %1250  ;;  %v2261_v60 = vsel %vm2203_vm4, %v2196_v5, %v8813_v20 }
 0x40c   :  { %v1849_v23 = vpop.permute.xlu0 %1848  ;;  %v2388_v9 = vsel %vm2333_vm6, %v2323_v42, %v1251_v61  ;;  %v8808_v61 = vld [vmem:[#allocation19_spill] sm:$0xff] }
 0x40d   :  { %v2581_v12 = vsel %vm2528_vm9, %v2516_v48, %v1849_v23  ;;  %v2324_v26 = vsel %vm2268_vm5, %v2259_v7, %v8808_v61 }
 0x40f   :  { %v2051_v39 = vpop.permute.xlu1 %2050 }
 0x410   :  { %v2646_v19 = vsel %vm2593_vm10, %v2581_v12, %v2051_v39  ;;  %v1851_v1 = vpop.permute.xlu0 %1850 }
 0x411   :  { %v3730_v57 = vpop.f32.mrb[30].mxu0  ;;  %3761 = vmatprep.mubr.msk.f32.mxu1 %vm2670_vm11, %v2646_v19  ;;  %v2582_v44 = vsel %vm2528_vm9, %v2517_v51, %v1851_v1 }
 0x412   :  { %v3083_v15 = vpop.f32.mrb[31].mxu0  ;;  %v3089_v35 = vadd.f32 %v7436_v8, %v3730_v57 }
 0x413   :  { %v3084_v40 = vadd.f32 %v7436_v8, %v3083_v15  ;;  %v1453_v24 = vpop.permute.xlu1 %1452 }
 0x414   :  { %v1253_v28 = vpop.permute.xlu0 %1252  ;;  %v3283_v56 = vmax.f32 %v3089_v35, 0.0  ;;  %v2453_v41 = vsel %vm2398_vm7, %v2388_v9, %v1453_v24 }
 0x415   :  { %v3282_v38 = vmax.f32 %v3084_v40, 0.0  ;;  %v2389_v59 = vsel %vm2333_vm6, %v2324_v26, %v1253_v28  ;;  %v8809_v40 = vld [vmem:[#allocation85_spill] sm:$0xff] }
 0x416   :  { %v2195_v24 = vsel %vm2138_vm3, %v7301_v31, %v8809_v40 }
 0x417   :  { %v3345_v50 = vadd.f32 %v3344_v55, %v3282_v38  ;;  %v1455_v2 = vpop.permute.xlu1 %1454  ;;  %v2260_v28 = vsel %vm2203_vm4, %v2195_v24, %v8810_v46  ;;  %v8818_v24 = vld [vmem:[#allocation88_spill] sm:$0xff] }
 0x418   :  { %v2053_v29 = vpop.permute.xlu0 %2052  ;;  %v2454_v48 = vsel %vm2398_vm7, %v2389_v59, %v1455_v2  ;;  %v2325_v38 = vsel %vm2268_vm5, %v2260_v28, %v8811_v32  ;;  %v8819_v28 = vld [vmem:[#allocation249_spill] sm:$0xff] }
 0x419   :  { %v7648_v25 = vadd.f32 %v3345_v50, %v3283_v56  ;;  %v2647_v18 = vsel %vm2593_vm10, %v2582_v44, %v2053_v29 }
 0x41a   :  { %3762 = vmatmul.mubr.msk.f32.gmra.mrb[18].mxu1 %vm2670_vm11, %v2647_v18 }
 0x41b   :  { %v1651_v52 = vpop.permute.xlu1 %1650 }
 0x41c   :  { %v1649_v43 = vpop.permute.xlu0 %1648  ;;  %v2519_v12 = vsel %vm2463_vm8, %v2454_v48, %v1651_v52  ;;  %v8815_v48 = vld [vmem:[#allocation90_spill] sm:$0xff] }
 0x41d   :  { %v2518_v55 = vsel %vm2463_vm8, %v2453_v41, %v1649_v43 }
 0x41f   :  { %v1255_v62 = vpop.permute.xlu1 %1254 }
 0x420   :  { %v1853_v22 = vpop.permute.xlu0 %1852  ;;  %v2390_v56 = vsel %vm2333_vm6, %v2325_v38, %v1255_v62 }
 0x421   :  { %v2583_v45 = vsel %vm2528_vm9, %v2518_v55, %v1853_v22  ;;  %v8814_v22 = vld [vmem:[#allocation18_spill] sm:$0xff] }
 0x422   :  { %v2326_v41 = vsel %vm2268_vm5, %v2261_v60, %v8814_v22  ;;  %v8822_v22 = vld [vmem:[#allocation252_spill] sm:$0xff] }
 0x423   :  { %v2055_v33 = vpop.permute.xlu1 %2054 }
 0x424   :  { %v2648_v10 = vsel %vm2593_vm10, %v2583_v45, %v2055_v33  ;;  %v1855_v36 = vpop.permute.xlu0 %1854 }
 0x425   :  { %3764 = vmatprep.mubr.msk.f32.mxu1 %vm2670_vm11, %v2648_v10  ;;  %v2584_v19 = vsel %vm2528_vm9, %v2519_v12, %v1855_v36  ;;  %v8816_v12 = vld [vmem:[#allocation250_spill] sm:$0xff] }
 0x427   :  { %v1457_v14 = vpop.permute.xlu1 %1456 }
 0x428   :  { %v1257_v23 = vpop.permute.xlu0 %1256  ;;  %v2455_v2 = vsel %vm2398_vm7, %v2390_v56, %v1457_v14  ;;  %v8820_v56 = vld [vmem:[#allocation265_spill] sm:$0xff] }
 0x429   :  { %v2391_v45 = vsel %vm2333_vm6, %v2326_v41, %v1257_v23  ;;  %v2197_v23 = vsel %vm2138_vm3, %v7359_v58, %v8815_v48  ;;  %v8825_v48 = vld [vmem:[#allocation251_spill] sm:$0xff] }
 0x42b   :  { %v1459_v39 = vpop.permute.xlu1 %1458 }
 0x42c   :  { %v2057_v1 = vpop.permute.xlu0 %2056  ;;  %v2456_v10 = vsel %vm2398_vm7, %v2391_v45, %v1459_v39  ;;  %v2262_v39 = vsel %vm2203_vm4, %v2197_v23, %v8816_v12 }
 0x42d   :  { %v2649_v37 = vsel %vm2593_vm10, %v2584_v19, %v2057_v1  ;;  %v3733_v57 = vpop.f32.mrb[32].mxu0  ;;  %v8817_v19 = vld [vmem:[#allocation266_spill] sm:$0xff] }
 0x42e   :  { %v3099_v21 = vadd.f32 %v7436_v8, %v3733_v57  ;;  %v3093_v30 = vpop.f32.mrb[33].mxu0  ;;  %3765 = vmatmul.mubr.msk.f32.gmra.mrb[20].mxu1 %vm2670_vm11, %v2649_v37  ;;  %v2327_v1 = vsel %vm2268_vm5, %v2262_v39, %v8817_v19 }
 0x42f   :  { %v3094_v15 = vadd.f32 %v7436_v8, %v3093_v30  ;;  %v1655_v34 = vpop.permute.xlu1 %1654 }
 0x430   :  { %v3285_v6 = vmax.f32 %v3099_v21, 0.0  ;;  %v1653_v35 = vpop.permute.xlu0 %1652  ;;  %v2521_v3 = vsel %vm2463_vm8, %v2456_v10, %v1655_v34 }
 0x431   :  { %v3284_v16 = vmax.f32 %v3094_v15, 0.0  ;;  %v2520_v44 = vsel %vm2463_vm8, %v2455_v2, %v1653_v35 }
 0x433   :  { %v3353_v27 = vadd.f32 %v3285_v6, %v3284_v16  ;;  %v1259_v51 = vpop.permute.xlu1 %1258  ;;  %v2198_v16 = vsel %vm2138_vm3, %v7351_v13, %v8818_v24 }
 0x434   :  { %v1857_v50 = vpop.permute.xlu0 %1856  ;;  %v2392_v57 = vsel %vm2333_vm6, %v2327_v1, %v1259_v51  ;;  %v2263_v32 = vsel %vm2203_vm4, %v2198_v16, %v8819_v28  ;;  %v8826_v1 = vld [vmem:[#allocation267_spill] sm:$0xff] }
 0x435   :  { %v2585_v29 = vsel %vm2528_vm9, %v2520_v44, %v1857_v50  ;;  %v2328_v50 = vsel %vm2268_vm5, %v2263_v32, %v8820_v56  ;;  %v8827_v32 = vld [vmem:[#allocation98_spill] sm:$0xff]  ;;  %v8829_v56 = vld [vmem:[#allocation253_spill] sm:$0xff] }
 0x437   :  { %v2059_v18 = vpop.permute.xlu1 %2058 }
 0x438   :  { %v2650_v31 = vsel %vm2593_vm10, %v2585_v29, %v2059_v18  ;;  %v1859_v52 = vpop.permute.xlu0 %1858 }
 0x439   :  { %v3736_v43 = vpop.f32.mrb[0].mxu1  ;;  %3767 = vmatprep.mubr.msk.f32.mxu1 %vm2670_vm11, %v2650_v31  ;;  %v2586_v49 = vsel %vm2528_vm9, %v2521_v3, %v1859_v52 }
 0x43a   :  { %v3103_v17 = vpop.f32.mrb[1].mxu1  ;;  %v3109_v42 = vadd.f32 %v7436_v8, %v3736_v43 }
 0x43b   :  { %v3104_v62 = vadd.f32 %v7436_v8, %v3103_v17  ;;  %v1461_v9 = vpop.permute.xlu1 %1460 }
 0x43c   :  { %v1261_v55 = vpop.permute.xlu0 %1260  ;;  %v3287_v36 = vmax.f32 %v3109_v42, 0.0  ;;  %v2457_v30 = vsel %vm2398_vm7, %v2392_v57, %v1461_v9 }
 0x43d   :  { %v3286_v33 = vmax.f32 %v3104_v62, 0.0  ;;  %v2393_v44 = vsel %vm2333_vm6, %v2328_v50, %v1261_v55  ;;  %v8821_v62 = vld [vmem:[#allocation95_spill] sm:$0xff]  ;;  %v8823_v55 = vld [vmem:[#allocation268_spill] sm:$0xff] }
 0x43e   :  { %v2199_v9 = vsel %vm2138_vm3, %v7417_v4, %v8821_v62 }
 0x43f   :  { %v3354_v54 = vadd.f32 %v3353_v27, %v3286_v33  ;;  %v1463_v47 = vpop.permute.xlu1 %1462  ;;  %v2264_v41 = vsel %vm2203_vm4, %v2199_v9, %v8822_v22 }
 0x440   :  { %v2061_v7 = vpop.permute.xlu0 %2060  ;;  %v2458_v18 = vsel %vm2398_vm7, %v2393_v44, %v1463_v47  ;;  %v2329_v45 = vsel %vm2268_vm5, %v2264_v41, %v8823_v55 }
 0x441   :  { %v2651_v14 = vsel %vm2593_vm10, %v2586_v49, %v2061_v7  ;;  %v3355_v61 = vadd.f32 %v3354_v54, %v3287_v36 }
 0x442   :  { %3768 = vmatmul.mubr.msk.f32.gmra.mrb[22].mxu1 %vm2670_vm11, %v2651_v14 }
 0x443   :  { %v1659_v26 = vpop.permute.xlu1 %1658 }
 0x444   :  { %v1657_v59 = vpop.permute.xlu0 %1656  ;;  %v2523_v13 = vsel %vm2463_vm8, %v2458_v18, %v1659_v26 }
 0x445   :  { %v2522_v15 = vsel %vm2463_vm8, %v2457_v30, %v1657_v59 }
 0x447   :  { %v1263_v37 = vpop.permute.xlu1 %1262 }
 0x448   :  { %v1861_v21 = vpop.permute.xlu0 %1860  ;;  %v2394_v10 = vsel %vm2333_vm6, %v2329_v45, %v1263_v37 }
 0x449   :  { %v2587_v34 = vsel %vm2528_vm9, %v2522_v15, %v1861_v21 }
 0x44b   :  { %v2063_v6 = vpop.permute.xlu1 %2062 }
 0x44c   :  { %v2652_v35 = vsel %vm2593_vm10, %v2587_v34, %v2063_v6  ;;  %v1863_v58 = vpop.permute.xlu0 %1862 }
 0x44d   :  { %v3739_v40 = vpop.f32.mrb[2].mxu1  ;;  %3770 = vmatprep.mubr.msk.f32.mxu1 %vm2670_vm11, %v2652_v35  ;;  %v2588_v63 = vsel %vm2528_vm9, %v2523_v13, %v1863_v58 }
 0x44e   :  { %v3113_v46 = vpop.f32.mrb[3].mxu1  ;;  %v3119_v38 = vadd.f32 %v7436_v8, %v3739_v40 }
 0x44f   :  { %v3114_v27 = vadd.f32 %v7436_v8, %v3113_v46  ;;  %v1465_v51 = vpop.permute.xlu1 %1464 }
 0x450   :  { %v1265_v2 = vpop.permute.xlu0 %1264  ;;  %v3289_v31 = vmax.f32 %v3119_v38, 0.0  ;;  %v2459_v36 = vsel %vm2398_vm7, %v2394_v10, %v1465_v51  ;;  %v2202_v38 = vsel %vm2138_vm3, %v7472_v53, %v8827_v32 }
 0x451   :  { %v3288_v29 = vmax.f32 %v3114_v27, 0.0  ;;  %v8828_v27 = vld [vmem:[#allocation100_spill] sm:$0xff]  ;;  %v2267_v50 = vsel %vm2203_vm4, %v2202_v38, %v8829_v56 }
 0x452   :  { %v2201_v51 = vsel %vm2138_vm3, %v7480_v11, %v8828_v27 }
 0x453   :  { %v3356_v52 = vadd.f32 %v3355_v61, %v3288_v29  ;;  %v1467_v43 = vpop.permute.xlu1 %1466  ;;  %v8824_v61 = vld [vmem:[#allocation93_spill] sm:$0xff] }
 0x454   :  { %v2065_v5 = vpop.permute.xlu0 %2064  ;;  %v2200_v26 = vsel %vm2138_vm3, %v7409_v0, %v8824_v61  ;;  %v8831_v29 = vld [vmem:[#allocation269_spill] sm:$0xff] }
 0x455   :  { %v2653_v17 = vsel %vm2593_vm10, %v2588_v63, %v2065_v5  ;;  %v3357_v20 = vadd.f32 %v3356_v52, %v3289_v31  ;;  %v2265_v23 = vsel %vm2203_vm4, %v2200_v26, %v8825_v48  ;;  %v2332_v18 = vsel %vm2268_vm5, %v2267_v50, %v8831_v29  ;;  %v8832_v31 = vld [vmem:[#allocation270_spill] sm:$0xff]  ;;  %v3406_v29 = vld [vmem:[%s7903_s3 + $0x40] sm:$0xff] }
 0x456   :  { %3771 = vmatmul.mubr.msk.f32.gmra.mrb[24].mxu1 %vm2670_vm11, %v2653_v17  ;;  %v2330_v37 = vsel %vm2268_vm5, %v2265_v23, %v8826_v1  ;;  %v3398_v23 = vld [vmem:[%s7903_s3] sm:$0xff] }
 0x457   :  { %v1663_v60 = vpop.permute.xlu1 %1662  ;;  %v2395_v21 = vsel %vm2333_vm6, %v2330_v37, %v1265_v2  ;;  %v8830_v2 = vld [vmem:[#allocation254_spill] sm:$0xff] }
 0x458   :  { %v1661_v42 = vpop.permute.xlu0 %1660  ;;  %v2460_v15 = vsel %vm2398_vm7, %v2395_v21, %v1467_v43  ;;  %v2266_v44 = vsel %vm2203_vm4, %v2201_v51, %v8830_v2  ;;  %v3404_v2 = vld [vmem:[%s7903_s3 + $0x30] sm:$0xff] }
 0x459   :  { %v2524_v54 = vsel %vm2463_vm8, %v2459_v36, %v1661_v42  ;;  %v2525_v0 = vsel %vm2463_vm8, %v2460_v15, %v1663_v60  ;;  %v2331_v52 = vsel %vm2268_vm5, %v2266_v44, %v8832_v31  ;;  %v3405_v44 = vld [vmem:[%s7903_s3 + $0x38] sm:$0xff] }
 0x45b   :  { %v1267_v33 = vpop.permute.xlu1 %1266 }
 0x45c   :  { %v1865_v3 = vpop.permute.xlu0 %1864  ;;  %v2396_v63 = vsel %vm2333_vm6, %v2331_v52, %v1267_v33 }
 0x45d   :  { %v2589_v47 = vsel %vm2528_vm9, %v2524_v54, %v1865_v3 }
 0x45f   :  { %v2067_v49 = vpop.permute.xlu1 %2066 }
 0x460   :  { %v2654_v7 = vsel %vm2593_vm10, %v2589_v47, %v2067_v49  ;;  %v1867_v4 = vpop.permute.xlu0 %1866 }
 0x461   :  { %v3742_v14 = vpop.f32.mrb[4].mxu1  ;;  %3773 = vmatprep.mubr.msk.f32.mxu1 %vm2670_vm11, %v2654_v7  ;;  %v2590_v58 = vsel %vm2528_vm9, %v2525_v0, %v1867_v4 }
 0x462   :  { %v3123_v59 = vpop.f32.mrb[5].mxu1  ;;  %v3129_v12 = vadd.f32 %v7436_v8, %v3742_v14 }
 0x463   :  { %v3124_v39 = vadd.f32 %v7436_v8, %v3123_v59  ;;  %v1469_v19 = vpop.permute.xlu1 %1468 }
 0x464   :  { %v1269_v57 = vpop.permute.xlu0 %1268  ;;  %v3291_v34 = vmax.f32 %v3129_v12, 0.0  ;;  %v2461_v5 = vsel %vm2398_vm7, %v2396_v63, %v1469_v19  ;;  %v3399_v12 = vld [vmem:[%s7903_s3 + $0x8] sm:$0xff] }
 0x465   :  { %v3290_v30 = vmax.f32 %v3124_v39, 0.0  ;;  %v2397_v43 = vsel %vm2333_vm6, %v2332_v18, %v1269_v57  ;;  %v4014_v39 = vmov 0.0|0.0   ;;  %v3823_v19 = vpack.c.bf16 %v3399_v12, %v3398_v23 }
 0x466   :  { %3822 = vmatprep.subr.bf16.mxu1 %v4014_v39  ;;  %v3832_v18 = vpack.c.bf16 %v3405_v44, %v3404_v2 }
 0x467   :  { %v3358_v6 = vadd.f32 %v3357_v20, %v3290_v30  ;;  %v1471_v35 = vpop.permute.xlu1 %1470  ;;  %3824 = vmatpush3.bf16.msra.mxu1 %v3823_v19 }
 0x468   :  { %v2069_v40 = vpop.permute.xlu0 %2068  ;;  %v2462_v11 = vsel %vm2398_vm7, %v2397_v43, %v1471_v35  ;;  %3825 = vmatprep.subr.bf16.mxu1 %v4014_v39  ;;  %v3401_v35 = vld [vmem:[%s7903_s3 + $0x18] sm:$0xff] }
 0x469   :  { %v2655_v24 = vsel %vm2593_vm10, %v2590_v58, %v2069_v40  ;;  %v3359_v16 = vadd.f32 %v3358_v6, %v3291_v34  ;;  %v3400_v6 = vld [vmem:[%s7903_s3 + $0x10] sm:$0xff]  ;;  %v3402_v58 = vld [vmem:[%s7903_s3 + $0x20] sm:$0xff] }
 0x46a   :  { %3774 = vmatmul.mubr.msk.f32.gmra.mrb[26].mxu1 %vm2670_vm11, %v2655_v24  ;;  %v3826_v40 = vpack.c.bf16 %v3401_v35, %v3400_v6  ;;  %v3403_v24 = vld [vmem:[%s7903_s3 + $0x28] sm:$0xff] }
 0x46b   :  { %v1667_v46 = vpop.permute.xlu1 %1666 }
 0x46c   :  { %v1665_v28 = vpop.permute.xlu0 %1664  ;;  %v2527_v17 = vsel %vm2463_vm8, %v2462_v11, %v1667_v46  ;;  %3827 = vmatpush3.bf16.msra.mxu1 %v3826_v40 }
 0x46d   :  { %v2526_v20 = vsel %vm2463_vm8, %v2461_v5, %v1665_v28  ;;  %v3829_v28 = vpack.c.bf16 %v3403_v24, %v3402_v58  ;;  %3828 = vmatprep.subr.bf16.mxu1 %v4014_v39 }
 0x46f   :  { %v1871_v13 = vpop.permute.xlu1 %1870 }
 0x470   :  { %v1869_v53 = vpop.permute.xlu0 %1868  ;;  %v2592_v60 = vsel %vm2528_vm9, %v2527_v17, %v1871_v13  ;;  %3830 = vmatpush3.bf16.msra.mxu1 %v3829_v28  ;;  %v3407_v13 = vld [vmem:[%s7903_s3 + $0x48] sm:$0xff] }
 0x471   :  { %v2591_v62 = vsel %vm2528_vm9, %v2526_v20, %v1869_v53  ;;  %3831 = vmatprep.subr.bf16.mxu1 %v4014_v39  ;;  %v3835_v43 = vpack.c.bf16 %v3407_v13, %v3406_v29 }
 0x473   :  { %v2073_v42 = vpop.permute.xlu1 %2072 }
 0x474   :  { %v2657_v9 = vsel %vm2593_vm10, %v2592_v60, %v2073_v42  ;;  %v2071_v22 = vpop.permute.xlu0 %2070  ;;  %3833 = vmatpush3.bf16.msra.mxu1 %v3832_v18  ;;  %v3408_v60 = vld [vmem:[%s7903_s3 + $0x50] sm:$0xff]  ;;  %v3409_v42 = vld [vmem:[%s7903_s3 + $0x58] sm:$0xff] }
 0x475   :  { %v2656_v41 = vsel %vm2593_vm10, %v2591_v62, %v2071_v22  ;;  %v3745_v55 = vpop.f32.mrb[6].mxu1  ;;  %3834 = vmatprep.subr.bf16.mxu1 %v4014_v39  ;;  %v3838_v62 = vpack.c.bf16 %v3409_v42, %v3408_v60  ;;  %v3410_v22 = vld [vmem:[%s7903_s3 + $0x60] sm:$0xff] }
 0x476   :  { %v3133_v45 = vpop.f32.mrb[7].mxu1  ;;  %3776 = vmatprep.mubr.msk.f32.mxu1 %vm2670_vm11, %v2656_v41  ;;  %v3139_v33 = vadd.f32 %v7436_v8, %v3745_v55  ;;  %v3411_v41 = vld [vmem:[%s7903_s3 + $0x68] sm:$0xff]  ;;  %v3957_v60 = vld [vmem:[%s7902_s2] ss:$0 sm:$0xff]  ;;  %s4017_s2 = smov [#allocation4]  }
 0x477   :  { %v3134_v10 = vadd.f32 %v7436_v8, %v3133_v45  ;;  %3777 = vmatmul.mubr.msk.f32.gmra.mrb[28].mxu1 %vm2670_vm11, %v2657_v9  ;;  %v3841_v45 = vpack.c.bf16 %v3411_v41, %v3410_v22  ;;  %s3508_s20 = sshll.u32 %s4017_s2, 4  ;;  %s3509_s20 = int_to_ptr.vmem [resolvable:$true] %s3508_s20 }
 0x478   :  { %v3293_v36 = vmax.f32 %v3139_v33, 0.0  ;;  %3836 = vmatpush3.bf16.msra.mxu1 %v3835_v43  ;;  %s3958_s21 = scalar_lea.vmem %s3509_s20, 32  ;;  %p3963_p1 = scmp.lt.s32.totalorder %s3509_s20, %s3509_s20 }
 0x479   :  { %v3292_v3 = vmax.f32 %v3134_v10, 0.0  ;;  %3837 = vmatprep.subr.bf16.mxu1 %v4014_v39  ;;  %p3959_p0 = scmp.ne.s32.totalorder %s3509_s20, %s3958_s21  ;;  %p3964_p2 = scmp.lt.s32.totalorder %s3958_s21, %s3958_s21 }
 0x47b   :  { %v3360_v54 = vadd.f32 %v3359_v16, %v3292_v3  ;;  %v3412_v3 = vld [vmem:[%s7903_s3 + $0x70] sm:$0xff]  ;;  %p3965_p3 = por %p3964_p2, %p3963_p1 }
 0x47c   :  { %3839 = vmatpush3.bf16.msra.mxu1 %v3838_v62 }
 0x47d   :  { %v3361_v47 = vadd.f32 %v3360_v54, %v3293_v36  ;;  %3840 = vmatprep.subr.bf16.mxu1 %v4014_v39  ;;  %v3413_v36 = vld [vmem:[%s7903_s3 + $0x78] sm:$0xff]  ;;  %p3966_p4 = pnand %p3965_p3, %p3959_p0 }
 0x480   :  { %3842 = vmatpush3.bf16.msra.mxu1 %v3841_v45 }
 0x481   :  { %3843 = vmatprep.subr.bf16.mxu1 %v4014_v39 }
 0x489   :  { %v3748_v49 = vpop.f32.mrb[8].mxu1 }
 0x48a   :  { %v3143_v7 = vpop.f32.mrb[9].mxu1  ;;  %v3149_v4 = vadd.f32 %v7436_v8, %v3748_v49  ;;  %v4016_v49 = vmov 0.0  }
 0x48b   :  { %v3144_v14 = vadd.f32 %v7436_v8, %v3143_v7  ;;  %3811 = vmatprep.mubr.msk.f32.mxu1 %vm4015_vm12, %v4016_v49 }
 0x48c   :  { %v3295_v26 = vmax.f32 %v3149_v4, 0.0 }
 0x48d   :  { %v3294_v61 = vmax.f32 %v3144_v14, 0.0 }
 0x48f   :  { %v3362_v59 = vadd.f32 %v3361_v47, %v3294_v61  ;;  %v3844_v47 = vpack.c.bf16 %v3413_v36, %v3412_v3 }
 0x491   :  { %v3363_v48 = vadd.f32 %v3362_v59, %v3295_v26  ;;  %3845 = vmatpush3.bf16.msra.mxu1 %v3844_v47 }
 0x49d   :  { %v3751_v1 = vpop.f32.mrb[10].mxu1 }
 0x49e   :  { %v3153_v37 = vpop.f32.mrb[11].mxu1  ;;  %v3159_v57 = vadd.f32 %v7436_v8, %v3751_v1 }
 0x49f   :  { %v3154_v21 = vadd.f32 %v7436_v8, %v3153_v37 }
 0x4a0   :  { %v3297_v15 = vmax.f32 %v3159_v57, 0.0 }
 0x4a1   :  { %v3296_v30 = vmax.f32 %v3154_v21, 0.0 }
 0x4a3   :  { %v3364_v0 = vadd.f32 %v3363_v48, %v3296_v30 }
 0x4a5   :  { %v3365_v34 = vadd.f32 %v3364_v0, %v3297_v15 }
 0x4b1   :  { %v3754_v16 = vpop.f32.mrb[12].mxu1 }
 0x4b2   :  { %v3163_v46 = vpop.f32.mrb[13].mxu1  ;;  %v3169_v32 = vadd.f32 %v7436_v8, %v3754_v16 }
 0x4b3   :  { %v3164_v38 = vadd.f32 %v7436_v8, %v3163_v46 }
 0x4b4   :  { %v3299_v51 = vmax.f32 %v3169_v32, 0.0 }
 0x4b5   :  { %v3298_v27 = vmax.f32 %v3164_v38, 0.0 }
 0x4b7   :  { %v3366_v56 = vadd.f32 %v3365_v34, %v3298_v27 }
 0x4b9   :  { %v3367_v50 = vadd.f32 %v3366_v56, %v3299_v51 }
 0x4c5   :  { %v3757_v31 = vpop.f32.mrb[14].mxu1 }
 0x4c6   :  { %v3173_v52 = vpop.f32.mrb[15].mxu1  ;;  %v3179_v53 = vadd.f32 %v7436_v8, %v3757_v31 }
 0x4c7   :  { %v3174_v63 = vadd.f32 %v7436_v8, %v3173_v52 }
 0x4c8   :  { %v3301_v5 = vmax.f32 %v3179_v53, 0.0 }
 0x4c9   :  { %v3300_v11 = vmax.f32 %v3174_v63, 0.0 }
 0x4cb   :  { %v3368_v17 = vadd.f32 %v3367_v50, %v3300_v11  ;;  %v3347_v11 = vrot.slane %v7648_v25, 4 }
 0x4cd   :  { %v3369_v20 = vadd.f32 %v3368_v17, %v3301_v5 }
 0x4d9   :  { %v3760_v9 = vpop.f32.mrb[16].mxu1 }
 0x4da   :  { %v3183_v55 = vpop.f32.mrb[17].mxu1  ;;  %v3189_v33 = vadd.f32 %v7436_v8, %v3760_v9 }
 0x4db   :  { %v3184_v10 = vadd.f32 %v7436_v8, %v3183_v55 }
 0x4dc   :  { %v3303_v7 = vmax.f32 %v3189_v33, 0.0 }
 0x4dd   :  { %v3302_v54 = vmax.f32 %v3184_v10, 0.0 }
 0x4df   :  { %v3370_v4 = vadd.f32 %v3369_v20, %v3302_v54  ;;  %v3348_v20 = vadd.f32 %v3347_v11, %v7648_v25 }
 0x4e1   :  { %v3371_v14 = vadd.f32 %v3370_v4, %v3303_v7  ;;  %v3349_v22 = vrot.slane %v3348_v20, 2 }
 0x4e3   :  { %v3350_v45 = vadd.f32 %v3349_v22, %v3348_v20 }
 0x4e5   :  { %v3351_v3 = vrot.slane %v3350_v45, 1 }
 0x4e7   :  { %v3352_v49 = vadd.f32 %v3351_v3, %v3350_v45 }
 0x4e9   :  { %v3390_v7 = vmul.f32 0.00390625, %v3352_v49 }
 0x4ed   :  { %v3763_v61 = vpop.f32.mrb[18].mxu1 }
 0x4ee   :  { %v3193_v26 = vpop.f32.mrb[19].mxu1  ;;  %v3199_v59 = vadd.f32 %v7436_v8, %v3763_v61 }
 0x4ef   :  { %v3194_v48 = vadd.f32 %v7436_v8, %v3193_v26 }
 0x4f0   :  { %v3305_v12 = vmax.f32 %v3199_v59, 0.0 }
 0x4f1   :  { %v3304_v23 = vmax.f32 %v3194_v48, 0.0 }
 0x4f3   :  { %v3372_v19 = vadd.f32 %v3371_v14, %v3304_v23 }
 0x4f5   :  { %v3373_v1 = vadd.f32 %v3372_v19, %v3305_v12 }
 0x501   :  { %v3766_v37 = vpop.f32.mrb[20].mxu1 }
 0x502   :  { %v3203_v39 = vpop.f32.mrb[21].mxu1  ;;  %v3209_v57 = vadd.f32 %v7436_v8, %v3766_v37 }
 0x503   :  { %v3204_v21 = vadd.f32 %v7436_v8, %v3203_v39 }
 0x504   :  { %v3307_v15 = vmax.f32 %v3209_v57, 0.0 }
 0x505   :  { %v3306_v30 = vmax.f32 %v3204_v21, 0.0 }
 0x507   :  { %v3374_v0 = vadd.f32 %v3373_v1, %v3306_v30 }
 0x509   :  { %v3375_v34 = vadd.f32 %v3374_v0, %v3307_v15 }
 0x515   :  { %v3769_v6 = vpop.f32.mrb[22].mxu1 }
 0x516   :  { %v3213_v35 = vpop.f32.mrb[23].mxu1  ;;  %v3219_v58 = vadd.f32 %v7436_v8, %v3769_v6 }
 0x517   :  { %v3214_v40 = vadd.f32 %v7436_v8, %v3213_v35 }
 0x518   :  { %v3309_v16 = vmax.f32 %v3219_v58, 0.0 }
 0x519   :  { %v3308_v24 = vmax.f32 %v3214_v40, 0.0 }
 0x51b   :  { %v3376_v46 = vadd.f32 %v3375_v34, %v3308_v24 }
 0x51d   :  { %v3377_v28 = vadd.f32 %v3376_v46, %v3309_v16 }
 0x529   :  { %v3772_v32 = vpop.f32.mrb[24].mxu1 }
 0x52a   :  { %v3223_v38 = vpop.f32.mrb[25].mxu1  ;;  %v3229_v27 = vadd.f32 %v7436_v8, %v3772_v32 }
 0x52b   :  { %v3224_v51 = vadd.f32 %v7436_v8, %v3223_v38 }
 0x52c   :  { %v3311_v50 = vmax.f32 %v3229_v27, 0.0 }
 0x52d   :  { %v3310_v56 = vmax.f32 %v3224_v51, 0.0 }
 0x52f   :  { %v3378_v2 = vadd.f32 %v3377_v28, %v3310_v56 }
 0x531   :  { %v3379_v44 = vadd.f32 %v3378_v2, %v3311_v50 }
 0x53d   :  { %v3775_v29 = vpop.f32.mrb[26].mxu1 }
 0x53e   :  { %v3233_v18 = vpop.f32.mrb[27].mxu1  ;;  %v3239_v13 = vadd.f32 %v7436_v8, %v3775_v29 }
 0x53f   :  { %v3234_v31 = vadd.f32 %v7436_v8, %v3233_v18 }
 0x540   :  { %v3313_v43 = vmax.f32 %v3239_v13, 0.0 }
 0x541   :  { %v3312_v52 = vmax.f32 %v3234_v31, 0.0 }
 0x543   :  { %v3380_v53 = vadd.f32 %v3379_v44, %v3312_v52 }
 0x545   :  { %v3381_v63 = vadd.f32 %v3380_v53, %v3313_v43 }
 0x54a   :  { %v3778_v5 = vpop.f32.mrb[28].mxu1 }
 0x54b   :  { %v3243_v17 = vpop.f32.mrb[29].mxu1  ;;  %v3249_v42 = vadd.f32 %v3957_v60, %v3778_v5 }
 0x54c   :  { %v3244_v62 = vadd.f32 %v3957_v60, %v3243_v17 }
 0x54d   :  { %v3315_v41 = vmax.f32 %v3249_v42, 0.0 }
 0x54e   :  { %v3314_v9 = vmax.f32 %v3244_v62, 0.0 }
 0x550   :  { %v3382_v8 = vadd.f32 %v3381_v63, %v3314_v9 }
 0x552   :  { %v3383_v55 = vadd.f32 %v3382_v8, %v3315_v41 }
 0x554   :  { %v3384_v33 = vrot.slane %v3383_v55, 4 }
 0x556   :  { %v3385_v10 = vadd.f32 %v3384_v33, %v3383_v55 }
 0x558   :  { %v3386_v36 = vrot.slane %v3385_v10, 2 }
 0x55a   :  { %v3387_v54 = vadd.f32 %v3386_v36, %v3385_v10 }
 0x55c   :  { %v3388_v47 = vrot.slane %v3387_v54, 1 }
 0x55e   :  { %v3389_v25 = vadd.f32 %v3388_v47, %v3387_v54 }
 0x560   :  { %v3391_v4 = vmul.f32 0.00390625, %v3389_v25 }
 0x562   :  { %v3395_v14 = vsel %vm3394_vm13, %v3391_v4, %v3390_v7 }
 0x563   :  { %3812 = vmatmul.mubr.f32.vlgmr.msra.gmra.mrb[30].mxu1 %v3395_v14  ;;  %3397 = vst [vmem:[#allocation4] sm:$0x3] %v3395_v14 }
 0x564   :  { %3969 = shalt.err (!%p3966_p4)
}
 0x565   :  { %s3970_s25 = scalar_lea.hbm %s7906_s6, 32 }
 0x566   :  { %p3971_p5 = scmp.ne.s32.totalorder %s7906_s6, %s3970_s25  ;;  %p3974_p6 = scmp.lt.u32.totalorder %s3970_s25, %s7906_s6 }
 0x568   :  { %p3976_p7 = pnand %p3974_p6, %p3971_p5 }
 0x56a   :  { %3979 = shalt.err (!%p3976_p7)
}
 0x56b   :  { %3511 = dma.vmem_to_hbm [thread:$0]  %s3509_s20, 32, %s7906_s6, [#allocation5]   ;;  %v3586_v61 = vld [vmem:[%s7904_s4] ss:$0 sm:$0xff] }
 0x56c   :  { %s4018_s11 = smov [#allocation2]  }
 0x56d   :  { %s3498_s12 = sshll.u32 %s4018_s11, 4  ;;  %s3499_s12 = int_to_ptr.vmem [resolvable:$true] %s3498_s12 }
 0x56e   :  { %s3980_s14 = scalar_lea.vmem %s3499_s12, 32  ;;  %p3985_p9 = scmp.lt.s32.totalorder %s3499_s12, %s3499_s12 }
 0x56f   :  { %p3981_p8 = scmp.ne.s32.totalorder %s3499_s12, %s3980_s14  ;;  %p3986_p10 = scmp.lt.s32.totalorder %s3980_s14, %s3980_s14 }
 0x571   :  { %p3987_p11 = por %p3986_p10, %p3985_p9 }
 0x573   :  { %p3988_p12 = pnand %p3987_p11, %p3981_p8 }
 0x636   :  { %v3487_v26 = vpop.f32.mrb[30].mxu1 }
 0x637   :  { %v3488_v59 = vadd.f32 %v3586_v61, %v3487_v26  ;;  %v3813_v48 = vpop.f32.mrb[31].mxu1 }
 0x639   :  { %3491 = vst [vmem:[#allocation2] sm:$0x3] %v3488_v59 }
 0x63a   :  { %3991 = shalt.err (!%p3988_p12)
}
 0x63b   :  { %s3992_s17 = scalar_lea.hbm %s7905_s5, 32 }
 0x63c   :  { %p3993_p13 = scmp.ne.s32.totalorder %s7905_s5, %s3992_s17  ;;  %p3996_p0 = scmp.lt.u32.totalorder %s3992_s17, %s7905_s5 }
 0x63e   :  { %p3998_p1 = pnand %p3996_p0, %p3993_p13 }
 0x640   :  { %4001 = shalt.err (!%p3998_p1)
}
 0x641   :  { %3501 = dma.vmem_to_hbm [thread:$0]  %s3499_s12, 32, %s7905_s5, [#allocation3]  }
 0x642   :  { %4002 = dma.done.wait [#allocation3], 32  }
 0x643   :  { %4003 = vsyncadd [#allocation3], 4294967264 }
 0x644   :  { %4004 = dma.done.wait [#allocation5], 32  }
 0x645   :  { %4005 = vsyncadd [#allocation5], 4294967264 }
 0x646   :  { %3518 = vsyncpa [#allocation3], 1 }
 0x647   :  { %3519 = vsyncpa [#allocation5], 1 }

</bundles_post_ra>
